<compile_context>
chip_gen: v5e
topology: v5e:2x2
jax: 0.10.0
libtpu: 0.0.40
codegen_flags: <defaults>
</compile_context>

<pallas_src>
import functools

import jax
import jax.numpy as jnp
from jax.experimental import pallas as pl
from jax.experimental.pallas import tpu as pltpu


# ----------------------------------------------------------------------------
# helpers
# ----------------------------------------------------------------------------
def _round_up(x, m):
    return ((x + m - 1) // m) * m


def _pick_tile(dim, unit, cap):
    """Largest tile <= cap that is a multiple of `unit` and divides the padded dim."""
    padded = _round_up(dim, unit)
    best = unit
    t = unit
    while t <= min(cap, padded):
        if padded % t == 0:
            best = t
        t += unit
    return best, _round_up(padded, best)


# ----------------------------------------------------------------------------
# Pallas kernel:  out = x @ w + shift  [+ residual]  [ReLU]
#   x, w            : bf16 tiles (MXU-native)
#   accumulator     : f32 VMEM scratch, accumulated over the K grid axis
#   shift, residual : f32, applied in the epilogue on the last K step
# ----------------------------------------------------------------------------
def _fused_matmul_kernel(x_ref, w_ref, shift_ref, *rest, has_res: bool, relu: bool):
    if has_res:
        res_ref, o_ref, acc_ref = rest
    else:
        o_ref, acc_ref = rest
    k = pl.program_id(2)

    @pl.when(k == 0)
    def _():
        acc_ref[...] = jnp.zeros_like(acc_ref)

    acc_ref[...] += jnp.dot(x_ref[...], w_ref[...],
                            preferred_element_type=jnp.float32)

    @pl.when(k == pl.num_programs(2) - 1)
    def _():
        out = acc_ref[...] + shift_ref[...]
        if has_res:
            out = out + res_ref[...]
        if relu:
            out = jnp.maximum(out, 0.0)
        o_ref[...] = out.astype(o_ref.dtype)


def _fused_matmul(x, w, shift, residual=None, relu=True):
    """x: [M, K] f32; w: [K, N] f32 (BN scale pre-folded); shift: [N] f32.

    Returns [M, N] f32. Inputs are padded to lane/sublane-dense tiles and cast
    to bf16 for the MXU; the result is sliced back to the logical shape.
    """
    M, K = x.shape
    K2, N = w.shape
    assert K == K2

    tm, Mp = _pick_tile(M, 16, 256)
    tn, Np = _pick_tile(N, 128, 256)
    tk, Kp = _pick_tile(K, 128, 512)

    x_p = jnp.pad(x, ((0, Mp - M), (0, Kp - K))).astype(jnp.bfloat16)
    w_p = jnp.pad(w, ((0, Kp - K), (0, Np - N))).astype(jnp.bfloat16)
    s_p = jnp.pad(shift.reshape(1, N).astype(jnp.float32),
                  ((0, 0), (0, Np - N)))

    args = [x_p, w_p, s_p]
    in_specs = [
        pl.BlockSpec((tm, tk), lambda i, j, k: (i, k)),
        pl.BlockSpec((tk, tn), lambda i, j, k: (k, j)),
        pl.BlockSpec((1, tn), lambda i, j, k: (0, j)),
    ]
    if residual is not None:
        r_p = jnp.pad(residual.astype(jnp.float32),
                      ((0, Mp - M), (0, Np - N)))
        args.append(r_p)
        in_specs.append(pl.BlockSpec((tm, tn), lambda i, j, k: (i, j)))

    grid = (Mp // tm, Np // tn, Kp // tk)
    bytes_accessed = (x_p.size * 2 + w_p.size * 2 + s_p.size * 4 + Mp * Np * 4
                      + (Mp * Np * 4 if residual is not None else 0))

    kernel = functools.partial(_fused_matmul_kernel,
                               has_res=residual is not None, relu=relu)
    out = pl.pallas_call(
        kernel,
        out_shape=jax.ShapeDtypeStruct((Mp, Np), jnp.float32),
        grid_spec=pltpu.PrefetchScalarGridSpec(
            num_scalar_prefetch=0,
            grid=grid,
            in_specs=in_specs,
            out_specs=pl.BlockSpec((tm, tn), lambda i, j, k: (i, j)),
            scratch_shapes=[pltpu.VMEM((tm, tn), jnp.float32)],
        ),
        compiler_params=pltpu.CompilerParams(
            dimension_semantics=("parallel", "parallel", "arbitrary")),
        cost_estimate=pl.CostEstimate(
            flops=2 * Mp * Kp * Np,
            transcendentals=0,
            bytes_accessed=int(bytes_accessed)),
    )(*args)
    return out[:M, :N]


# ----------------------------------------------------------------------------
# Plain-JAX glue: im2col, BN folding, conv layer, residual block, head
# ----------------------------------------------------------------------------
def _im2col(x, kh, kw, stride, padding):
    """x: [N,H,W,C] -> patches [N*Ho*Wo, kh*kw*C] ((kh,kw) major, C minor)."""
    N, H, W, C = x.shape
    if padding:
        x = jnp.pad(x, ((0, 0), (padding, padding), (padding, padding), (0, 0)))
    Ho = (H + 2 * padding - kh) // stride + 1
    Wo = (W + 2 * padding - kw) // stride + 1
    cols = []
    for i in range(kh):
        for j in range(kw):
            cols.append(x[:, i:i + stride * Ho:stride, j:j + stride * Wo:stride, :])
    cols = jnp.stack(cols, axis=3)                               # [N,Ho,Wo,kh*kw,C]
    return cols.reshape(N * Ho * Wo, kh * kw * C), N, Ho, Wo


def _fold_bn(p, eps=1e-5):
    """Fold eval-mode BN into the conv weights.

    Returns (w_mat [kh*kw*Cin, Cout] with scale folded in, shift [Cout])."""
    w, b = p["w"], p["b"]                                        # torch [Cout,Cin,kh,kw]
    Cout, Cin, kh, kw = w.shape
    scale = p["gamma"] / jnp.sqrt(p["var"] + eps)
    w_mat = jnp.transpose(w, (2, 3, 1, 0)).reshape(kh * kw * Cin, Cout)
    w_mat = w_mat * scale[None, :]
    shift = (b - p["mean"]) * scale + p["beta"]
    return w_mat, shift


def _conv_bn_act(x, p, stride, padding, relu=True):
    Cout, Cin, kh, kw = p["w"].shape
    patches, N, Ho, Wo = _im2col(x, kh, kw, stride, padding)
    w_mat, shift = _fold_bn(p)
    out = _fused_matmul(patches, w_mat, shift, relu=relu)
    return out.reshape(N, Ho, Wo, Cout)


def _resblk(x, p, stride):
    # conv1 + bn1 + relu
    out1 = _conv_bn_act(x, p["conv1"], stride=stride, padding=1, relu=True)
    N, Ho, Wo, Cout = out1.shape

    patches2, _, _, _ = _im2col(out1, 3, 3, 1, 1)
    w2, shift2 = _fold_bn(p["conv2"])

    if "extra" in p:
        # Fuse the 1x1 projection shortcut into the same kernel via K-concat:
        #   out = [patches2 | x_strided] @ [[w2],[w_extra]] + (shift2 + shift_e)
        xs, _, Hs, Ws = _im2col(x, 1, 1, stride, 0)
        assert (Hs, Ws) == (Ho, Wo)
        we, shifte = _fold_bn(p["extra"])
        x_cat = jnp.concatenate([patches2, xs], axis=1)
        w_cat = jnp.concatenate([w2, we], axis=0)
        out = _fused_matmul(x_cat, w_cat, shift2 + shifte, relu=True)
    else:
        # Identity shortcut fused as a residual add in the kernel epilogue.
        # TODO(synk): like the PyTorch module, this only works when spatial
        # dims already match (true here because spatial is 1x1 by blk4).
        assert x.shape == (N, Ho, Wo, Cout), "identity shortcut shape mismatch"
        res = x.reshape(N * Ho * Wo, Cout)
        out = _fused_matmul(patches2, w2, shift2, residual=res, relu=True)

    return out.reshape(N, Ho, Wo, Cout)


def _pool_fc(x, fc_w, fc_b):
    """adaptive_avg_pool2d(1,1) + Linear as a single MXU matmul.

    The 1/HW mean is folded into the FC weights (replicated along K)."""
    N, H, W, C = x.shape
    HW = H * W
    x_flat = x.reshape(N, HW * C)
    w_exp = jnp.tile(fc_w.T / float(HW), (HW, 1))                # [HW*C, Cout]
    return _fused_matmul(x_flat, w_exp, fc_b, relu=False)


def resnet18_forward(x_nchw, params):
    x = jnp.transpose(x_nchw, (0, 2, 3, 1))                      # NCHW -> NHWC
    x = _conv_bn_act(x, params["conv1"], stride=3, padding=0, relu=True)
    x = _resblk(x, params["blk1"], stride=2)
    x = _resblk(x, params["blk2"], stride=2)
    x = _resblk(x, params["blk3"], stride=2)
    x = _resblk(x, params["blk4"], stride=2)
    return _pool_fc(x, params["fc_w"], params["fc_b"])


# ----------------------------------------------------------------------------
# Deterministic synthetic parameter init (shapes from the PyTorch __init__)
# ----------------------------------------------------------------------------
def _init_conv_bn(key, cin, cout, k):
    k1, k2, k3, k4, k5, k6 = jax.random.split(key, 6)
    fan = float(cin * k * k)
    return dict(
        w=jax.random.normal(k1, (cout, cin, k, k), jnp.float32) * (fan ** -0.5),
        b=0.01 * jax.random.normal(k2, (cout,), jnp.float32),
        gamma=1.0 + 0.1 * jax.random.normal(k3, (cout,), jnp.float32),
        beta=0.1 * jax.random.normal(k4, (cout,), jnp.float32),
        mean=0.1 * jax.random.normal(k5, (cout,), jnp.float32),
        var=1.0 + 0.1 * jnp.abs(jax.random.normal(k6, (cout,), jnp.float32)),
    )


def init_resnet18_params(key):
    keys = jax.random.split(key, 16)
    params = {"conv1": _init_conv_bn(keys[0], 3, 64, 3)}

    def blk(kk, cin, cout, with_extra):
        p = {"conv1": _init_conv_bn(kk[0], cin, cout, 3),
             "conv2": _init_conv_bn(kk[1], cout, cout, 3)}
        if with_extra:
            p["extra"] = _init_conv_bn(kk[2], cin, cout, 1)
        return p

    params["blk1"] = blk(keys[1:4], 64, 128, True)
    params["blk2"] = blk(keys[4:7], 128, 256, True)
    params["blk3"] = blk(keys[7:10], 256, 512, True)
    params["blk4"] = blk(keys[10:13], 512, 512, False)   # ch_in == ch_out -> identity extra
    params["fc_w"] = jax.random.normal(keys[13], (10, 512), jnp.float32) * (512.0 ** -0.5)
    params["fc_b"] = 0.01 * jax.random.normal(keys[14], (10,), jnp.float32)
    return params


# ----------------------------------------------------------------------------
if __name__ == "__main__":
    key = jax.random.PRNGKey(0)
    k_x, k_p = jax.random.split(key)
    # small input consistent with the module: 3 input channels, 16x16 spatial
    x = jax.random.normal(k_x, (2, 3, 16, 16), jnp.float32)      # NCHW like PyTorch
    params = init_resnet18_params(k_p)

    fwd = jax.jit(resnet18_forward)
    out = jax.block_until_ready(fwd(x, params))
    assert out.shape == (2, 10) and out.dtype == jnp.float32
    print("KERNEL_OK")
</pallas_src>

<mosaic_0001>
module attributes {stable_mosaic.version = 11 : i64} {
  func.func @_fused_matmul_kernel(%arg0: i32, %arg1: i32, %arg2: i32, %arg3: memref<64x128xbf16, #tpu.memory_space<vmem>>, %arg4: memref<128x128xbf16, #tpu.memory_space<vmem>>, %arg5: memref<1x128xf32, #tpu.memory_space<vmem>>, %arg6: memref<64x128xf32, #tpu.memory_space<vmem>>, %arg7: memref<64x128xf32, #tpu.memory_space<vmem>>) attributes {dimension_semantics = [#tpu.dimension_semantics<parallel>, #tpu.dimension_semantics<parallel>, #tpu.dimension_semantics<arbitrary>], iteration_bounds = array<i64: 1, 1, 1>, scalar_prefetch = 0 : i64, scratch_operands = 1 : i64, tpu.core_type = #tpu.core_type<tc>, window_params = [{transform_indices = @transform_0, window_bounds = array<i64: 64, 128>}, {transform_indices = @transform_1, window_bounds = array<i64: 128, 128>}, {transform_indices = @transform_2, window_bounds = array<i64: 1, 128>}, {transform_indices = @transform_3, window_bounds = array<i64: 64, 128>}]} {
    %c0_i32 = arith.constant 0 : i32
    %0 = arith.cmpi eq, %arg2, %c0_i32 : i32
    %1 = arith.extui %0 : i1 to i32
    %c0_i32_0 = arith.constant 0 : i32
    %2 = arith.cmpi ne, %1, %c0_i32_0 : i32
    scf.if %2 {
      %cst_10 = arith.constant 0.000000e+00 : f32
      %12 = vector.broadcast %cst_10 : f32 to vector<64x128xf32>
      %c0_11 = arith.constant 0 : index
      %c0_12 = arith.constant 0 : index
      %13 = vector.load %arg7[%c0_11, %c0_12] : memref<64x128xf32, #tpu.memory_space<vmem>>, vector<64x128xf32>
      tpu.vector_store %arg7[%c0_11, %c0_12], %12 {strides = array<i32>} : memref<64x128xf32, #tpu.memory_space<vmem>>, vector<64x128xf32>,
    } else {
    }
    %c0 = arith.constant 0 : index
    %c0_1 = arith.constant 0 : index
    %3 = vector.load %arg7[%c0, %c0_1] : memref<64x128xf32, #tpu.memory_space<vmem>>, vector<64x128xf32>
    %c0_2 = arith.constant 0 : index
    %c0_3 = arith.constant 0 : index
    %4 = vector.load %arg3[%c0_2, %c0_3] : memref<64x128xbf16, #tpu.memory_space<vmem>>, vector<64x128xbf16>
    %c0_4 = arith.constant 0 : index
    %c0_5 = arith.constant 0 : index
    %5 = vector.load %arg4[%c0_4, %c0_5] : memref<128x128xbf16, #tpu.memory_space<vmem>>, vector<128x128xbf16>
    %cst = arith.constant dense<0.000000e+00> : vector<64x128xf32>
    %6 = tpu.matmul %4, %5, %cst {dimension_numbers = #tpu.dot_dimension_numbers<[1], [0], [0], [1], [0, 0, 1, 1], [], []>} : vector<64x128xbf16>, vector<128x128xbf16>, vector<64x128xf32> -> vector<64x128xf32>
    %7 = arith.addf %3, %6 : vector<64x128xf32>
    %c0_6 = arith.constant 0 : index
    %c0_7 = arith.constant 0 : index
    %8 = vector.load %arg7[%c0_6, %c0_7] : memref<64x128xf32, #tpu.memory_space<vmem>>, vector<64x128xf32>
    tpu.vector_store %arg7[%c0_6, %c0_7], %7 {strides = array<i32>} : memref<64x128xf32, #tpu.memory_space<vmem>>, vector<64x128xf32>,
    %c0_i32_8 = arith.constant 0 : i32
    %9 = arith.cmpi eq, %arg2, %c0_i32_8 : i32
    %10 = arith.extui %9 : i1 to i32
    %c0_i32_9 = arith.constant 0 : i32
    %11 = arith.cmpi ne, %10, %c0_i32_9 : i32
    scf.if %11 {
      %c0_10 = arith.constant 0 : index
      %c0_11 = arith.constant 0 : index
      %12 = vector.load %arg7[%c0_10, %c0_11] : memref<64x128xf32, #tpu.memory_space<vmem>>, vector<64x128xf32>
      %c0_12 = arith.constant 0 : index
      %c0_13 = arith.constant 0 : index
      %13 = vector.load %arg5[%c0_12, %c0_13] : memref<1x128xf32, #tpu.memory_space<vmem>>, vector<1x128xf32>
      %14 = vector.broadcast %13 : vector<1x128xf32> to vector<64x128xf32>
      %15 = arith.addf %12, %14 : vector<64x128xf32>
      %cst_14 = arith.constant 0.000000e+00 : f32
      %16 = vector.broadcast %cst_14 : f32 to vector<64x128xf32>
      %17 = arith.maximumf %15, %16 : vector<64x128xf32>
      %c0_15 = arith.constant 0 : index
      %c0_16 = arith.constant 0 : index
      %18 = vector.load %arg6[%c0_15, %c0_16] : memref<64x128xf32, #tpu.memory_space<vmem>>, vector<64x128xf32>
      tpu.vector_store %arg6[%c0_15, %c0_16], %17 {strides = array<i32>} : memref<64x128xf32, #tpu.memory_space<vmem>>, vector<64x128xf32>,
    } else {
    }
    return
  }
  func.func @transform_0(%arg0: i32, %arg1: i32, %arg2: i32) -> (i32, i32) {
    %c0_i32 = arith.constant 0 : i32
    return %arg0, %arg2 : i32, i32
  }
  func.func @transform_1(%arg0: i32, %arg1: i32, %arg2: i32) -> (i32, i32) {
    %c0_i32 = arith.constant 0 : i32
    return %arg2, %arg1 : i32, i32
  }
  func.func @transform_2(%arg0: i32, %arg1: i32, %arg2: i32) -> (i32, i32) {
    %c0_i32 = arith.constant 0 : i32
    %c0_i32_0 = arith.constant 0 : i32
    return %c0_i32, %arg1 : i32, i32
  }
  func.func @transform_3(%arg0: i32, %arg1: i32, %arg2: i32) -> (i32, i32) {
    %c0_i32 = arith.constant 0 : i32
    return %arg0, %arg1 : i32, i32
  }
}

module attributes {stable_mosaic.version = 11 : i64} {
  func.func @_fused_matmul_kernel(%arg0: i32, %arg1: i32, %arg2: i32, %arg3: memref<32x128xbf16, #tpu.memory_space<vmem>>, %arg4: memref<128x128xbf16, #tpu.memory_space<vmem>>, %arg5: memref<1x128xf32, #tpu.memory_space<vmem>>, %arg6: memref<32x128xf32, #tpu.memory_space<vmem>>, %arg7: memref<32x128xf32, #tpu.memory_space<vmem>>) attributes {dimension_semantics = [#tpu.dimension_semantics<parallel>, #tpu.dimension_semantics<parallel>, #tpu.dimension_semantics<arbitrary>], iteration_bounds = array<i64: 1, 1, 5>, scalar_prefetch = 0 : i64, scratch_operands = 1 : i64, tpu.core_type = #tpu.core_type<tc>, window_params = [{transform_indices = @transform_0, window_bounds = array<i64: 32, 128>}, {transform_indices = @transform_1, window_bounds = array<i64: 128, 128>}, {transform_indices = @transform_2, window_bounds = array<i64: 1, 128>}, {transform_indices = @transform_3, window_bounds = array<i64: 32, 128>}]} {
    %c0_i32 = arith.constant 0 : i32
    %0 = arith.cmpi eq, %arg2, %c0_i32 : i32
    %1 = arith.extui %0 : i1 to i32
    %c0_i32_0 = arith.constant 0 : i32
    %2 = arith.cmpi ne, %1, %c0_i32_0 : i32
    scf.if %2 {
      %cst_9 = arith.constant 0.000000e+00 : f32
      %12 = vector.broadcast %cst_9 : f32 to vector<32x128xf32>
      %c0_10 = arith.constant 0 : index
      %c0_11 = arith.constant 0 : index
      %13 = vector.load %arg7[%c0_10, %c0_11] : memref<32x128xf32, #tpu.memory_space<vmem>>, vector<32x128xf32>
      tpu.vector_store %arg7[%c0_10, %c0_11], %12 {strides = array<i32>} : memref<32x128xf32, #tpu.memory_space<vmem>>, vector<32x128xf32>,
    } else {
    }
    %c0 = arith.constant 0 : index
    %c0_1 = arith.constant 0 : index
    %3 = vector.load %arg7[%c0, %c0_1] : memref<32x128xf32, #tpu.memory_space<vmem>>, vector<32x128xf32>
    %c0_2 = arith.constant 0 : index
    %c0_3 = arith.constant 0 : index
    %4 = vector.load %arg3[%c0_2, %c0_3] : memref<32x128xbf16, #tpu.memory_space<vmem>>, vector<32x128xbf16>
    %c0_4 = arith.constant 0 : index
    %c0_5 = arith.constant 0 : index
    %5 = vector.load %arg4[%c0_4, %c0_5] : memref<128x128xbf16, #tpu.memory_space<vmem>>, vector<128x128xbf16>
    %cst = arith.constant dense<0.000000e+00> : vector<32x128xf32>
    %6 = tpu.matmul %4, %5, %cst {dimension_numbers = #tpu.dot_dimension_numbers<[1], [0], [0], [1], [0, 0, 1, 1], [], []>} : vector<32x128xbf16>, vector<128x128xbf16>, vector<32x128xf32> -> vector<32x128xf32>
    %7 = arith.addf %3, %6 : vector<32x128xf32>
    %c0_6 = arith.constant 0 : index
    %c0_7 = arith.constant 0 : index
    %8 = vector.load %arg7[%c0_6, %c0_7] : memref<32x128xf32, #tpu.memory_space<vmem>>, vector<32x128xf32>
    tpu.vector_store %arg7[%c0_6, %c0_7], %7 {strides = array<i32>} : memref<32x128xf32, #tpu.memory_space<vmem>>, vector<32x128xf32>,
    %c4_i32 = arith.constant 4 : i32
    %9 = arith.cmpi eq, %arg2, %c4_i32 : i32
    %10 = arith.extui %9 : i1 to i32
    %c0_i32_8 = arith.constant 0 : i32
    %11 = arith.cmpi ne, %10, %c0_i32_8 : i32
    scf.if %11 {
      %c0_9 = arith.constant 0 : index
      %c0_10 = arith.constant 0 : index
      %12 = vector.load %arg7[%c0_9, %c0_10] : memref<32x128xf32, #tpu.memory_space<vmem>>, vector<32x128xf32>
      %c0_11 = arith.constant 0 : index
      %c0_12 = arith.constant 0 : index
      %13 = vector.load %arg5[%c0_11, %c0_12] : memref<1x128xf32, #tpu.memory_space<vmem>>, vector<1x128xf32>
      %14 = vector.broadcast %13 : vector<1x128xf32> to vector<32x128xf32>
      %15 = arith.addf %12, %14 : vector<32x128xf32>
      %cst_13 = arith.constant 0.000000e+00 : f32
      %16 = vector.broadcast %cst_13 : f32 to vector<32x128xf32>
      %17 = arith.maximumf %15, %16 : vector<32x128xf32>
      %c0_14 = arith.constant 0 : index
      %c0_15 = arith.constant 0 : index
      %18 = vector.load %arg6[%c0_14, %c0_15] : memref<32x128xf32, #tpu.memory_space<vmem>>, vector<32x128xf32>
      tpu.vector_store %arg6[%c0_14, %c0_15], %17 {strides = array<i32>} : memref<32x128xf32, #tpu.memory_space<vmem>>, vector<32x128xf32>,
    } else {
    }
    return
  }
  func.func @transform_0(%arg0: i32, %arg1: i32, %arg2: i32) -> (i32, i32) {
    %c0_i32 = arith.constant 0 : i32
    return %arg0, %arg2 : i32, i32
  }
  func.func @transform_1(%arg0: i32, %arg1: i32, %arg2: i32) -> (i32, i32) {
    %c0_i32 = arith.constant 0 : i32
    return %arg2, %arg1 : i32, i32
  }
  func.func @transform_2(%arg0: i32, %arg1: i32, %arg2: i32) -> (i32, i32) {
    %c0_i32 = arith.constant 0 : i32
    %c0_i32_0 = arith.constant 0 : i32
    return %c0_i32, %arg1 : i32, i32
  }
  func.func @transform_3(%arg0: i32, %arg1: i32, %arg2: i32) -> (i32, i32) {
    %c0_i32 = arith.constant 0 : i32
    return %arg0, %arg1 : i32, i32
  }
}

module attributes {stable_mosaic.version = 11 : i64} {
  func.func @_fused_matmul_kernel(%arg0: i32, %arg1: i32, %arg2: i32, %arg3: memref<32x256xbf16, #tpu.memory_space<vmem>>, %arg4: memref<256x128xbf16, #tpu.memory_space<vmem>>, %arg5: memref<1x128xf32, #tpu.memory_space<vmem>>, %arg6: memref<32x128xf32, #tpu.memory_space<vmem>>, %arg7: memref<32x128xf32, #tpu.memory_space<vmem>>) attributes {dimension_semantics = [#tpu.dimension_semantics<parallel>, #tpu.dimension_semantics<parallel>, #tpu.dimension_semantics<arbitrary>], iteration_bounds = array<i64: 1, 1, 5>, scalar_prefetch = 0 : i64, scratch_operands = 1 : i64, tpu.core_type = #tpu.core_type<tc>, window_params = [{transform_indices = @transform_0, window_bounds = array<i64: 32, 256>}, {transform_indices = @transform_1, window_bounds = array<i64: 256, 128>}, {transform_indices = @transform_2, window_bounds = array<i64: 1, 128>}, {transform_indices = @transform_3, window_bounds = array<i64: 32, 128>}]} {
    %c0_i32 = arith.constant 0 : i32
    %0 = arith.cmpi eq, %arg2, %c0_i32 : i32
    %1 = arith.extui %0 : i1 to i32
    %c0_i32_0 = arith.constant 0 : i32
    %2 = arith.cmpi ne, %1, %c0_i32_0 : i32
    scf.if %2 {
      %cst_9 = arith.constant 0.000000e+00 : f32
      %12 = vector.broadcast %cst_9 : f32 to vector<32x128xf32>
      %c0_10 = arith.constant 0 : index
      %c0_11 = arith.constant 0 : index
      %13 = vector.load %arg7[%c0_10, %c0_11] : memref<32x128xf32, #tpu.memory_space<vmem>>, vector<32x128xf32>
      tpu.vector_store %arg7[%c0_10, %c0_11], %12 {strides = array<i32>} : memref<32x128xf32, #tpu.memory_space<vmem>>, vector<32x128xf32>,
    } else {
    }
    %c0 = arith.constant 0 : index
    %c0_1 = arith.constant 0 : index
    %3 = vector.load %arg7[%c0, %c0_1] : memref<32x128xf32, #tpu.memory_space<vmem>>, vector<32x128xf32>
    %c0_2 = arith.constant 0 : index
    %c0_3 = arith.constant 0 : index
    %4 = vector.load %arg3[%c0_2, %c0_3] : memref<32x256xbf16, #tpu.memory_space<vmem>>, vector<32x256xbf16>
    %c0_4 = arith.constant 0 : index
    %c0_5 = arith.constant 0 : index
    %5 = vector.load %arg4[%c0_4, %c0_5] : memref<256x128xbf16, #tpu.memory_space<vmem>>, vector<256x128xbf16>
    %cst = arith.constant dense<0.000000e+00> : vector<32x128xf32>
    %6 = tpu.matmul %4, %5, %cst {dimension_numbers = #tpu.dot_dimension_numbers<[1], [0], [0], [1], [0, 0, 1, 1], [], []>} : vector<32x256xbf16>, vector<256x128xbf16>, vector<32x128xf32> -> vector<32x128xf32>
    %7 = arith.addf %3, %6 : vector<32x128xf32>
    %c0_6 = arith.constant 0 : index
    %c0_7 = arith.constant 0 : index
    %8 = vector.load %arg7[%c0_6, %c0_7] : memref<32x128xf32, #tpu.memory_space<vmem>>, vector<32x128xf32>
    tpu.vector_store %arg7[%c0_6, %c0_7], %7 {strides = array<i32>} : memref<32x128xf32, #tpu.memory_space<vmem>>, vector<32x128xf32>,
    %c4_i32 = arith.constant 4 : i32
    %9 = arith.cmpi eq, %arg2, %c4_i32 : i32
    %10 = arith.extui %9 : i1 to i32
    %c0_i32_8 = arith.constant 0 : i32
    %11 = arith.cmpi ne, %10, %c0_i32_8 : i32
    scf.if %11 {
      %c0_9 = arith.constant 0 : index
      %c0_10 = arith.constant 0 : index
      %12 = vector.load %arg7[%c0_9, %c0_10] : memref<32x128xf32, #tpu.memory_space<vmem>>, vector<32x128xf32>
      %c0_11 = arith.constant 0 : index
      %c0_12 = arith.constant 0 : index
      %13 = vector.load %arg5[%c0_11, %c0_12] : memref<1x128xf32, #tpu.memory_space<vmem>>, vector<1x128xf32>
      %14 = vector.broadcast %13 : vector<1x128xf32> to vector<32x128xf32>
      %15 = arith.addf %12, %14 : vector<32x128xf32>
      %cst_13 = arith.constant 0.000000e+00 : f32
      %16 = vector.broadcast %cst_13 : f32 to vector<32x128xf32>
      %17 = arith.maximumf %15, %16 : vector<32x128xf32>
      %c0_14 = arith.constant 0 : index
      %c0_15 = arith.constant 0 : index
      %18 = vector.load %arg6[%c0_14, %c0_15] : memref<32x128xf32, #tpu.memory_space<vmem>>, vector<32x128xf32>
      tpu.vector_store %arg6[%c0_14, %c0_15], %17 {strides = array<i32>} : memref<32x128xf32, #tpu.memory_space<vmem>>, vector<32x128xf32>,
    } else {
    }
    return
  }
  func.func @transform_0(%arg0: i32, %arg1: i32, %arg2: i32) -> (i32, i32) {
    %c0_i32 = arith.constant 0 : i32
    return %arg0, %arg2 : i32, i32
  }
  func.func @transform_1(%arg0: i32, %arg1: i32, %arg2: i32) -> (i32, i32) {
    %c0_i32 = arith.constant 0 : i32
    return %arg2, %arg1 : i32, i32
  }
  func.func @transform_2(%arg0: i32, %arg1: i32, %arg2: i32) -> (i32, i32) {
    %c0_i32 = arith.constant 0 : i32
    %c0_i32_0 = arith.constant 0 : i32
    return %c0_i32, %arg1 : i32, i32
  }
  func.func @transform_3(%arg0: i32, %arg1: i32, %arg2: i32) -> (i32, i32) {
    %c0_i32 = arith.constant 0 : i32
    return %arg0, %arg1 : i32, i32
  }
}

module attributes {stable_mosaic.version = 11 : i64} {
  func.func @_fused_matmul_kernel(%arg0: i32, %arg1: i32, %arg2: i32, %arg3: memref<16x384xbf16, #tpu.memory_space<vmem>>, %arg4: memref<384x256xbf16, #tpu.memory_space<vmem>>, %arg5: memref<1x256xf32, #tpu.memory_space<vmem>>, %arg6: memref<16x256xf32, #tpu.memory_space<vmem>>, %arg7: memref<16x256xf32, #tpu.memory_space<vmem>>) attributes {dimension_semantics = [#tpu.dimension_semantics<parallel>, #tpu.dimension_semantics<parallel>, #tpu.dimension_semantics<arbitrary>], iteration_bounds = array<i64: 1, 1, 3>, scalar_prefetch = 0 : i64, scratch_operands = 1 : i64, tpu.core_type = #tpu.core_type<tc>, window_params = [{transform_indices = @transform_0, window_bounds = array<i64: 16, 384>}, {transform_indices = @transform_1, window_bounds = array<i64: 384, 256>}, {transform_indices = @transform_2, window_bounds = array<i64: 1, 256>}, {transform_indices = @transform_3, window_bounds = array<i64: 16, 256>}]} {
    %c0_i32 = arith.constant 0 : i32
    %0 = arith.cmpi eq, %arg2, %c0_i32 : i32
    %1 = arith.extui %0 : i1 to i32
    %c0_i32_0 = arith.constant 0 : i32
    %2 = arith.cmpi ne, %1, %c0_i32_0 : i32
    scf.if %2 {
      %cst_9 = arith.constant 0.000000e+00 : f32
      %12 = vector.broadcast %cst_9 : f32 to vector<16x256xf32>
      %c0_10 = arith.constant 0 : index
      %c0_11 = arith.constant 0 : index
      %13 = vector.load %arg7[%c0_10, %c0_11] : memref<16x256xf32, #tpu.memory_space<vmem>>, vector<16x256xf32>
      tpu.vector_store %arg7[%c0_10, %c0_11], %12 {strides = array<i32>} : memref<16x256xf32, #tpu.memory_space<vmem>>, vector<16x256xf32>,
    } else {
    }
    %c0 = arith.constant 0 : index
    %c0_1 = arith.constant 0 : index
    %3 = vector.load %arg7[%c0, %c0_1] : memref<16x256xf32, #tpu.memory_space<vmem>>, vector<16x256xf32>
    %c0_2 = arith.constant 0 : index
    %c0_3 = arith.constant 0 : index
    %4 = vector.load %arg3[%c0_2, %c0_3] : memref<16x384xbf16, #tpu.memory_space<vmem>>, vector<16x384xbf16>
    %c0_4 = arith.constant 0 : index
    %c0_5 = arith.constant 0 : index
    %5 = vector.load %arg4[%c0_4, %c0_5] : memref<384x256xbf16, #tpu.memory_space<vmem>>, vector<384x256xbf16>
    %cst = arith.constant dense<0.000000e+00> : vector<16x256xf32>
    %6 = tpu.matmul %4, %5, %cst {dimension_numbers = #tpu.dot_dimension_numbers<[1], [0], [0], [1], [0, 0, 1, 1], [], []>} : vector<16x384xbf16>, vector<384x256xbf16>, vector<16x256xf32> -> vector<16x256xf32>
    %7 = arith.addf %3, %6 : vector<16x256xf32>
    %c0_6 = arith.constant 0 : index
    %c0_7 = arith.constant 0 : index
    %8 = vector.load %arg7[%c0_6, %c0_7] : memref<16x256xf32, #tpu.memory_space<vmem>>, vector<16x256xf32>
    tpu.vector_store %arg7[%c0_6, %c0_7], %7 {strides = array<i32>} : memref<16x256xf32, #tpu.memory_space<vmem>>, vector<16x256xf32>,
    %c2_i32 = arith.constant 2 : i32
    %9 = arith.cmpi eq, %arg2, %c2_i32 : i32
    %10 = arith.extui %9 : i1 to i32
    %c0_i32_8 = arith.constant 0 : i32
    %11 = arith.cmpi ne, %10, %c0_i32_8 : i32
    scf.if %11 {
      %c0_9 = arith.constant 0 : index
      %c0_10 = arith.constant 0 : index
      %12 = vector.load %arg7[%c0_9, %c0_10] : memref<16x256xf32, #tpu.memory_space<vmem>>, vector<16x256xf32>
      %c0_11 = arith.constant 0 : index
      %c0_12 = arith.constant 0 : index
      %13 = vector.load %arg5[%c0_11, %c0_12] : memref<1x256xf32, #tpu.memory_space<vmem>>, vector<1x256xf32>
      %14 = vector.broadcast %13 : vector<1x256xf32> to vector<16x256xf32>
      %15 = arith.addf %12, %14 : vector<16x256xf32>
      %cst_13 = arith.constant 0.000000e+00 : f32
      %16 = vector.broadcast %cst_13 : f32 to vector<16x256xf32>
      %17 = arith.maximumf %15, %16 : vector<16x256xf32>
      %c0_14 = arith.constant 0 : index
      %c0_15 = arith.constant 0 : index
      %18 = vector.load %arg6[%c0_14, %c0_15] : memref<16x256xf32, #tpu.memory_space<vmem>>, vector<16x256xf32>
      tpu.vector_store %arg6[%c0_14, %c0_15], %17 {strides = array<i32>} : memref<16x256xf32, #tpu.memory_space<vmem>>, vector<16x256xf32>,
    } else {
    }
    return
  }
  func.func @transform_0(%arg0: i32, %arg1: i32, %arg2: i32) -> (i32, i32) {
    %c0_i32 = arith.constant 0 : i32
    return %arg0, %arg2 : i32, i32
  }
  func.func @transform_1(%arg0: i32, %arg1: i32, %arg2: i32) -> (i32, i32) {
    %c0_i32 = arith.constant 0 : i32
    return %arg2, %arg1 : i32, i32
  }
  func.func @transform_2(%arg0: i32, %arg1: i32, %arg2: i32) -> (i32, i32) {
    %c0_i32 = arith.constant 0 : i32
    %c0_i32_0 = arith.constant 0 : i32
    return %c0_i32, %arg1 : i32, i32
  }
  func.func @transform_3(%arg0: i32, %arg1: i32, %arg2: i32) -> (i32, i32) {
    %c0_i32 = arith.constant 0 : i32
    return %arg0, %arg1 : i32, i32
  }
}

module attributes {stable_mosaic.version = 11 : i64} {
  func.func @_fused_matmul_kernel(%arg0: i32, %arg1: i32, %arg2: i32, %arg3: memref<16x128xbf16, #tpu.memory_space<vmem>>, %arg4: memref<128x256xbf16, #tpu.memory_space<vmem>>, %arg5: memref<1x256xf32, #tpu.memory_space<vmem>>, %arg6: memref<16x256xf32, #tpu.memory_space<vmem>>, %arg7: memref<16x256xf32, #tpu.memory_space<vmem>>) attributes {dimension_semantics = [#tpu.dimension_semantics<parallel>, #tpu.dimension_semantics<parallel>, #tpu.dimension_semantics<arbitrary>], iteration_bounds = array<i64: 1, 1, 19>, scalar_prefetch = 0 : i64, scratch_operands = 1 : i64, tpu.core_type = #tpu.core_type<tc>, window_params = [{transform_indices = @transform_0, window_bounds = array<i64: 16, 128>}, {transform_indices = @transform_1, window_bounds = array<i64: 128, 256>}, {transform_indices = @transform_2, window_bounds = array<i64: 1, 256>}, {transform_indices = @transform_3, window_bounds = array<i64: 16, 256>}]} {
    %c0_i32 = arith.constant 0 : i32
    %0 = arith.cmpi eq, %arg2, %c0_i32 : i32
    %1 = arith.extui %0 : i1 to i32
    %c0_i32_0 = arith.constant 0 : i32
    %2 = arith.cmpi ne, %1, %c0_i32_0 : i32
    scf.if %2 {
      %cst_9 = arith.constant 0.000000e+00 : f32
      %12 = vector.broadcast %cst_9 : f32 to vector<16x256xf32>
      %c0_10 = arith.constant 0 : index
      %c0_11 = arith.constant 0 : index
      %13 = vector.load %arg7[%c0_10, %c0_11] : memref<16x256xf32, #tpu.memory_space<vmem>>, vector<16x256xf32>
      tpu.vector_store %arg7[%c0_10, %c0_11], %12 {strides = array<i32>} : memref<16x256xf32, #tpu.memory_space<vmem>>, vector<16x256xf32>,
    } else {
    }
    %c0 = arith.constant 0 : index
    %c0_1 = arith.constant 0 : index
    %3 = vector.load %arg7[%c0, %c0_1] : memref<16x256xf32, #tpu.memory_space<vmem>>, vector<16x256xf32>
    %c0_2 = arith.constant 0 : index
    %c0_3 = arith.constant 0 : index
    %4 = vector.load %arg3[%c0_2, %c0_3] : memref<16x128xbf16, #tpu.memory_space<vmem>>, vector<16x128xbf16>
    %c0_4 = arith.constant 0 : index
    %c0_5 = arith.constant 0 : index
    %5 = vector.load %arg4[%c0_4, %c0_5] : memref<128x256xbf16, #tpu.memory_space<vmem>>, vector<128x256xbf16>
    %cst = arith.constant dense<0.000000e+00> : vector<16x256xf32>
    %6 = tpu.matmul %4, %5, %cst {dimension_numbers = #tpu.dot_dimension_numbers<[1], [0], [0], [1], [0, 0, 1, 1], [], []>} : vector<16x128xbf16>, vector<128x256xbf16>, vector<16x256xf32> -> vector<16x256xf32>
    %7 = arith.addf %3, %6 : vector<16x256xf32>
    %c0_6 = arith.constant 0 : index
    %c0_7 = arith.constant 0 : index
    %8 = vector.load %arg7[%c0_6, %c0_7] : memref<16x256xf32, #tpu.memory_space<vmem>>, vector<16x256xf32>
    tpu.vector_store %arg7[%c0_6, %c0_7], %7 {strides = array<i32>} : memref<16x256xf32, #tpu.memory_space<vmem>>, vector<16x256xf32>,
    %c18_i32 = arith.constant 18 : i32
    %9 = arith.cmpi eq, %arg2, %c18_i32 : i32
    %10 = arith.extui %9 : i1 to i32
    %c0_i32_8 = arith.constant 0 : i32
    %11 = arith.cmpi ne, %10, %c0_i32_8 : i32
    scf.if %11 {
      %c0_9 = arith.constant 0 : index
      %c0_10 = arith.constant 0 : index
      %12 = vector.load %arg7[%c0_9, %c0_10] : memref<16x256xf32, #tpu.memory_space<vmem>>, vector<16x256xf32>
      %c0_11 = arith.constant 0 : index
      %c0_12 = arith.constant 0 : index
      %13 = vector.load %arg5[%c0_11, %c0_12] : memref<1x256xf32, #tpu.memory_space<vmem>>, vector<1x256xf32>
      %14 = vector.broadcast %13 : vector<1x256xf32> to vector<16x256xf32>
      %15 = arith.addf %12, %14 : vector<16x256xf32>
      %cst_13 = arith.constant 0.000000e+00 : f32
      %16 = vector.broadcast %cst_13 : f32 to vector<16x256xf32>
      %17 = arith.maximumf %15, %16 : vector<16x256xf32>
      %c0_14 = arith.constant 0 : index
      %c0_15 = arith.constant 0 : index
      %18 = vector.load %arg6[%c0_14, %c0_15] : memref<16x256xf32, #tpu.memory_space<vmem>>, vector<16x256xf32>
      tpu.vector_store %arg6[%c0_14, %c0_15], %17 {strides = array<i32>} : memref<16x256xf32, #tpu.memory_space<vmem>>, vector<16x256xf32>,
    } else {
    }
    return
  }
  func.func @transform_0(%arg0: i32, %arg1: i32, %arg2: i32) -> (i32, i32) {
    %c0_i32 = arith.constant 0 : i32
    return %arg0, %arg2 : i32, i32
  }
  func.func @transform_1(%arg0: i32, %arg1: i32, %arg2: i32) -> (i32, i32) {
    %c0_i32 = arith.constant 0 : i32
    return %arg2, %arg1 : i32, i32
  }
  func.func @transform_2(%arg0: i32, %arg1: i32, %arg2: i32) -> (i32, i32) {
    %c0_i32 = arith.constant 0 : i32
    %c0_i32_0 = arith.constant 0 : i32
    return %c0_i32, %arg1 : i32, i32
  }
  func.func @transform_3(%arg0: i32, %arg1: i32, %arg2: i32) -> (i32, i32) {
    %c0_i32 = arith.constant 0 : i32
    return %arg0, %arg1 : i32, i32
  }
}

module attributes {stable_mosaic.version = 11 : i64} {
  func.func @_fused_matmul_kernel(%arg0: i32, %arg1: i32, %arg2: i32, %arg3: memref<16x384xbf16, #tpu.memory_space<vmem>>, %arg4: memref<384x256xbf16, #tpu.memory_space<vmem>>, %arg5: memref<1x256xf32, #tpu.memory_space<vmem>>, %arg6: memref<16x256xf32, #tpu.memory_space<vmem>>, %arg7: memref<16x256xf32, #tpu.memory_space<vmem>>) attributes {dimension_semantics = [#tpu.dimension_semantics<parallel>, #tpu.dimension_semantics<parallel>, #tpu.dimension_semantics<arbitrary>], iteration_bounds = array<i64: 1, 2, 6>, scalar_prefetch = 0 : i64, scratch_operands = 1 : i64, tpu.core_type = #tpu.core_type<tc>, window_params = [{transform_indices = @transform_0, window_bounds = array<i64: 16, 384>}, {transform_indices = @transform_1, window_bounds = array<i64: 384, 256>}, {transform_indices = @transform_2, window_bounds = array<i64: 1, 256>}, {transform_indices = @transform_3, window_bounds = array<i64: 16, 256>}]} {
    %c0_i32 = arith.constant 0 : i32
    %0 = arith.cmpi eq, %arg2, %c0_i32 : i32
    %1 = arith.extui %0 : i1 to i32
    %c0_i32_0 = arith.constant 0 : i32
    %2 = arith.cmpi ne, %1, %c0_i32_0 : i32
    scf.if %2 {
      %cst_9 = arith.constant 0.000000e+00 : f32
      %12 = vector.broadcast %cst_9 : f32 to vector<16x256xf32>
      %c0_10 = arith.constant 0 : index
      %c0_11 = arith.constant 0 : index
      %13 = vector.load %arg7[%c0_10, %c0_11] : memref<16x256xf32, #tpu.memory_space<vmem>>, vector<16x256xf32>
      tpu.vector_store %arg7[%c0_10, %c0_11], %12 {strides = array<i32>} : memref<16x256xf32, #tpu.memory_space<vmem>>, vector<16x256xf32>,
    } else {
    }
    %c0 = arith.constant 0 : index
    %c0_1 = arith.constant 0 : index
    %3 = vector.load %arg7[%c0, %c0_1] : memref<16x256xf32, #tpu.memory_space<vmem>>, vector<16x256xf32>
    %c0_2 = arith.constant 0 : index
    %c0_3 = arith.constant 0 : index
    %4 = vector.load %arg3[%c0_2, %c0_3] : memref<16x384xbf16, #tpu.memory_space<vmem>>, vector<16x384xbf16>
    %c0_4 = arith.constant 0 : index
    %c0_5 = arith.constant 0 : index
    %5 = vector.load %arg4[%c0_4, %c0_5] : memref<384x256xbf16, #tpu.memory_space<vmem>>, vector<384x256xbf16>
    %cst = arith.constant dense<0.000000e+00> : vector<16x256xf32>
    %6 = tpu.matmul %4, %5, %cst {dimension_numbers = #tpu.dot_dimension_numbers<[1], [0], [0], [1], [0, 0, 1, 1], [], []>} : vector<16x384xbf16>, vector<384x256xbf16>, vector<16x256xf32> -> vector<16x256xf32>
    %7 = arith.addf %3, %6 : vector<16x256xf32>
    %c0_6 = arith.constant 0 : index
    %c0_7 = arith.constant 0 : index
    %8 = vector.load %arg7[%c0_6, %c0_7] : memref<16x256xf32, #tpu.memory_space<vmem>>, vector<16x256xf32>
    tpu.vector_store %arg7[%c0_6, %c0_7], %7 {strides = array<i32>} : memref<16x256xf32, #tpu.memory_space<vmem>>, vector<16x256xf32>,
    %c5_i32 = arith.constant 5 : i32
    %9 = arith.cmpi eq, %arg2, %c5_i32 : i32
    %10 = arith.extui %9 : i1 to i32
    %c0_i32_8 = arith.constant 0 : i32
    %11 = arith.cmpi ne, %10, %c0_i32_8 : i32
    scf.if %11 {
      %c0_9 = arith.constant 0 : index
      %c0_10 = arith.constant 0 : index
      %12 = vector.load %arg7[%c0_9, %c0_10] : memref<16x256xf32, #tpu.memory_space<vmem>>, vector<16x256xf32>
      %c0_11 = arith.constant 0 : index
      %c0_12 = arith.constant 0 : index
      %13 = vector.load %arg5[%c0_11, %c0_12] : memref<1x256xf32, #tpu.memory_space<vmem>>, vector<1x256xf32>
      %14 = vector.broadcast %13 : vector<1x256xf32> to vector<16x256xf32>
      %15 = arith.addf %12, %14 : vector<16x256xf32>
      %cst_13 = arith.constant 0.000000e+00 : f32
      %16 = vector.broadcast %cst_13 : f32 to vector<16x256xf32>
      %17 = arith.maximumf %15, %16 : vector<16x256xf32>
      %c0_14 = arith.constant 0 : index
      %c0_15 = arith.constant 0 : index
      %18 = vector.load %arg6[%c0_14, %c0_15] : memref<16x256xf32, #tpu.memory_space<vmem>>, vector<16x256xf32>
      tpu.vector_store %arg6[%c0_14, %c0_15], %17 {strides = array<i32>} : memref<16x256xf32, #tpu.memory_space<vmem>>, vector<16x256xf32>,
    } else {
    }
    return
  }
  func.func @transform_0(%arg0: i32, %arg1: i32, %arg2: i32) -> (i32, i32) {
    %c0_i32 = arith.constant 0 : i32
    return %arg0, %arg2 : i32, i32
  }
  func.func @transform_1(%arg0: i32, %arg1: i32, %arg2: i32) -> (i32, i32) {
    %c0_i32 = arith.constant 0 : i32
    return %arg2, %arg1 : i32, i32
  }
  func.func @transform_2(%arg0: i32, %arg1: i32, %arg2: i32) -> (i32, i32) {
    %c0_i32 = arith.constant 0 : i32
    %c0_i32_0 = arith.constant 0 : i32
    return %c0_i32, %arg1 : i32, i32
  }
  func.func @transform_3(%arg0: i32, %arg1: i32, %arg2: i32) -> (i32, i32) {
    %c0_i32 = arith.constant 0 : i32
    return %arg0, %arg1 : i32, i32
  }
}

module attributes {stable_mosaic.version = 11 : i64} {
  func.func @_fused_matmul_kernel(%arg0: i32, %arg1: i32, %arg2: i32, %arg3: memref<16x256xbf16, #tpu.memory_space<vmem>>, %arg4: memref<256x256xbf16, #tpu.memory_space<vmem>>, %arg5: memref<1x256xf32, #tpu.memory_space<vmem>>, %arg6: memref<16x256xf32, #tpu.memory_space<vmem>>, %arg7: memref<16x256xf32, #tpu.memory_space<vmem>>) attributes {dimension_semantics = [#tpu.dimension_semantics<parallel>, #tpu.dimension_semantics<parallel>, #tpu.dimension_semantics<arbitrary>], iteration_bounds = array<i64: 1, 2, 19>, scalar_prefetch = 0 : i64, scratch_operands = 1 : i64, tpu.core_type = #tpu.core_type<tc>, window_params = [{transform_indices = @transform_0, window_bounds = array<i64: 16, 256>}, {transform_indices = @transform_1, window_bounds = array<i64: 256, 256>}, {transform_indices = @transform_2, window_bounds = array<i64: 1, 256>}, {transform_indices = @transform_3, window_bounds = array<i64: 16, 256>}]} {
    %c0_i32 = arith.constant 0 : i32
    %0 = arith.cmpi eq, %arg2, %c0_i32 : i32
    %1 = arith.extui %0 : i1 to i32
    %c0_i32_0 = arith.constant 0 : i32
    %2 = arith.cmpi ne, %1, %c0_i32_0 : i32
    scf.if %2 {
      %cst_9 = arith.constant 0.000000e+00 : f32
      %12 = vector.broadcast %cst_9 : f32 to vector<16x256xf32>
      %c0_10 = arith.constant 0 : index
      %c0_11 = arith.constant 0 : index
      %13 = vector.load %arg7[%c0_10, %c0_11] : memref<16x256xf32, #tpu.memory_space<vmem>>, vector<16x256xf32>
      tpu.vector_store %arg7[%c0_10, %c0_11], %12 {strides = array<i32>} : memref<16x256xf32, #tpu.memory_space<vmem>>, vector<16x256xf32>,
    } else {
    }
    %c0 = arith.constant 0 : index
    %c0_1 = arith.constant 0 : index
    %3 = vector.load %arg7[%c0, %c0_1] : memref<16x256xf32, #tpu.memory_space<vmem>>, vector<16x256xf32>
    %c0_2 = arith.constant 0 : index
    %c0_3 = arith.constant 0 : index
    %4 = vector.load %arg3[%c0_2, %c0_3] : memref<16x256xbf16, #tpu.memory_space<vmem>>, vector<16x256xbf16>
    %c0_4 = arith.constant 0 : index
    %c0_5 = arith.constant 0 : index
    %5 = vector.load %arg4[%c0_4, %c0_5] : memref<256x256xbf16, #tpu.memory_space<vmem>>, vector<256x256xbf16>
    %cst = arith.constant dense<0.000000e+00> : vector<16x256xf32>
    %6 = tpu.matmul %4, %5, %cst {dimension_numbers = #tpu.dot_dimension_numbers<[1], [0], [0], [1], [0, 0, 1, 1], [], []>} : vector<16x256xbf16>, vector<256x256xbf16>, vector<16x256xf32> -> vector<16x256xf32>
    %7 = arith.addf %3, %6 : vector<16x256xf32>
    %c0_6 = arith.constant 0 : index
    %c0_7 = arith.constant 0 : index
    %8 = vector.load %arg7[%c0_6, %c0_7] : memref<16x256xf32, #tpu.memory_space<vmem>>, vector<16x256xf32>
    tpu.vector_store %arg7[%c0_6, %c0_7], %7 {strides = array<i32>} : memref<16x256xf32, #tpu.memory_space<vmem>>, vector<16x256xf32>,
    %c18_i32 = arith.constant 18 : i32
    %9 = arith.cmpi eq, %arg2, %c18_i32 : i32
    %10 = arith.extui %9 : i1 to i32
    %c0_i32_8 = arith.constant 0 : i32
    %11 = arith.cmpi ne, %10, %c0_i32_8 : i32
    scf.if %11 {
      %c0_9 = arith.constant 0 : index
      %c0_10 = arith.constant 0 : index
      %12 = vector.load %arg7[%c0_9, %c0_10] : memref<16x256xf32, #tpu.memory_space<vmem>>, vector<16x256xf32>
      %c0_11 = arith.constant 0 : index
      %c0_12 = arith.constant 0 : index
      %13 = vector.load %arg5[%c0_11, %c0_12] : memref<1x256xf32, #tpu.memory_space<vmem>>, vector<1x256xf32>
      %14 = vector.broadcast %13 : vector<1x256xf32> to vector<16x256xf32>
      %15 = arith.addf %12, %14 : vector<16x256xf32>
      %cst_13 = arith.constant 0.000000e+00 : f32
      %16 = vector.broadcast %cst_13 : f32 to vector<16x256xf32>
      %17 = arith.maximumf %15, %16 : vector<16x256xf32>
      %c0_14 = arith.constant 0 : index
      %c0_15 = arith.constant 0 : index
      %18 = vector.load %arg6[%c0_14, %c0_15] : memref<16x256xf32, #tpu.memory_space<vmem>>, vector<16x256xf32>
      tpu.vector_store %arg6[%c0_14, %c0_15], %17 {strides = array<i32>} : memref<16x256xf32, #tpu.memory_space<vmem>>, vector<16x256xf32>,
    } else {
    }
    return
  }
  func.func @transform_0(%arg0: i32, %arg1: i32, %arg2: i32) -> (i32, i32) {
    %c0_i32 = arith.constant 0 : i32
    return %arg0, %arg2 : i32, i32
  }
  func.func @transform_1(%arg0: i32, %arg1: i32, %arg2: i32) -> (i32, i32) {
    %c0_i32 = arith.constant 0 : i32
    return %arg2, %arg1 : i32, i32
  }
  func.func @transform_2(%arg0: i32, %arg1: i32, %arg2: i32) -> (i32, i32) {
    %c0_i32 = arith.constant 0 : i32
    %c0_i32_0 = arith.constant 0 : i32
    return %c0_i32, %arg1 : i32, i32
  }
  func.func @transform_3(%arg0: i32, %arg1: i32, %arg2: i32) -> (i32, i32) {
    %c0_i32 = arith.constant 0 : i32
    return %arg0, %arg1 : i32, i32
  }
}

module attributes {stable_mosaic.version = 11 : i64} {
  func.func @_fused_matmul_kernel(%arg0: i32, %arg1: i32, %arg2: i32, %arg3: memref<16x512xbf16, #tpu.memory_space<vmem>>, %arg4: memref<512x256xbf16, #tpu.memory_space<vmem>>, %arg5: memref<1x256xf32, #tpu.memory_space<vmem>>, %arg6: memref<16x256xf32, #tpu.memory_space<vmem>>, %arg7: memref<16x256xf32, #tpu.memory_space<vmem>>) attributes {dimension_semantics = [#tpu.dimension_semantics<parallel>, #tpu.dimension_semantics<parallel>, #tpu.dimension_semantics<arbitrary>], iteration_bounds = array<i64: 1, 2, 9>, scalar_prefetch = 0 : i64, scratch_operands = 1 : i64, tpu.core_type = #tpu.core_type<tc>, window_params = [{transform_indices = @transform_0, window_bounds = array<i64: 16, 512>}, {transform_indices = @transform_1, window_bounds = array<i64: 512, 256>}, {transform_indices = @transform_2, window_bounds = array<i64: 1, 256>}, {transform_indices = @transform_3, window_bounds = array<i64: 16, 256>}]} {
    %c0_i32 = arith.constant 0 : i32
    %0 = arith.cmpi eq, %arg2, %c0_i32 : i32
    %1 = arith.extui %0 : i1 to i32
    %c0_i32_0 = arith.constant 0 : i32
    %2 = arith.cmpi ne, %1, %c0_i32_0 : i32
    scf.if %2 {
      %cst_9 = arith.constant 0.000000e+00 : f32
      %12 = vector.broadcast %cst_9 : f32 to vector<16x256xf32>
      %c0_10 = arith.constant 0 : index
      %c0_11 = arith.constant 0 : index
      %13 = vector.load %arg7[%c0_10, %c0_11] : memref<16x256xf32, #tpu.memory_space<vmem>>, vector<16x256xf32>
      tpu.vector_store %arg7[%c0_10, %c0_11], %12 {strides = array<i32>} : memref<16x256xf32, #tpu.memory_space<vmem>>, vector<16x256xf32>,
    } else {
    }
    %c0 = arith.constant 0 : index
    %c0_1 = arith.constant 0 : index
    %3 = vector.load %arg7[%c0, %c0_1] : memref<16x256xf32, #tpu.memory_space<vmem>>, vector<16x256xf32>
    %c0_2 = arith.constant 0 : index
    %c0_3 = arith.constant 0 : index
    %4 = vector.load %arg3[%c0_2, %c0_3] : memref<16x512xbf16, #tpu.memory_space<vmem>>, vector<16x512xbf16>
    %c0_4 = arith.constant 0 : index
    %c0_5 = arith.constant 0 : index
    %5 = vector.load %arg4[%c0_4, %c0_5] : memref<512x256xbf16, #tpu.memory_space<vmem>>, vector<512x256xbf16>
    %cst = arith.constant dense<0.000000e+00> : vector<16x256xf32>
    %6 = tpu.matmul %4, %5, %cst {dimension_numbers = #tpu.dot_dimension_numbers<[1], [0], [0], [1], [0, 0, 1, 1], [], []>} : vector<16x512xbf16>, vector<512x256xbf16>, vector<16x256xf32> -> vector<16x256xf32>
    %7 = arith.addf %3, %6 : vector<16x256xf32>
    %c0_6 = arith.constant 0 : index
    %c0_7 = arith.constant 0 : index
    %8 = vector.load %arg7[%c0_6, %c0_7] : memref<16x256xf32, #tpu.memory_space<vmem>>, vector<16x256xf32>
    tpu.vector_store %arg7[%c0_6, %c0_7], %7 {strides = array<i32>} : memref<16x256xf32, #tpu.memory_space<vmem>>, vector<16x256xf32>,
    %c8_i32 = arith.constant 8 : i32
    %9 = arith.cmpi eq, %arg2, %c8_i32 : i32
    %10 = arith.extui %9 : i1 to i32
    %c0_i32_8 = arith.constant 0 : i32
    %11 = arith.cmpi ne, %10, %c0_i32_8 : i32
    scf.if %11 {
      %c0_9 = arith.constant 0 : index
      %c0_10 = arith.constant 0 : index
      %12 = vector.load %arg7[%c0_9, %c0_10] : memref<16x256xf32, #tpu.memory_space<vmem>>, vector<16x256xf32>
      %c0_11 = arith.constant 0 : index
      %c0_12 = arith.constant 0 : index
      %13 = vector.load %arg5[%c0_11, %c0_12] : memref<1x256xf32, #tpu.memory_space<vmem>>, vector<1x256xf32>
      %14 = vector.broadcast %13 : vector<1x256xf32> to vector<16x256xf32>
      %15 = arith.addf %12, %14 : vector<16x256xf32>
      %cst_13 = arith.constant 0.000000e+00 : f32
      %16 = vector.broadcast %cst_13 : f32 to vector<16x256xf32>
      %17 = arith.maximumf %15, %16 : vector<16x256xf32>
      %c0_14 = arith.constant 0 : index
      %c0_15 = arith.constant 0 : index
      %18 = vector.load %arg6[%c0_14, %c0_15] : memref<16x256xf32, #tpu.memory_space<vmem>>, vector<16x256xf32>
      tpu.vector_store %arg6[%c0_14, %c0_15], %17 {strides = array<i32>} : memref<16x256xf32, #tpu.memory_space<vmem>>, vector<16x256xf32>,
    } else {
    }
    return
  }
  func.func @transform_0(%arg0: i32, %arg1: i32, %arg2: i32) -> (i32, i32) {
    %c0_i32 = arith.constant 0 : i32
    return %arg0, %arg2 : i32, i32
  }
  func.func @transform_1(%arg0: i32, %arg1: i32, %arg2: i32) -> (i32, i32) {
    %c0_i32 = arith.constant 0 : i32
    return %arg2, %arg1 : i32, i32
  }
  func.func @transform_2(%arg0: i32, %arg1: i32, %arg2: i32) -> (i32, i32) {
    %c0_i32 = arith.constant 0 : i32
    %c0_i32_0 = arith.constant 0 : i32
    return %c0_i32, %arg1 : i32, i32
  }
  func.func @transform_3(%arg0: i32, %arg1: i32, %arg2: i32) -> (i32, i32) {
    %c0_i32 = arith.constant 0 : i32
    return %arg0, %arg1 : i32, i32
  }
}

module attributes {stable_mosaic.version = 11 : i64} {
  func.func @_fused_matmul_kernel(%arg0: i32, %arg1: i32, %arg2: i32, %arg3: memref<16x512xbf16, #tpu.memory_space<vmem>>, %arg4: memref<512x256xbf16, #tpu.memory_space<vmem>>, %arg5: memref<1x256xf32, #tpu.memory_space<vmem>>, %arg6: memref<16x256xf32, #tpu.memory_space<vmem>>, %arg7: memref<16x256xf32, #tpu.memory_space<vmem>>, %arg8: memref<16x256xf32, #tpu.memory_space<vmem>>) attributes {dimension_semantics = [#tpu.dimension_semantics<parallel>, #tpu.dimension_semantics<parallel>, #tpu.dimension_semantics<arbitrary>], iteration_bounds = array<i64: 1, 2, 9>, scalar_prefetch = 0 : i64, scratch_operands = 1 : i64, tpu.core_type = #tpu.core_type<tc>, window_params = [{transform_indices = @transform_0, window_bounds = array<i64: 16, 512>}, {transform_indices = @transform_1, window_bounds = array<i64: 512, 256>}, {transform_indices = @transform_2, window_bounds = array<i64: 1, 256>}, {transform_indices = @transform_3, window_bounds = array<i64: 16, 256>}, {transform_indices = @transform_4, window_bounds = array<i64: 16, 256>}]} {
    %c0_i32 = arith.constant 0 : i32
    %0 = arith.cmpi eq, %arg2, %c0_i32 : i32
    %1 = arith.extui %0 : i1 to i32
    %c0_i32_0 = arith.constant 0 : i32
    %2 = arith.cmpi ne, %1, %c0_i32_0 : i32
    scf.if %2 {
      %cst_9 = arith.constant 0.000000e+00 : f32
      %12 = vector.broadcast %cst_9 : f32 to vector<16x256xf32>
      %c0_10 = arith.constant 0 : index
      %c0_11 = arith.constant 0 : index
      %13 = vector.load %arg8[%c0_10, %c0_11] : memref<16x256xf32, #tpu.memory_space<vmem>>, vector<16x256xf32>
      tpu.vector_store %arg8[%c0_10, %c0_11], %12 {strides = array<i32>} : memref<16x256xf32, #tpu.memory_space<vmem>>, vector<16x256xf32>,
    } else {
    }
    %c0 = arith.constant 0 : index
    %c0_1 = arith.constant 0 : index
    %3 = vector.load %arg8[%c0, %c0_1] : memref<16x256xf32, #tpu.memory_space<vmem>>, vector<16x256xf32>
    %c0_2 = arith.constant 0 : index
    %c0_3 = arith.constant 0 : index
    %4 = vector.load %arg3[%c0_2, %c0_3] : memref<16x512xbf16, #tpu.memory_space<vmem>>, vector<16x512xbf16>
    %c0_4 = arith.constant 0 : index
    %c0_5 = arith.constant 0 : index
    %5 = vector.load %arg4[%c0_4, %c0_5] : memref<512x256xbf16, #tpu.memory_space<vmem>>, vector<512x256xbf16>
    %cst = arith.constant dense<0.000000e+00> : vector<16x256xf32>
    %6 = tpu.matmul %4, %5, %cst {dimension_numbers = #tpu.dot_dimension_numbers<[1], [0], [0], [1], [0, 0, 1, 1], [], []>} : vector<16x512xbf16>, vector<512x256xbf16>, vector<16x256xf32> -> vector<16x256xf32>
    %7 = arith.addf %3, %6 : vector<16x256xf32>
    %c0_6 = arith.constant 0 : index
    %c0_7 = arith.constant 0 : index
    %8 = vector.load %arg8[%c0_6, %c0_7] : memref<16x256xf32, #tpu.memory_space<vmem>>, vector<16x256xf32>
    tpu.vector_store %arg8[%c0_6, %c0_7], %7 {strides = array<i32>} : memref<16x256xf32, #tpu.memory_space<vmem>>, vector<16x256xf32>,
    %c8_i32 = arith.constant 8 : i32
    %9 = arith.cmpi eq, %arg2, %c8_i32 : i32
    %10 = arith.extui %9 : i1 to i32
    %c0_i32_8 = arith.constant 0 : i32
    %11 = arith.cmpi ne, %10, %c0_i32_8 : i32
    scf.if %11 {
      %c0_9 = arith.constant 0 : index
      %c0_10 = arith.constant 0 : index
      %12 = vector.load %arg8[%c0_9, %c0_10] : memref<16x256xf32, #tpu.memory_space<vmem>>, vector<16x256xf32>
      %c0_11 = arith.constant 0 : index
      %c0_12 = arith.constant 0 : index
      %13 = vector.load %arg5[%c0_11, %c0_12] : memref<1x256xf32, #tpu.memory_space<vmem>>, vector<1x256xf32>
      %14 = vector.broadcast %13 : vector<1x256xf32> to vector<16x256xf32>
      %15 = arith.addf %12, %14 : vector<16x256xf32>
      %c0_13 = arith.constant 0 : index
      %c0_14 = arith.constant 0 : index
      %16 = vector.load %arg6[%c0_13, %c0_14] : memref<16x256xf32, #tpu.memory_space<vmem>>, vector<16x256xf32>
      %17 = arith.addf %15, %16 : vector<16x256xf32>
      %cst_15 = arith.constant 0.000000e+00 : f32
      %18 = vector.broadcast %cst_15 : f32 to vector<16x256xf32>
      %19 = arith.maximumf %17, %18 : vector<16x256xf32>
      %c0_16 = arith.constant 0 : index
      %c0_17 = arith.constant 0 : index
      %20 = vector.load %arg7[%c0_16, %c0_17] : memref<16x256xf32, #tpu.memory_space<vmem>>, vector<16x256xf32>
      tpu.vector_store %arg7[%c0_16, %c0_17], %19 {strides = array<i32>} : memref<16x256xf32, #tpu.memory_space<vmem>>, vector<16x256xf32>,
    } else {
    }
    return
  }
  func.func @transform_0(%arg0: i32, %arg1: i32, %arg2: i32) -> (i32, i32) {
    %c0_i32 = arith.constant 0 : i32
    return %arg0, %arg2 : i32, i32
  }
  func.func @transform_1(%arg0: i32, %arg1: i32, %arg2: i32) -> (i32, i32) {
    %c0_i32 = arith.constant 0 : i32
    return %arg2, %arg1 : i32, i32
  }
  func.func @transform_2(%arg0: i32, %arg1: i32, %arg2: i32) -> (i32, i32) {
    %c0_i32 = arith.constant 0 : i32
    %c0_i32_0 = arith.constant 0 : i32
    return %c0_i32, %arg1 : i32, i32
  }
  func.func @transform_3(%arg0: i32, %arg1: i32, %arg2: i32) -> (i32, i32) {
    %c0_i32 = arith.constant 0 : i32
    return %arg0, %arg1 : i32, i32
  }
  func.func @transform_4(%arg0: i32, %arg1: i32, %arg2: i32) -> (i32, i32) {
    %c0_i32 = arith.constant 0 : i32
    return %arg0, %arg1 : i32, i32
  }
}

module attributes {stable_mosaic.version = 11 : i64} {
  func.func @_fused_matmul_kernel(%arg0: i32, %arg1: i32, %arg2: i32, %arg3: memref<16x512xbf16, #tpu.memory_space<vmem>>, %arg4: memref<512x128xbf16, #tpu.memory_space<vmem>>, %arg5: memref<1x128xf32, #tpu.memory_space<vmem>>, %arg6: memref<16x128xf32, #tpu.memory_space<vmem>>, %arg7: memref<16x128xf32, #tpu.memory_space<vmem>>) attributes {dimension_semantics = [#tpu.dimension_semantics<parallel>, #tpu.dimension_semantics<parallel>, #tpu.dimension_semantics<arbitrary>], iteration_bounds = array<i64: 1, 1, 1>, scalar_prefetch = 0 : i64, scratch_operands = 1 : i64, tpu.core_type = #tpu.core_type<tc>, window_params = [{transform_indices = @transform_0, window_bounds = array<i64: 16, 512>}, {transform_indices = @transform_1, window_bounds = array<i64: 512, 128>}, {transform_indices = @transform_2, window_bounds = array<i64: 1, 128>}, {transform_indices = @transform_3, window_bounds = array<i64: 16, 128>}]} {
    %c0_i32 = arith.constant 0 : i32
    %0 = arith.cmpi eq, %arg2, %c0_i32 : i32
    %1 = arith.extui %0 : i1 to i32
    %c0_i32_0 = arith.constant 0 : i32
    %2 = arith.cmpi ne, %1, %c0_i32_0 : i32
    scf.if %2 {
      %cst_10 = arith.constant 0.000000e+00 : f32
      %12 = vector.broadcast %cst_10 : f32 to vector<16x128xf32>
      %c0_11 = arith.constant 0 : index
      %c0_12 = arith.constant 0 : index
      %13 = vector.load %arg7[%c0_11, %c0_12] : memref<16x128xf32, #tpu.memory_space<vmem>>, vector<16x128xf32>
      tpu.vector_store %arg7[%c0_11, %c0_12], %12 {strides = array<i32>} : memref<16x128xf32, #tpu.memory_space<vmem>>, vector<16x128xf32>,
    } else {
    }
    %c0 = arith.constant 0 : index
    %c0_1 = arith.constant 0 : index
    %3 = vector.load %arg7[%c0, %c0_1] : memref<16x128xf32, #tpu.memory_space<vmem>>, vector<16x128xf32>
    %c0_2 = arith.constant 0 : index
    %c0_3 = arith.constant 0 : index
    %4 = vector.load %arg3[%c0_2, %c0_3] : memref<16x512xbf16, #tpu.memory_space<vmem>>, vector<16x512xbf16>
    %c0_4 = arith.constant 0 : index
    %c0_5 = arith.constant 0 : index
    %5 = vector.load %arg4[%c0_4, %c0_5] : memref<512x128xbf16, #tpu.memory_space<vmem>>, vector<512x128xbf16>
    %cst = arith.constant dense<0.000000e+00> : vector<16x128xf32>
    %6 = tpu.matmul %4, %5, %cst {dimension_numbers = #tpu.dot_dimension_numbers<[1], [0], [0], [1], [0, 0, 1, 1], [], []>} : vector<16x512xbf16>, vector<512x128xbf16>, vector<16x128xf32> -> vector<16x128xf32>
    %7 = arith.addf %3, %6 : vector<16x128xf32>
    %c0_6 = arith.constant 0 : index
    %c0_7 = arith.constant 0 : index
    %8 = vector.load %arg7[%c0_6, %c0_7] : memref<16x128xf32, #tpu.memory_space<vmem>>, vector<16x128xf32>
    tpu.vector_store %arg7[%c0_6, %c0_7], %7 {strides = array<i32>} : memref<16x128xf32, #tpu.memory_space<vmem>>, vector<16x128xf32>,
    %c0_i32_8 = arith.constant 0 : i32
    %9 = arith.cmpi eq, %arg2, %c0_i32_8 : i32
    %10 = arith.extui %9 : i1 to i32
    %c0_i32_9 = arith.constant 0 : i32
    %11 = arith.cmpi ne, %10, %c0_i32_9 : i32
    scf.if %11 {
      %c0_10 = arith.constant 0 : index
      %c0_11 = arith.constant 0 : index
      %12 = vector.load %arg7[%c0_10, %c0_11] : memref<16x128xf32, #tpu.memory_space<vmem>>, vector<16x128xf32>
      %c0_12 = arith.constant 0 : index
      %c0_13 = arith.constant 0 : index
      %13 = vector.load %arg5[%c0_12, %c0_13] : memref<1x128xf32, #tpu.memory_space<vmem>>, vector<1x128xf32>
      %14 = vector.broadcast %13 : vector<1x128xf32> to vector<16x128xf32>
      %15 = arith.addf %12, %14 : vector<16x128xf32>
      %c0_14 = arith.constant 0 : index
      %c0_15 = arith.constant 0 : index
      %16 = vector.load %arg6[%c0_14, %c0_15] : memref<16x128xf32, #tpu.memory_space<vmem>>, vector<16x128xf32>
      tpu.vector_store %arg6[%c0_14, %c0_15], %15 {strides = array<i32>} : memref<16x128xf32, #tpu.memory_space<vmem>>, vector<16x128xf32>,
    } else {
    }
    return
  }
  func.func @transform_0(%arg0: i32, %arg1: i32, %arg2: i32) -> (i32, i32) {
    %c0_i32 = arith.constant 0 : i32
    return %arg0, %arg2 : i32, i32
  }
  func.func @transform_1(%arg0: i32, %arg1: i32, %arg2: i32) -> (i32, i32) {
    %c0_i32 = arith.constant 0 : i32
    return %arg2, %arg1 : i32, i32
  }
  func.func @transform_2(%arg0: i32, %arg1: i32, %arg2: i32) -> (i32, i32) {
    %c0_i32 = arith.constant 0 : i32
    %c0_i32_0 = arith.constant 0 : i32
    return %c0_i32, %arg1 : i32, i32
  }
  func.func @transform_3(%arg0: i32, %arg1: i32, %arg2: i32) -> (i32, i32) {
    %c0_i32 = arith.constant 0 : i32
    return %arg0, %arg1 : i32, i32
  }
}

</mosaic_0001>

<bundles_post_ra>
// kernel: resnet18_forward.10
= control target key start
LH: loop header
LB: loop body
LE: loop exit
PB: predicated region body
PF: predicated region fallthrough
CT: control target
= control target key end

     0   :  { %s386_s1 = inlined_call_operand.vmem [shape: bf16[128,128], index: 1, kind: input, shape index: {}]   ;;  %s387_s2 = inlined_call_operand.vmem [shape: f32[1,128], index: 2, kind: input, shape index: {}]   ;;  %s388_s0 = inlined_call_operand.vmem [shape: bf16[64,128], index: 0, kind: input, shape index: {}]   ;;  %s389_s3 = inlined_call_operand.vmem [shape: f32[64,128], index: 3, kind: output, shape index: {}]  }
   0x1   :  { %v277_v0 = vld [vmem:[%s386_s1 + $0x38] sm:$0xff]  ;;  %v276_v1 = vld [vmem:[%s386_s1 + $0x30] sm:$0xff]  ;;  %v275_v2 = vld [vmem:[%s386_s1 + $0x28] sm:$0xff] }
   0x2   :  { %130 = vmatpush.bf16.msra.mxu0 %v277_v0  ;;  %278 = vmatpush.bf16.msra.mxu1 %v277_v0  ;;  %v274_v3 = vld [vmem:[%s386_s1 + $0x20] sm:$0xff]  ;;  %v273_v4 = vld [vmem:[%s386_s1 + $0x18] sm:$0xff]  ;;  %v272_v5 = vld [vmem:[%s386_s1 + $0x10] sm:$0xff] }
   0x3   :  { %279 = vmatpush.bf16.msra.mxu2 %v277_v0  ;;  %280 = vmatpush.bf16.msra.mxu3 %v277_v0  ;;  %v271_v6 = vld [vmem:[%s386_s1 + $0x8] sm:$0xff]  ;;  %v270_v7 = vld [vmem:[%s386_s1] sm:$0xff]  ;;  %v268_v10 = vld [vmem:[%s388_s0 + $0x10] sm:$0xff] }
   0x4   :  { %v266_v8 = vld [vmem:[%s388_s0] sm:$0xff]  ;;  %v267_v9 = vld [vmem:[%s388_s0 + $0x8] sm:$0xff]  ;;  %v269_v11 = vld [vmem:[%s388_s0 + $0x18] sm:$0xff] }
   0x5   :  { %v302_v12 = vld [vmem:[%s387_s2] ss:$0 sm:$0xff] }
   0x6   :  { %131 = vmatpush.bf16.msra.mxu0 %v276_v1  ;;  %281 = vmatpush.bf16.msra.mxu1 %v276_v1 }
   0x7   :  { %282 = vmatpush.bf16.msra.mxu2 %v276_v1  ;;  %283 = vmatpush.bf16.msra.mxu3 %v276_v1 }
   0xa   :  { %132 = vmatpush.bf16.msra.mxu0 %v275_v2  ;;  %284 = vmatpush.bf16.msra.mxu1 %v275_v2 }
   0xb   :  { %285 = vmatpush.bf16.msra.mxu2 %v275_v2  ;;  %286 = vmatpush.bf16.msra.mxu3 %v275_v2 }
   0xe   :  { %133 = vmatpush.bf16.msra.mxu0 %v274_v3  ;;  %287 = vmatpush.bf16.msra.mxu1 %v274_v3 }
   0xf   :  { %288 = vmatpush.bf16.msra.mxu2 %v274_v3  ;;  %289 = vmatpush.bf16.msra.mxu3 %v274_v3 }
  0x12   :  { %134 = vmatpush.bf16.msra.mxu0 %v273_v4  ;;  %290 = vmatpush.bf16.msra.mxu1 %v273_v4 }
  0x13   :  { %291 = vmatpush.bf16.msra.mxu2 %v273_v4  ;;  %292 = vmatpush.bf16.msra.mxu3 %v273_v4 }
  0x16   :  { %135 = vmatpush.bf16.msra.mxu0 %v272_v5  ;;  %293 = vmatpush.bf16.msra.mxu1 %v272_v5 }
  0x17   :  { %294 = vmatpush.bf16.msra.mxu2 %v272_v5  ;;  %295 = vmatpush.bf16.msra.mxu3 %v272_v5 }
  0x1a   :  { %136 = vmatpush.bf16.msra.mxu0 %v271_v6  ;;  %296 = vmatpush.bf16.msra.mxu1 %v271_v6 }
  0x1b   :  { %297 = vmatpush.bf16.msra.mxu2 %v271_v6  ;;  %298 = vmatpush.bf16.msra.mxu3 %v271_v6 }
  0x1e   :  { %137 = vmatpush.bf16.msra.mxu0 %v270_v7  ;;  %299 = vmatpush.bf16.msra.mxu1 %v270_v7 }
  0x1f   :  { %300 = vmatpush.bf16.msra.mxu2 %v270_v7  ;;  %301 = vmatpush.bf16.msra.mxu3 %v270_v7 }
  0x21   :  { %138 = vmatmul.bf16.vlgmr.msra.gmra.mxu0 %v266_v8  ;;  %143 = vmatmul.bf16.vlgmr.msra.gmra.mxu1 %v267_v9 }
  0x22   :  { %148 = vmatmul.bf16.vlgmr.msra.gmra.mxu2 %v268_v10  ;;  %153 = vmatmul.bf16.vlgmr.msra.gmra.mxu3 %v269_v11 }
  0x9e   :  { %v139_v13 = vpop.f32.mrf.mxu0  ;;  %v144_v14 = vpop.f32.mrf.mxu1 }
  0x9f   :  { %v190_v15 = vadd.f32 %v302_v12, %v139_v13  ;;  %v192_v16 = vadd.f32 %v302_v12, %v144_v14 }
  0xa1   :  { %v198_v17 = vmax.f32 %v190_v15, 0.0  ;;  %v200_v18 = vmax.f32 %v192_v16, 0.0 }
  0xa3   :  { %206 = vst [vmem:[%s389_s3] sm:$0xff] %v198_v17 }
  0xa4   :  { %208 = vst [vmem:[%s389_s3 + $0x10] sm:$0xff] %v200_v18 }
  0xa5   :  { %v149_v19 = vpop.f32.mrf.mxu2  ;;  %v154_v20 = vpop.f32.mrf.mxu3 }
  0xa6   :  { %v194_v21 = vadd.f32 %v302_v12, %v149_v19  ;;  %v196_v22 = vadd.f32 %v302_v12, %v154_v20  ;;  %v141_v23 = vpop.f32.mrf.mxu0  ;;  %v146_v24 = vpop.f32.mrf.mxu1 }
  0xa7   :  { %v191_v25 = vadd.f32 %v302_v12, %v141_v23  ;;  %v193_v26 = vadd.f32 %v302_v12, %v146_v24 }
  0xa8   :  { %v202_v27 = vmax.f32 %v194_v21, 0.0  ;;  %v204_v28 = vmax.f32 %v196_v22, 0.0 }
  0xa9   :  { %v199_v29 = vmax.f32 %v191_v25, 0.0  ;;  %v201_v30 = vmax.f32 %v193_v26, 0.0 }
  0xaa   :  { %210 = vst [vmem:[%s389_s3 + $0x20] sm:$0xff] %v202_v27 }
  0xab   :  { %212 = vst [vmem:[%s389_s3 + $0x30] sm:$0xff] %v204_v28 }
  0xac   :  { %207 = vst [vmem:[%s389_s3 + $0x8] sm:$0xff] %v199_v29 }
  0xad   :  { %209 = vst [vmem:[%s389_s3 + $0x18] sm:$0xff] %v201_v30  ;;  %v151_v31 = vpop.f32.mrf.mxu2  ;;  %v156_v32 = vpop.f32.mrf.mxu3 }
  0xae   :  { %v195_v33 = vadd.f32 %v302_v12, %v151_v31  ;;  %v197_v34 = vadd.f32 %v302_v12, %v156_v32 }
  0xb0   :  { %v203_v35 = vmax.f32 %v195_v33, 0.0  ;;  %v205_v36 = vmax.f32 %v197_v34, 0.0 }
  0xb2   :  { %211 = vst [vmem:[%s389_s3 + $0x28] sm:$0xff] %v203_v35 }
  0xb3   :  { %213 = vst [vmem:[%s389_s3 + $0x38] sm:$0xff] %v205_v36 }

// kernel: resnet18_forward.11
= control target key start
LH: loop header
LB: loop body
LE: loop exit
PB: predicated region body
PF: predicated region fallthrough
CT: control target
= control target key end

     0   :  { %s737_s12 = smov 0   ;;  %s739_s13 = smov 0   ;;  %s836_s0 = inlined_call_operand.vmem [shape: bf16[32,640], index: 0, kind: input, shape index: {}]   ;;  %s837_s1 = inlined_call_operand.vmem [shape: bf16[640,128], index: 1, kind: input, shape index: {}]   ;;  %s838_s2 = inlined_call_operand.vmem [shape: f32[1,128], index: 2, kind: input, shape index: {}]   ;;  %s839_s3 = inlined_call_operand.vmem [shape: f32[32,128], index: 3, kind: output, shape index: {}]  }
   0x1   :  { %s741_s14 = smov 0   ;;  %s743_s15 = smov 0  }
   0x2   :  { %s745_s16 = smov 0  }
   0x3 LB: > { %s25_s17 = sadd.s32 1, %s710_s15  ;;  %p48_p1 = scmp.ne.s32.totalorder %s702_s13, %s698_s12  ;;  %s714_s16 = sphi %s745_s16, %s13_s16   ;;  %s710_s15 = sphi %s743_s15, %s843_s15   ;;  %s706_s14 = sphi %s741_s14, %s842_s14   ;;  %s702_s13 = sphi %s739_s13, %s841_s13   ;;  %s698_s12 = sphi %s737_s12, %s840_s12  }
   0x4   : > { %p26_p0 = scmp.ge.s32.totalorder %s25_s17, 5  ;;  %p49_p2 = scmp.eq.s32.totalorder %s714_s16, 0 }
   0x5   : > { %s41_s19 = sadd.s32 1, %s702_s13  ;;  %p563_p5 = scmp.ge.s32.totalorder %s714_s16, 5 }
   0x6   : > { %s845_s17 = smov (%p26_p0, %s25_s17), 0  ;;  %p50_p3 = por %p49_p2, %p48_p1 }
   0x7   : > { %s37_s18 = ssub.s32 %s710_s15, %s845_s17  ;;  %162 = sbr.rel (%p563_p5) target bundleno = 20 (0x14), region = 20 }
   0x8   : > { %p39_p4 = scmp.eq.s32.totalorder %s37_s18, 0 }
   0xa   : > { %s772_s20 = scalar_select %p39_p4, %s702_s13, %s41_s19  }
   0xc   : > { %165 = sbr.rel (!%p50_p3) target bundleno = 20 (0x14), region = 24  ;;  %s167_s21 = sand.u32 (%p50_p3), 1, %s702_s13  }
   0xd   : > { %s565_s22 = sshll.u32 (%p50_p3), %s710_s15, 2  ;;  %s564_s23 = sshll.u32 (%p50_p3), %s167_s21, 4 }
   0xe   : > { %s174_s26 = scalar_lea.vmem (%p50_p3), %s836_s0, %s565_s22  ;;  %s169_s27 = scalar_lea.vmem (%p50_p3), [#allocation3], %s564_s23 }
   0xf   : > { %v191_v0 = vld [vmem:[%s174_s26] sm:$0xf] (%p50_p3)  ;;  %v193_v1 = vld [vmem:[%s174_s26 + $0x14] sm:$0xf] (%p50_p3)  ;;  %v195_v2 = vld [vmem:[%s174_s26 + $0x28] sm:$0xf] (%p50_p3) }
  0x10   : > { %192 = vst [vmem:[%s169_s27] sm:$0xf] (%p50_p3), %v191_v0  ;;  %v197_v3 = vld [vmem:[%s174_s26 + $0x3c] sm:$0xf] (%p50_p3) }
  0x11   : > { %194 = vst [vmem:[%s169_s27 + $0x4] sm:$0xf] %v193_v1 }
  0x12   : > { %196 = vst [vmem:[%s169_s27 + $0x8] sm:$0xf] %v195_v2 }
  0x13   : > { %198 = vst [vmem:[%s169_s27 + $0xc] sm:$0xf] %v197_v3 }
  0x14 PF: > { %p566_p6 = scmp.ge.s32.totalorder %s714_s16, 1  ;;  %p241_p7 = scmp.lt.s32.totalorder %s714_s16, 6 }
  0x16   : > { %p242_p8 = pnand %p566_p6, %p241_p7 }
  0x17   : > { %s248_s28 = sand.u32 (!%p242_p8), 1, %s698_s12   ;;  %s568_s29 = sshll.u32 (!%p242_p8), %s706_s14, 4 }
  0x18   : > { %245 = sbr.rel (%p242_p8) target bundleno = 221 (0xdd), region = 69  ;;  %s784_s30 = sshll.u32 (!%p242_p8), %s248_s28, 4 }
  0x19   : > { %p287_p9 = scmp.lt.s32.totalorder (!%p242_p8), %s568_s29, 79  ;;  %s250_s8 = scalar_lea.vmem (!%p242_p8), [#allocation3], %s784_s30 }
  0x1a   : > { %p570_p10 = scmp.ne.s32.totalorder (!%p242_p8), %s706_s14, 0 }
  0x1d   : > { %s847_s29 = smov (!%p287_p9, %s568_s29), 79  ;;  %310 = sbr.rel (%p570_p10) target bundleno = 39 (0x27), region = 77 }
  0x1e   : > { %s569_s4 = sshll.u32 %s847_s29, 2 }
  0x1f   : > { %s789_s7 = scalar_lea.vmem %s837_s1, %s569_s4 }
  0x22   : > { %v716_v4 = vmov 0.0  }
  0x23   : > { %311 = vst [vmem:[#allocation2 + $0x10] sm:$0xff] %v716_v4 }
  0x24   : > { %312 = vst [vmem:[#allocation2] sm:$0xff] %v716_v4 }
  0x25   : > { %313 = vst [vmem:[#allocation2 + $0x18] sm:$0xff] %v716_v4 }
  0x26   : > { %314 = vst [vmem:[#allocation2 + $0x8] sm:$0xff] %v716_v4 }
  0x27 PF: > { %v625_v5 = vld [vmem:[%s789_s7 + $0x38] sm:$0xff]  ;;  %v624_v6 = vld [vmem:[%s789_s7 + $0x30] sm:$0xff]  ;;  %v623_v7 = vld [vmem:[%s789_s7 + $0x28] sm:$0xff]  ;;  %p611_p11 = scmp.ne.s32.totalorder %s706_s14, 4 }
  0x28   : > { %399 = vmatpush.bf16.msra.mxu0 %v625_v5  ;;  %626 = vmatpush.bf16.msra.mxu1 %v625_v5  ;;  %v622_v8 = vld [vmem:[%s789_s7 + $0x20] sm:$0xff]  ;;  %v621_v9 = vld [vmem:[%s789_s7 + $0x18] sm:$0xff]  ;;  %v620_v10 = vld [vmem:[%s789_s7 + $0x10] sm:$0xff] }
  0x29   : > { %v619_v11 = vld [vmem:[%s789_s7 + $0x8] sm:$0xff]  ;;  %v618_v12 = vld [vmem:[%s789_s7] sm:$0xff] }
  0x2a   : > { %v616_v13 = vld [vmem:[%s250_s8] sm:$0xff]  ;;  %v617_v14 = vld [vmem:[%s250_s8 + $0x8] sm:$0xff] }
  0x2b   : > { %v315_v15 = vld [vmem:[#allocation2 + $0x10] sm:$0xff]  ;;  %v316_v21 = vld [vmem:[#allocation2] sm:$0xff] }
  0x2c   : > { %400 = vmatpush.bf16.msra.mxu0 %v624_v6  ;;  %627 = vmatpush.bf16.msra.mxu1 %v624_v6  ;;  %v317_v16 = vld [vmem:[#allocation2 + $0x18] sm:$0xff] }
  0x2d   : > { %v318_v22 = vld [vmem:[#allocation2 + $0x8] sm:$0xff] }
  0x30   : > { %401 = vmatpush.bf16.msra.mxu0 %v623_v7  ;;  %628 = vmatpush.bf16.msra.mxu1 %v623_v7 }
  0x34   : > { %402 = vmatpush.bf16.msra.mxu0 %v622_v8  ;;  %629 = vmatpush.bf16.msra.mxu1 %v622_v8 }
  0x38   : > { %403 = vmatpush.bf16.msra.mxu0 %v621_v9  ;;  %630 = vmatpush.bf16.msra.mxu1 %v621_v9 }
  0x3c   : > { %404 = vmatpush.bf16.msra.mxu0 %v620_v10  ;;  %631 = vmatpush.bf16.msra.mxu1 %v620_v10 }
  0x40   : > { %405 = vmatpush.bf16.msra.mxu0 %v619_v11  ;;  %632 = vmatpush.bf16.msra.mxu1 %v619_v11 }
  0x44   : > { %406 = vmatpush.bf16.msra.mxu0 %v618_v12  ;;  %633 = vmatpush.bf16.msra.mxu1 %v618_v12 }
  0x47   : > { %407 = vmatmul.bf16.vlgmr.msra.gmra.mxu0 %v616_v13  ;;  %412 = vmatmul.bf16.vlgmr.msra.gmra.mxu1 %v617_v14 }
  0xc4   : > { %v408_v17 = vpop.f32.mrf.mxu0  ;;  %v413_v18 = vpop.f32.mrf.mxu1 }
  0xc5   : > { %v418_v19 = vadd.f32 %v408_v17, %v315_v15  ;;  %v420_v20 = vadd.f32 %v413_v18, %v317_v16 }
  0xc7   : > { %422 = vst [vmem:[#allocation2 + $0x10] sm:$0xff] %v418_v19 }
  0xc8   : > { %424 = vst [vmem:[#allocation2 + $0x18] sm:$0xff] %v420_v20 }
  0xcc   : > { %v410_v23 = vpop.f32.mrf.mxu0  ;;  %v415_v24 = vpop.f32.mrf.mxu1  ;;  %429 = sbr.rel (%p611_p11) target bundleno = 221 (0xdd), region = 81 }
  0xcd   : > { %v419_v25 = vadd.f32 %v410_v23, %v316_v21  ;;  %v421_v26 = vadd.f32 %v415_v24, %v318_v22 }
  0xcf   : > { %423 = vst [vmem:[#allocation2] sm:$0xff] %v419_v25 }
  0xd0   : > { %425 = vst [vmem:[#allocation2 + $0x8] sm:$0xff] %v421_v26 }
  0xd1   : > { %v430_v27 = vld [vmem:[#allocation2 + $0x10] sm:$0xff]  ;;  %v675_v28 = vld [vmem:[%s838_s2] ss:$0 sm:$0xff]  ;;  %v432_v30 = vld [vmem:[#allocation2 + $0x18] sm:$0xff] }
  0xd2   : > { %v438_v32 = vadd.f32 %v675_v28, %v430_v27  ;;  %v440_v34 = vadd.f32 %v675_v28, %v432_v30 }
  0xd4   : > { %v442_v36 = vmax.f32 %v438_v32, 0.0  ;;  %v444_v38 = vmax.f32 %v440_v34, 0.0 }
  0xd6   : > { %v431_v29 = vld [vmem:[#allocation2] sm:$0xff]  ;;  %446 = vst [vmem:[%s839_s3] sm:$0xff] %v442_v36 }
  0xd7   : > { %v433_v31 = vld [vmem:[#allocation2 + $0x8] sm:$0xff]  ;;  %v439_v33 = vadd.f32 %v675_v28, %v431_v29  ;;  %448 = vst [vmem:[%s839_s3 + $0x10] sm:$0xff] %v444_v38 }
  0xd8   : > { %v441_v35 = vadd.f32 %v675_v28, %v433_v31 }
  0xd9   : > { %v443_v37 = vmax.f32 %v439_v33, 0.0 }
  0xda   : > { %v445_v39 = vmax.f32 %v441_v35, 0.0 }
  0xdb   : > { %447 = vst [vmem:[%s839_s3 + $0x8] sm:$0xff] %v443_v37 }
  0xdc   : > { %449 = vst [vmem:[%s839_s3 + $0x18] sm:$0xff] %v445_v39 }
  0xdd PF: > { %s13_s16 = sadd.s32 1, %s714_s16   ;;  %s840_s12 = smov %s702_s13 }
  0xde   : > { %p10_p12 = scmp.ge.s32.totalorder %s13_s16, 7   ;;  %s841_s13 = smov %s772_s20 }
  0xdf   : > { %s842_s14 = smov %s710_s15  ;;  %s843_s15 = smov %s845_s17 }
  0xe0   :  { %12 = sbr.rel (!%p10_p12) target bundleno = 3 (0x3), region = 122 }

// kernel: resnet18_forward.12
= control target key start
LH: loop header
LB: loop body
LE: loop exit
PB: predicated region body
PF: predicated region fallthrough
CT: control target
= control target key end

     0   :  { %s883_s12 = smov 0   ;;  %s885_s13 = smov 0   ;;  %s993_s0 = inlined_call_operand.vmem [shape: bf16[32,1280], index: 0, kind: input, shape index: {}]   ;;  %s994_s1 = inlined_call_operand.vmem [shape: bf16[1280,128], index: 1, kind: input, shape index: {}]   ;;  %s995_s2 = inlined_call_operand.vmem [shape: f32[1,128], index: 2, kind: input, shape index: {}]   ;;  %s996_s3 = inlined_call_operand.vmem [shape: f32[32,128], index: 3, kind: output, shape index: {}]  }
   0x1   :  { %s887_s14 = smov 0   ;;  %s889_s15 = smov 0  }
   0x2   :  { %s891_s16 = smov 0  }
   0x3 LB: > { %s25_s17 = sadd.s32 1, %s856_s15  ;;  %p48_p1 = scmp.ne.s32.totalorder %s848_s13, %s844_s12  ;;  %s860_s16 = sphi %s891_s16, %s13_s16   ;;  %s856_s15 = sphi %s889_s15, %s1000_s15   ;;  %s852_s14 = sphi %s887_s14, %s999_s14   ;;  %s848_s13 = sphi %s885_s13, %s998_s13   ;;  %s844_s12 = sphi %s883_s12, %s997_s12  }
   0x4   : > { %p26_p0 = scmp.ge.s32.totalorder %s25_s17, 5  ;;  %p49_p2 = scmp.eq.s32.totalorder %s860_s16, 0 }
   0x5   : > { %s41_s19 = sadd.s32 1, %s848_s13  ;;  %p649_p5 = scmp.ge.s32.totalorder %s860_s16, 5 }
   0x6   : > { %s1002_s17 = smov (%p26_p0, %s25_s17), 0  ;;  %p50_p3 = por %p49_p2, %p48_p1 }
   0x7   : > { %s37_s18 = ssub.s32 %s856_s15, %s1002_s17  ;;  %162 = sbr.rel (%p649_p5) target bundleno = 20 (0x14), region = 20 }
   0x8   : > { %p39_p4 = scmp.eq.s32.totalorder %s37_s18, 0 }
   0xa   : > { %s918_s20 = scalar_select %p39_p4, %s848_s13, %s41_s19  }
   0xc   : > { %165 = sbr.rel (!%p50_p3) target bundleno = 20 (0x14), region = 24  ;;  %s167_s21 = sand.u32 (%p50_p3), 1, %s848_s13  }
   0xd   : > { %s743_s22 = sshll.u32 (%p50_p3), %s856_s15, 3  ;;  %s650_s23 = sshll.u32 (%p50_p3), %s167_s21, 5 }
   0xe   : > { %s175_s26 = scalar_lea.vmem (%p50_p3), %s993_s0, %s743_s22  ;;  %s169_s27 = scalar_lea.vmem (%p50_p3), [#allocation3], %s650_s23 }
   0xf   : > { %v210_v0 = vld [vmem:[%s175_s26] sm:$0xff] (%p50_p3)  ;;  %v212_v1 = vld [vmem:[%s175_s26 + $0x28] sm:$0xff] (%p50_p3)  ;;  %v214_v2 = vld [vmem:[%s175_s26 + $0x50] sm:$0xff] (%p50_p3) }
  0x10   : > { %211 = vst [vmem:[%s169_s27] sm:$0xff] (%p50_p3), %v210_v0  ;;  %v216_v3 = vld [vmem:[%s175_s26 + $0x78] sm:$0xff] (%p50_p3) }
  0x11   : > { %213 = vst [vmem:[%s169_s27 + $0x8] sm:$0xff] %v212_v1 }
  0x12   : > { %215 = vst [vmem:[%s169_s27 + $0x10] sm:$0xff] %v214_v2 }
  0x13   : > { %217 = vst [vmem:[%s169_s27 + $0x18] sm:$0xff] %v216_v3 }
  0x14 PF: > { %p653_p6 = scmp.ge.s32.totalorder %s860_s16, 1  ;;  %p234_p7 = scmp.lt.s32.totalorder %s860_s16, 6 }
  0x16   : > { %p235_p8 = pnand %p653_p6, %p234_p7 }
  0x17   : > { %s241_s28 = sand.u32 (!%p235_p8), 1, %s844_s12   ;;  %s655_s29 = sshll.u32 (!%p235_p8), %s852_s14, 5 }
  0x18   : > { %238 = sbr.rel (%p235_p8) target bundleno = 229 (0xe5), region = 66  ;;  %s654_s30 = sshll.u32 (!%p235_p8), %s241_s28, 5 }
  0x19   : > { %p281_p9 = scmp.lt.s32.totalorder (!%p235_p8), %s655_s29, 159  ;;  %s935_s8 = scalar_lea.vmem (!%p235_p8), [#allocation3], %s654_s30 }
  0x1a   : > { %p657_p10 = scmp.ne.s32.totalorder (!%p235_p8), %s852_s14, 0 }
  0x1d   : > { %s1004_s29 = smov (!%p281_p9, %s655_s29), 159  ;;  %304 = sbr.rel (%p657_p10) target bundleno = 39 (0x27), region = 74 }
  0x1e   : > { %s656_s4 = sshll.u32 %s1004_s29, 2 }
  0x1f   : > { %s933_s7 = scalar_lea.vmem %s994_s1, %s656_s4 }
  0x22   : > { %v862_v4 = vmov 0.0  }
  0x23   : > { %305 = vst [vmem:[#allocation2 + $0x10] sm:$0xff] %v862_v4 }
  0x24   : > { %306 = vst [vmem:[#allocation2] sm:$0xff] %v862_v4 }
  0x25   : > { %307 = vst [vmem:[#allocation2 + $0x18] sm:$0xff] %v862_v4 }
  0x26   : > { %308 = vst [vmem:[#allocation2 + $0x8] sm:$0xff] %v862_v4 }
  0x27 PF: > { %v755_v5 = vld [vmem:[%s933_s7 + $0x38] sm:$0xff]  ;;  %v754_v7 = vld [vmem:[%s933_s7 + $0x30] sm:$0xff]  ;;  %v753_v9 = vld [vmem:[%s933_s7 + $0x28] sm:$0xff]  ;;  %p738_p11 = scmp.ne.s32.totalorder %s852_s14, 4 }
  0x28   : > { %v763_v6 = vld [vmem:[%s933_s7 + $0x78] sm:$0xff]  ;;  %465 = vmatpush.bf16.msra.mxu0 %v755_v5  ;;  %764 = vmatpush.bf16.msra.mxu2 %v755_v5  ;;  %v762_v8 = vld [vmem:[%s933_s7 + $0x70] sm:$0xff]  ;;  %v761_v10 = vld [vmem:[%s933_s7 + $0x68] sm:$0xff] }
  0x29   : > { %484 = vmatpush.bf16.msra.mxu1 %v763_v6  ;;  %772 = vmatpush.bf16.msra.mxu3 %v763_v6  ;;  %v752_v11 = vld [vmem:[%s933_s7 + $0x20] sm:$0xff]  ;;  %v751_v13 = vld [vmem:[%s933_s7 + $0x18] sm:$0xff]  ;;  %v750_v15 = vld [vmem:[%s933_s7 + $0x10] sm:$0xff] }
  0x2a   : > { %v760_v12 = vld [vmem:[%s933_s7 + $0x60] sm:$0xff]  ;;  %v759_v14 = vld [vmem:[%s933_s7 + $0x58] sm:$0xff]  ;;  %v758_v16 = vld [vmem:[%s933_s7 + $0x50] sm:$0xff] }
  0x2b   : > { %v749_v17 = vld [vmem:[%s933_s7 + $0x8] sm:$0xff]  ;;  %v748_v19 = vld [vmem:[%s933_s7] sm:$0xff]  ;;  %v668_v23 = vld [vmem:[%s935_s8 + $0x10] sm:$0xf] }
  0x2c   : > { %466 = vmatpush.bf16.msra.mxu0 %v754_v7  ;;  %765 = vmatpush.bf16.msra.mxu2 %v754_v7  ;;  %v757_v18 = vld [vmem:[%s933_s7 + $0x48] sm:$0xff]  ;;  %v756_v20 = vld [vmem:[%s933_s7 + $0x40] sm:$0xff]  ;;  %v747_v24 = vld [vmem:[%s935_s8 + $0x14] sm:$0xf0] }
  0x2d   : > { %485 = vmatpush.bf16.msra.mxu1 %v762_v8  ;;  %773 = vmatpush.bf16.msra.mxu3 %v762_v8  ;;  %v660_v21 = vld [vmem:[%s935_s8] sm:$0xf]  ;;  %v745_v22 = vld [vmem:[%s935_s8 + $0x4] sm:$0xf0]  ;;  %v744_v25 = vld [vmem:[%s935_s8 + $0x4] sm:$0xf]  ;;  %v669_v30 = vor.u32 %v747_v24, %v668_v23 }
  0x2e   : > { %v662_v26 = vld [vmem:[%s935_s8 + $0x8] sm:$0xf0]  ;;  %v746_v27 = vld [vmem:[%s935_s8 + $0x14] sm:$0xf]  ;;  %v670_v28 = vld [vmem:[%s935_s8 + $0x18] sm:$0xf0]  ;;  %v661_v29 = vor.u32 %v745_v22, %v660_v21 }
  0x2f   : > { %v665_v31 = vor.u32 %v744_v25, %v662_v26  ;;  %v673_v32 = vor.u32 %v746_v27, %v670_v28  ;;  %v309_v34 = vld [vmem:[#allocation2 + $0x10] sm:$0xff]  ;;  %v311_v39 = vld [vmem:[#allocation2 + $0x18] sm:$0xff]  ;;  %v310_v43 = vld [vmem:[#allocation2] sm:$0xff] }
  0x30   : > { %467 = vmatpush.bf16.msra.mxu0 %v753_v9  ;;  %766 = vmatpush.bf16.msra.mxu2 %v753_v9  ;;  %v312_v49 = vld [vmem:[#allocation2 + $0x8] sm:$0xff] }
  0x31   : > { %486 = vmatpush.bf16.msra.mxu1 %v761_v10  ;;  %774 = vmatpush.bf16.msra.mxu3 %v761_v10 }
  0x34   : > { %468 = vmatpush.bf16.msra.mxu0 %v752_v11  ;;  %767 = vmatpush.bf16.msra.mxu2 %v752_v11 }
  0x35   : > { %487 = vmatpush.bf16.msra.mxu1 %v760_v12  ;;  %775 = vmatpush.bf16.msra.mxu3 %v760_v12 }
  0x38   : > { %469 = vmatpush.bf16.msra.mxu0 %v751_v13  ;;  %768 = vmatpush.bf16.msra.mxu2 %v751_v13 }
  0x39   : > { %488 = vmatpush.bf16.msra.mxu1 %v759_v14  ;;  %776 = vmatpush.bf16.msra.mxu3 %v759_v14 }
  0x3c   : > { %470 = vmatpush.bf16.msra.mxu0 %v750_v15  ;;  %769 = vmatpush.bf16.msra.mxu2 %v750_v15 }
  0x3d   : > { %489 = vmatpush.bf16.msra.mxu1 %v758_v16  ;;  %777 = vmatpush.bf16.msra.mxu3 %v758_v16 }
  0x40   : > { %471 = vmatpush.bf16.msra.mxu0 %v749_v17  ;;  %770 = vmatpush.bf16.msra.mxu2 %v749_v17 }
  0x41   : > { %490 = vmatpush.bf16.msra.mxu1 %v757_v18  ;;  %778 = vmatpush.bf16.msra.mxu3 %v757_v18 }
  0x44   : > { %472 = vmatpush.bf16.msra.mxu0 %v748_v19  ;;  %771 = vmatpush.bf16.msra.mxu2 %v748_v19 }
  0x45   : > { %491 = vmatpush.bf16.msra.mxu1 %v756_v20  ;;  %779 = vmatpush.bf16.msra.mxu3 %v756_v20 }
  0x47   : > { %473 = vmatmul.bf16.vlgmr.msra.gmra.mxu0 %v661_v29  ;;  %478 = vmatmul.bf16.vlgmr.msra.gmra.mxu2 %v669_v30 }
  0x48   : > { %492 = vmatmul.bf16.vlgmr.msra.gmra.mxu1 %v665_v31  ;;  %497 = vmatmul.bf16.vlgmr.msra.gmra.mxu3 %v673_v32 }
  0xc4   : > { %v474_v33 = vpop.f32.mrf.mxu0 }
  0xc5   : > { %v493_v35 = vpop.f32.mrf.mxu1 }
  0xc6   : > { %v494_v36 = vadd.f32 %v493_v35, %v474_v33 }
  0xc8   : > { %v503_v37 = vadd.f32 %v494_v36, %v309_v34 }
  0xca   : > { %507 = vst [vmem:[#allocation2 + $0x10] sm:$0xff] %v503_v37  ;;  %v479_v38 = vpop.f32.mrf.mxu2 }
  0xcb   : > { %v498_v40 = vpop.f32.mrf.mxu3 }
  0xcc   : > { %v499_v41 = vadd.f32 %v498_v40, %v479_v38  ;;  %v476_v42 = vpop.f32.mrf.mxu0 }
  0xcd   : > { %v495_v44 = vpop.f32.mrf.mxu1 }
  0xce   : > { %v505_v45 = vadd.f32 %v499_v41, %v311_v39  ;;  %v496_v46 = vadd.f32 %v495_v44, %v476_v42 }
  0xd0   : > { %509 = vst [vmem:[#allocation2 + $0x18] sm:$0xff] %v505_v45  ;;  %v504_v47 = vadd.f32 %v496_v46, %v310_v43 }
  0xd2   : > { %508 = vst [vmem:[#allocation2] sm:$0xff] %v504_v47  ;;  %v481_v48 = vpop.f32.mrf.mxu2 }
  0xd3   : > { %v500_v50 = vpop.f32.mrf.mxu3 }
  0xd4   : > { %v501_v51 = vadd.f32 %v500_v50, %v481_v48  ;;  %514 = sbr.rel (%p738_p11) target bundleno = 229 (0xe5), region = 78 }
  0xd6   : > { %v506_v52 = vadd.f32 %v501_v51, %v312_v49 }
  0xd8   : > { %510 = vst [vmem:[#allocation2 + $0x8] sm:$0xff] %v506_v52 }
  0xd9   : > { %v515_v53 = vld [vmem:[#allocation2 + $0x10] sm:$0xff]  ;;  %v821_v54 = vld [vmem:[%s995_s2] ss:$0 sm:$0xff]  ;;  %v517_v56 = vld [vmem:[#allocation2 + $0x18] sm:$0xff] }
  0xda   : > { %v516_v55 = vld [vmem:[#allocation2] sm:$0xff]  ;;  %v523_v58 = vadd.f32 %v821_v54, %v515_v53  ;;  %v525_v60 = vadd.f32 %v821_v54, %v517_v56 }
  0xdb   : > { %v524_v59 = vadd.f32 %v821_v54, %v516_v55 }
  0xdc   : > { %v527_v62 = vmax.f32 %v523_v58, 0.0  ;;  %v529_v0 = vmax.f32 %v525_v60, 0.0 }
  0xdd   : > { %v528_v63 = vmax.f32 %v524_v59, 0.0 }
  0xde   : > { %531 = vst [vmem:[%s996_s3] sm:$0xff] %v527_v62 }
  0xdf   : > { %v518_v57 = vld [vmem:[#allocation2 + $0x8] sm:$0xff]  ;;  %532 = vst [vmem:[%s996_s3 + $0x8] sm:$0xff] %v528_v63 }
  0xe0   : > { %v526_v61 = vadd.f32 %v821_v54, %v518_v57  ;;  %533 = vst [vmem:[%s996_s3 + $0x10] sm:$0xff] %v529_v0 }
  0xe2   : > { %v530_v1 = vmax.f32 %v526_v61, 0.0 }
  0xe4   : > { %534 = vst [vmem:[%s996_s3 + $0x18] sm:$0xff] %v530_v1 }
  0xe5 PF: > { %s13_s16 = sadd.s32 1, %s860_s16   ;;  %s997_s12 = smov %s848_s13 }
  0xe6   : > { %p10_p12 = scmp.ge.s32.totalorder %s13_s16, 7   ;;  %s998_s13 = smov %s918_s20 }
  0xe7   : > { %s999_s14 = smov %s856_s15  ;;  %s1000_s15 = smov %s1002_s17 }
  0xe8   :  { %12 = sbr.rel (!%p10_p12) target bundleno = 3 (0x3), region = 119 }

// kernel: resnet18_forward.13
= control target key start
LH: loop header
LB: loop body
LE: loop exit
PB: predicated region body
PF: predicated region fallthrough
CT: control target
= control target key end

     0   :  { %s1251_s12 = smov 0   ;;  %s1253_s13 = smov 0   ;;  %s1447_s0 = inlined_call_operand.vmem [shape: bf16[16,1152], index: 0, kind: input, shape index: {}]   ;;  %s1448_s1 = inlined_call_operand.vmem [shape: bf16[1152,256], index: 1, kind: input, shape index: {}]   ;;  %s1449_s2 = inlined_call_operand.vmem [shape: f32[1,256], index: 2, kind: input, shape index: {}]   ;;  %s1450_s3 = inlined_call_operand.vmem [shape: f32[16,256], index: 3, kind: output, shape index: {}]  }
   0x1   :  { %s1255_s14 = smov 0   ;;  %s1257_s15 = smov 0  }
   0x2   :  { %s1259_s16 = smov 0  }
   0x3 LB: > { %s25_s17 = sadd.s32 1, %s1224_s15  ;;  %p48_p1 = scmp.ne.s32.totalorder %s1216_s13, %s1212_s12  ;;  %s1228_s16 = sphi %s1259_s16, %s13_s16   ;;  %s1224_s15 = sphi %s1257_s15, %s1454_s15   ;;  %s1220_s14 = sphi %s1255_s14, %s1453_s14   ;;  %s1216_s13 = sphi %s1253_s13, %s1452_s13   ;;  %s1212_s12 = sphi %s1251_s12, %s1451_s12  }
   0x4   : > { %p26_p0 = scmp.ge.s32.totalorder %s25_s17, 3  ;;  %p49_p2 = scmp.eq.s32.totalorder %s1228_s16, 0 }
   0x5   : > { %s41_s19 = sadd.s32 1, %s1216_s13  ;;  %p875_p5 = scmp.ge.s32.totalorder %s1228_s16, 3 }
   0x6   : > { %s1456_s17 = smov (%p26_p0, %s25_s17), 0  ;;  %p50_p3 = por %p49_p2, %p48_p1 }
   0x7   : > { %s37_s18 = ssub.s32 %s1224_s15, %s1456_s17  ;;  %164 = sbr.rel (%p875_p5) target bundleno = 21 (0x15), region = 20 }
   0x8   : > { %p39_p4 = scmp.eq.s32.totalorder %s37_s18, 0 }
   0xa   : > { %s1286_s20 = scalar_select %p39_p4, %s1216_s13, %s41_s19  }
   0xc   : > { %167 = sbr.rel (!%p50_p3) target bundleno = 21 (0x15), region = 24  ;;  %s169_s21 = sand.u32 (%p50_p3), 1, %s1216_s13  }
   0xd   : > { %s1094_s22 = smul.u32 (%p50_p3), 12, %s1224_s15 }
   0xe   : > { %s1147_s23 = smul.u32 (%p50_p3), 24, %s169_s21 }
   0xf   : > { %s177_s26 = scalar_lea.vmem (%p50_p3), %s1447_s0, %s1094_s22 }
  0x10   : > { %v192_v0 = vld [vmem:[%s177_s26] sm:$0xff] (%p50_p3)  ;;  %v877_v2 = vld [vmem:[%s177_s26 + $0x8] sm:$0xf] (%p50_p3)  ;;  %s171_s27 = scalar_lea.vmem (%p50_p3), [#allocation3], %s1147_s23  ;;  %v879_v3 = vld [vmem:[%s177_s26 + $0x2c] sm:$0xf] (%p50_p3) }
  0x11   : > { %v194_v1 = vld [vmem:[%s177_s26 + $0x24] sm:$0xff]  ;;  %193 = vst [vmem:[%s171_s27] sm:$0xff] %v192_v0 }
  0x12   : > { %195 = vst [vmem:[%s171_s27 + $0xc] sm:$0xff] %v194_v1 }
  0x13   : > { %878 = vst [vmem:[%s171_s27 + $0x8] sm:$0xf] %v877_v2 }
  0x14   : > { %880 = vst [vmem:[%s171_s27 + $0x14] sm:$0xf] %v879_v3 }
  0x15 PF: > { %p881_p6 = scmp.ge.s32.totalorder %s1228_s16, 1  ;;  %p227_p7 = scmp.lt.s32.totalorder %s1228_s16, 4 }
  0x17   : > { %p228_p8 = pnand %p881_p6, %p227_p7 }
  0x18   : > { %s234_s28 = sand.u32 (!%p228_p8), 1, %s1212_s12   ;;  %s278_s29 = smul.u32 (!%p228_p8), 48, %s1220_s14 }
  0x19   : > { %231 = sbr.rel (%p228_p8) target bundleno = 259 (0x103), region = 54  ;;  %p884_p10 = scmp.ne.s32.totalorder (!%p228_p8), %s1220_s14, 0 }
  0x1a   : > { %s1148_s30 = smul.u32 (!%p228_p8), 24, %s234_s28  ;;  %p280_p9 = scmp.lt.s32.totalorder (!%p228_p8), %s278_s29, 143 }
  0x1c   : > { %s1303_s8 = scalar_lea.vmem (!%p228_p8), [#allocation3], %s1148_s30 }
  0x1e   : > { %s1458_s29 = smov (!%p280_p9, %s278_s29), 143  ;;  %310 = sbr.rel (%p884_p10) target bundleno = 40 (0x28), region = 62 }
  0x1f   : > { %s1095_s4 = sshll.u32 %s1458_s29, 3 }
  0x20   : > { %s1301_s7 = scalar_lea.vmem %s1448_s1, %s1095_s4 }
  0x23   : > { %v1230_v4 = vmov 0.0  }
  0x24   : > { %311 = vst [vmem:[#allocation2 + $0x10] sm:$0xff] %v1230_v4 }
  0x25   : > { %312 = vst [vmem:[#allocation2] sm:$0xff] %v1230_v4 }
  0x26   : > { %313 = vst [vmem:[#allocation2 + $0x18] sm:$0xff] %v1230_v4 }
  0x27   : > { %314 = vst [vmem:[#allocation2 + $0x8] sm:$0xff] %v1230_v4 }
  0x28 PF: > { %v955_v5 = vld [vmem:[%s1301_s7 + $0x70] sm:$0xf]  ;;  %v1114_v6 = vld [vmem:[%s1301_s7 + $0x74] sm:$0xf0]  ;;  %v947_v14 = vld [vmem:[%s1301_s7 + $0x60] sm:$0xf] }
  0x29   : > { %v1019_v7 = vld [vmem:[%s1301_s7 + $0xf0] sm:$0xf]  ;;  %v956_v8 = vor.u32 %v1114_v6, %v955_v5  ;;  %v1130_v9 = vld [vmem:[%s1301_s7 + $0xf4] sm:$0xf0]  ;;  %v1112_v15 = vld [vmem:[%s1301_s7 + $0x64] sm:$0xf0] }
  0x2a   : > { %v1083_v10 = vld [vmem:[%s1301_s7 + $0x170] sm:$0xf]  ;;  %v1146_v11 = vld [vmem:[%s1301_s7 + $0x174] sm:$0xf0]  ;;  %v1020_v12 = vor.u32 %v1130_v9, %v1019_v7  ;;  %v1011_v16 = vld [vmem:[%s1301_s7 + $0xe0] sm:$0xf]  ;;  %v948_v17 = vor.u32 %v1112_v15, %v947_v14 }
  0x2b   : > { %v1084_v13 = vor.u32 %v1146_v11, %v1083_v10  ;;  %627 = vmatpush.bf16.msra.mxu0 %v956_v8  ;;  %v1128_v18 = vld [vmem:[%s1301_s7 + $0xe4] sm:$0xf0]  ;;  %v1075_v19 = vld [vmem:[%s1301_s7 + $0x160] sm:$0xf]  ;;  %v939_v23 = vld [vmem:[%s1301_s7 + $0x50] sm:$0xf] }
  0x2c   : > { %v1144_v20 = vld [vmem:[%s1301_s7 + $0x164] sm:$0xf0]  ;;  %641 = vmatpush.bf16.msra.mxu1 %v1020_v12  ;;  %v1012_v21 = vor.u32 %v1128_v18, %v1011_v16  ;;  %v1110_v24 = vld [vmem:[%s1301_s7 + $0x54] sm:$0xf0]  ;;  %v1003_v25 = vld [vmem:[%s1301_s7 + $0xd0] sm:$0xf] }
  0x2d   : > { %655 = vmatpush.bf16.msra.mxu2 %v1084_v13  ;;  %v1076_v22 = vor.u32 %v1144_v20, %v1075_v19  ;;  %v1126_v26 = vld [vmem:[%s1301_s7 + $0xd4] sm:$0xf0]  ;;  %v1067_v27 = vld [vmem:[%s1301_s7 + $0x150] sm:$0xf]  ;;  %v940_v29 = vor.u32 %v1110_v24, %v939_v23  ;;  %v931_v30 = vld [vmem:[%s1301_s7 + $0x40] sm:$0xf] }
  0x2e   : > { %v1142_v28 = vld [vmem:[%s1301_s7 + $0x154] sm:$0xf0]  ;;  %v1108_v31 = vld [vmem:[%s1301_s7 + $0x44] sm:$0xf0]  ;;  %v1004_v32 = vor.u32 %v1126_v26, %v1003_v25  ;;  %v995_v34 = vld [vmem:[%s1301_s7 + $0xc0] sm:$0xf] }
  0x2f   : > { %628 = vmatpush.bf16.msra.mxu0 %v948_v17  ;;  %v1068_v33 = vor.u32 %v1142_v28, %v1067_v27  ;;  %v1113_v35 = vld [vmem:[%s1301_s7 + $0x74] sm:$0xf]  ;;  %v957_v36 = vld [vmem:[%s1301_s7 + $0x78] sm:$0xf0]  ;;  %v1124_v37 = vld [vmem:[%s1301_s7 + $0xc4] sm:$0xf0]  ;;  %v932_v42 = vor.u32 %v1108_v31, %v931_v30 }
  0x30   : > { %642 = vmatpush.bf16.msra.mxu1 %v1012_v21  ;;  %v1059_v38 = vld [vmem:[%s1301_s7 + $0x140] sm:$0xf]  ;;  %v1140_v39 = vld [vmem:[%s1301_s7 + $0x144] sm:$0xf0]  ;;  %v960_v40 = vor.u32 %v1113_v35, %v957_v36  ;;  %v1111_v41 = vld [vmem:[%s1301_s7 + $0x64] sm:$0xf]  ;;  %v996_v46 = vor.u32 %v1124_v37, %v995_v34 }
  0x31   : > { %656 = vmatpush.bf16.msra.mxu2 %v1076_v22  ;;  %v923_v43 = vld [vmem:[%s1301_s7 + $0x30] sm:$0xf]  ;;  %v1106_v44 = vld [vmem:[%s1301_s7 + $0x34] sm:$0xf0]  ;;  %v949_v45 = vld [vmem:[%s1301_s7 + $0x68] sm:$0xf0]  ;;  %v1060_v47 = vor.u32 %v1140_v39, %v1059_v38 }
  0x32   : > { %669 = vmatpush.bf16.msra.mxu3 %v960_v40  ;;  %v987_v48 = vld [vmem:[%s1301_s7 + $0xb0] sm:$0xf]  ;;  %v1122_v49 = vld [vmem:[%s1301_s7 + $0xb4] sm:$0xf0]  ;;  %v952_v51 = vor.u32 %v1111_v41, %v949_v45  ;;  %v1109_v53 = vld [vmem:[%s1301_s7 + $0x54] sm:$0xf]  ;;  %v924_v55 = vor.u32 %v1106_v44, %v923_v43 }
  0x33   : > { %629 = vmatpush.bf16.msra.mxu0 %v940_v29  ;;  %v1051_v50 = vld [vmem:[%s1301_s7 + $0x130] sm:$0xf]  ;;  %v1138_v52 = vld [vmem:[%s1301_s7 + $0x134] sm:$0xf0]  ;;  %v941_v54 = vld [vmem:[%s1301_s7 + $0x58] sm:$0xf0]  ;;  %v988_v59 = vor.u32 %v1122_v49, %v987_v48 }
  0x34   : > { %643 = vmatpush.bf16.msra.mxu1 %v1004_v32  ;;  %v915_v56 = vld [vmem:[%s1301_s7 + $0x20] sm:$0xf]  ;;  %v1104_v57 = vld [vmem:[%s1301_s7 + $0x24] sm:$0xf0]  ;;  %v944_v58 = vor.u32 %v1109_v53, %v941_v54  ;;  %v1052_v60 = vor.u32 %v1138_v52, %v1051_v50  ;;  %v1107_v62 = vld [vmem:[%s1301_s7 + $0x44] sm:$0xf] }
  0x35   : > { %657 = vmatpush.bf16.msra.mxu2 %v1068_v33  ;;  %v979_v61 = vld [vmem:[%s1301_s7 + $0xa0] sm:$0xf]  ;;  %v933_v63 = vld [vmem:[%s1301_s7 + $0x48] sm:$0xf0]  ;;  %v1120_v0 = vld [vmem:[%s1301_s7 + $0xa4] sm:$0xf0]  ;;  %v916_v3 = vor.u32 %v1104_v57, %v915_v56 }
  0x36   : > { %670 = vmatpush.bf16.msra.mxu3 %v952_v51  ;;  %v1043_v1 = vld [vmem:[%s1301_s7 + $0x120] sm:$0xf]  ;;  %v1136_v2 = vld [vmem:[%s1301_s7 + $0x124] sm:$0xf0]  ;;  %v907_v4 = vld [vmem:[%s1301_s7 + $0x10] sm:$0xf]  ;;  %v936_v6 = vor.u32 %v1107_v62, %v933_v63  ;;  %v980_v7 = vor.u32 %v1120_v0, %v979_v61 }
  0x37   : > { %630 = vmatpush.bf16.msra.mxu0 %v932_v42  ;;  %v1102_v5 = vld [vmem:[%s1301_s7 + $0x14] sm:$0xf0]  ;;  %v1044_v8 = vor.u32 %v1136_v2, %v1043_v1  ;;  %v971_v9 = vld [vmem:[%s1301_s7 + $0x90] sm:$0xf]  ;;  %v1105_v10 = vld [vmem:[%s1301_s7 + $0x34] sm:$0xf] }
  0x38   : > { %644 = vmatpush.bf16.msra.mxu1 %v996_v46  ;;  %v925_v11 = vld [vmem:[%s1301_s7 + $0x38] sm:$0xf0]  ;;  %v1118_v12 = vld [vmem:[%s1301_s7 + $0x94] sm:$0xf0]  ;;  %v1035_v13 = vld [vmem:[%s1301_s7 + $0x110] sm:$0xf]  ;;  %v908_v15 = vor.u32 %v1102_v5, %v907_v4 }
  0x39   : > { %658 = vmatpush.bf16.msra.mxu2 %v1060_v47  ;;  %v1134_v14 = vld [vmem:[%s1301_s7 + $0x114] sm:$0xf0]  ;;  %v899_v16 = vld [vmem:[%s1301_s7] sm:$0xf]  ;;  %v1100_v17 = vld [vmem:[%s1301_s7 + $0x4] sm:$0xf0]  ;;  %v928_v19 = vor.u32 %v1105_v10, %v925_v11  ;;  %v972_v20 = vor.u32 %v1118_v12, %v971_v9 }
  0x3a   : > { %671 = vmatpush.bf16.msra.mxu3 %v944_v58  ;;  %v963_v18 = vld [vmem:[%s1301_s7 + $0x80] sm:$0xf]  ;;  %v1036_v21 = vor.u32 %v1134_v14, %v1035_v13  ;;  %v1116_v22 = vld [vmem:[%s1301_s7 + $0x84] sm:$0xf0]  ;;  %v1103_v23 = vld [vmem:[%s1301_s7 + $0x24] sm:$0xf]  ;;  %v900_v31 = vor.u32 %v1100_v17, %v899_v16 }
  0x3b   : > { %631 = vmatpush.bf16.msra.mxu0 %v924_v55  ;;  %v917_v24 = vld [vmem:[%s1301_s7 + $0x28] sm:$0xf0]  ;;  %v1027_v25 = vld [vmem:[%s1301_s7 + $0x100] sm:$0xf]  ;;  %v1132_v26 = vld [vmem:[%s1301_s7 + $0x104] sm:$0xf0]  ;;  %v964_v36 = vor.u32 %v1116_v22, %v963_v18 }
  0x3c   : > { %645 = vmatpush.bf16.msra.mxu1 %v988_v59  ;;  %v1129_v27 = vld [vmem:[%s1301_s7 + $0xf4] sm:$0xf]  ;;  %v1021_v28 = vld [vmem:[%s1301_s7 + $0xf8] sm:$0xf0]  ;;  %v895_v32 = vld [vmem:[%s1303_s8 + $0x8] sm:$0xf]  ;;  %v920_v33 = vor.u32 %v1103_v23, %v917_v24  ;;  %v1028_v37 = vor.u32 %v1132_v26, %v1027_v25 }
  0x3d   : > { %659 = vmatpush.bf16.msra.mxu2 %v1052_v60  ;;  %v1145_v29 = vld [vmem:[%s1301_s7 + $0x174] sm:$0xf]  ;;  %v1085_v30 = vld [vmem:[%s1301_s7 + $0x178] sm:$0xf0]  ;;  %v887_v34 = vld [vmem:[%s1303_s8] sm:$0xf]  ;;  %v1024_v41 = vor.u32 %v1129_v27, %v1021_v28 }
  0x3e   : > { %672 = vmatpush.bf16.msra.mxu3 %v936_v6  ;;  %v1097_v35 = vld [vmem:[%s1303_s8 + $0x8] sm:$0xf0]  ;;  %v1098_v38 = vld [vmem:[%s1303_s8 + $0x10] sm:$0xf0]  ;;  %v1096_v39 = vld [vmem:[%s1303_s8 + $0x4] sm:$0xf]  ;;  %v1088_v42 = vor.u32 %v1145_v29, %v1085_v30 }
  0x3f   : > { %632 = vmatpush.bf16.msra.mxu0 %v916_v3  ;;  %v889_v40 = vld [vmem:[%s1303_s8 + $0xc] sm:$0xf0]  ;;  %v1127_v43 = vld [vmem:[%s1301_s7 + $0xe4] sm:$0xf]  ;;  %v1101_v44 = vld [vmem:[%s1301_s7 + $0x14] sm:$0xf]  ;;  %v888_v49 = vor.u32 %v1097_v35, %v887_v34  ;;  %v1382_v50 = vor.u32 %v1098_v38, %v895_v32 }
  0x40   : > { %646 = vmatpush.bf16.msra.mxu1 %v980_v7  ;;  %v909_v45 = vld [vmem:[%s1301_s7 + $0x18] sm:$0xf0]  ;;  %v1013_v46 = vld [vmem:[%s1301_s7 + $0xe8] sm:$0xf0]  ;;  %v1143_v47 = vld [vmem:[%s1301_s7 + $0x164] sm:$0xf]  ;;  %v1384_v51 = vor.u32 %v1096_v39, %v889_v40 }
  0x41   : > { %660 = vmatpush.bf16.msra.mxu2 %v1044_v8  ;;  %v1077_v48 = vld [vmem:[%s1301_s7 + $0x168] sm:$0xf0]  ;;  %v912_v52 = vor.u32 %v1101_v44, %v909_v45  ;;  %v1016_v53 = vor.u32 %v1127_v43, %v1013_v46  ;;  %v1125_v55 = vld [vmem:[%s1301_s7 + $0xd4] sm:$0xf]  ;;  %v1099_v56 = vld [vmem:[%s1301_s7 + $0x4] sm:$0xf] }
  0x42   : > { %673 = vmatpush.bf16.msra.mxu3 %v928_v19  ;;  %v1080_v54 = vor.u32 %v1143_v47, %v1077_v48  ;;  %v901_v57 = vld [vmem:[%s1301_s7 + $0x8] sm:$0xf0]  ;;  %v1005_v58 = vld [vmem:[%s1301_s7 + $0xd8] sm:$0xf0]  ;;  %v1141_v59 = vld [vmem:[%s1301_s7 + $0x154] sm:$0xf] }
  0x43   : > { %633 = vmatpush.bf16.msra.mxu0 %v908_v15  ;;  %v1069_v60 = vld [vmem:[%s1301_s7 + $0x158] sm:$0xf0]  ;;  %v904_v61 = vor.u32 %v1099_v56, %v901_v57  ;;  %v1008_v62 = vor.u32 %v1125_v55, %v1005_v58  ;;  %v1123_v0 = vld [vmem:[%s1301_s7 + $0xc4] sm:$0xf]  ;;  %v997_v1 = vld [vmem:[%s1301_s7 + $0xc8] sm:$0xf0] }
  0x44   : > { %647 = vmatpush.bf16.msra.mxu1 %v972_v20  ;;  %v1072_v63 = vor.u32 %v1141_v59, %v1069_v60  ;;  %v1139_v2 = vld [vmem:[%s1301_s7 + $0x144] sm:$0xf]  ;;  %v1061_v3 = vld [vmem:[%s1301_s7 + $0x148] sm:$0xf0]  ;;  %v1000_v4 = vor.u32 %v1123_v0, %v997_v1  ;;  %v1121_v6 = vld [vmem:[%s1301_s7 + $0xb4] sm:$0xf] }
  0x45   : > { %661 = vmatpush.bf16.msra.mxu2 %v1036_v21  ;;  %v1064_v5 = vor.u32 %v1139_v2, %v1061_v3  ;;  %v989_v7 = vld [vmem:[%s1301_s7 + $0xb8] sm:$0xf0]  ;;  %v1137_v8 = vld [vmem:[%s1301_s7 + $0x134] sm:$0xf]  ;;  %v1119_v12 = vld [vmem:[%s1301_s7 + $0xa4] sm:$0xf] }
  0x46   : > { %674 = vmatpush.bf16.msra.mxu3 %v920_v33  ;;  %v1053_v9 = vld [vmem:[%s1301_s7 + $0x138] sm:$0xf0]  ;;  %v992_v10 = vor.u32 %v1121_v6, %v989_v7  ;;  %v981_v13 = vld [vmem:[%s1301_s7 + $0xa8] sm:$0xf0]  ;;  %v1135_v14 = vld [vmem:[%s1301_s7 + $0x124] sm:$0xf] }
  0x47   : > { %634 = vmatpush.bf16.msra.mxu0 %v900_v31  ;;  %v1056_v11 = vor.u32 %v1137_v8, %v1053_v9  ;;  %v1045_v15 = vld [vmem:[%s1301_s7 + $0x128] sm:$0xf0]  ;;  %v984_v16 = vor.u32 %v1119_v12, %v981_v13  ;;  %v1117_v18 = vld [vmem:[%s1301_s7 + $0x94] sm:$0xf]  ;;  %v973_v19 = vld [vmem:[%s1301_s7 + $0x98] sm:$0xf0] }
  0x48   : > { %648 = vmatpush.bf16.msra.mxu1 %v964_v36  ;;  %v1048_v17 = vor.u32 %v1135_v14, %v1045_v15  ;;  %v1133_v20 = vld [vmem:[%s1301_s7 + $0x114] sm:$0xf]  ;;  %v1037_v21 = vld [vmem:[%s1301_s7 + $0x118] sm:$0xf0]  ;;  %v976_v22 = vor.u32 %v1117_v18, %v973_v19  ;;  %v1115_v24 = vld [vmem:[%s1301_s7 + $0x84] sm:$0xf] }
  0x49   : > { %662 = vmatpush.bf16.msra.mxu2 %v1028_v37  ;;  %v1040_v23 = vor.u32 %v1133_v20, %v1037_v21  ;;  %v965_v25 = vld [vmem:[%s1301_s7 + $0x88] sm:$0xf0]  ;;  %v1131_v26 = vld [vmem:[%s1301_s7 + $0x104] sm:$0xf]  ;;  %v315_v33 = vld [vmem:[#allocation2 + $0x10] sm:$0xff]  ;;  %p1089_p11 = scmp.ne.s32.totalorder %s1220_s14, 2 }
  0x4a   : > { %635 = vmatmul.bf16.vlgmr.msra.gmra.mxu0 %v888_v49  ;;  %675 = vmatpush.bf16.msra.mxu3 %v912_v52  ;;  %v1029_v27 = vld [vmem:[%s1301_s7 + $0x108] sm:$0xf0]  ;;  %v968_v28 = vor.u32 %v1115_v24, %v965_v25  ;;  %v317_v40 = vld [vmem:[#allocation2 + $0x18] sm:$0xff]  ;;  %v316_v48 = vld [vmem:[#allocation2] sm:$0xff] }
  0x4b   : > { %683 = vmatpush.bf16.msrb.mxu0 %v1024_v41  ;;  %649 = vmatmul.bf16.vlgmr.msra.gmra.mxu1 %v1384_v51  ;;  %v1032_v29 = vor.u32 %v1131_v26, %v1029_v27 }
  0x4c   : > { %697 = vmatpush.bf16.msrb.mxu1 %v1088_v42  ;;  %663 = vmatmul.bf16.vlgmr.msra.gmra.mxu2 %v1382_v50 }
  0x4e   : > { %676 = vmatpush.bf16.msra.mxu3 %v904_v61 }
  0x4f   : > { %684 = vmatpush.bf16.msrb.mxu0 %v1016_v53 }
  0x50   : > { %698 = vmatpush.bf16.msrb.mxu1 %v1080_v54  ;;  %v318_v54 = vld [vmem:[#allocation2 + $0x8] sm:$0xff] }
  0x51   : > { %677 = vmatmul.bf16.vlgmr.msra.gmra.mxu3 %v888_v49 }
  0x53   : > { %685 = vmatpush.bf16.msrb.mxu0 %v1008_v62 }
  0x54   : > { %699 = vmatpush.bf16.msrb.mxu1 %v1072_v63 }
  0x57   : > { %686 = vmatpush.bf16.msrb.mxu0 %v1000_v4 }
  0x58   : > { %700 = vmatpush.bf16.msrb.mxu1 %v1064_v5 }
  0x5b   : > { %687 = vmatpush.bf16.msrb.mxu0 %v992_v10 }
  0x5c   : > { %701 = vmatpush.bf16.msrb.mxu1 %v1056_v11 }
  0x5f   : > { %688 = vmatpush.bf16.msrb.mxu0 %v984_v16 }
  0x60   : > { %702 = vmatpush.bf16.msrb.mxu1 %v1048_v17 }
  0x63   : > { %689 = vmatpush.bf16.msrb.mxu0 %v976_v22 }
  0x64   : > { %703 = vmatpush.bf16.msrb.mxu1 %v1040_v23 }
  0x67   : > { %690 = vmatpush.bf16.msrb.mxu0 %v968_v28 }
  0x68   : > { %704 = vmatpush.bf16.msrb.mxu1 %v1032_v29 }
  0x6a   : > { %691 = vmatmul.bf16.vlgmr.msrb.gmra.mxu0 %v1384_v51 }
  0x6b   : > { %705 = vmatmul.bf16.vlgmr.msrb.gmra.mxu1 %v1382_v50 }
  0xc7   : > { %v636_v30 = vpop.f32.mrf.mxu0 }
  0xc8   : > { %v650_v31 = vpop.f32.mrf.mxu1 }
  0xc9   : > { %v651_v32 = vadd.f32 %v650_v31, %v636_v30 }
  0xcf   : > { %v664_v34 = vpop.f32.mrf.mxu2  ;;  %v638_v36 = vpop.f32.mrf.mxu0 }
  0xd0   : > { %v665_v35 = vadd.f32 %v664_v34, %v651_v32  ;;  %v652_v37 = vpop.f32.mrf.mxu1 }
  0xd1   : > { %v653_v39 = vadd.f32 %v652_v37, %v638_v36 }
  0xd2   : > { %v711_v38 = vadd.f32 %v665_v35, %v315_v33 }
  0xd4   : > { %715 = vst [vmem:[#allocation2 + $0x10] sm:$0xff] %v711_v38  ;;  %v678_v44 = vpop.f32.mrf.mxu3 }
  0xd7   : > { %v666_v41 = vpop.f32.mrf.mxu2 }
  0xd8   : > { %v667_v42 = vadd.f32 %v666_v41, %v653_v39 }
  0xda   : > { %v713_v43 = vadd.f32 %v667_v42, %v317_v40 }
  0xdc   : > { %717 = vst [vmem:[#allocation2 + $0x18] sm:$0xff] %v713_v43  ;;  %v680_v51 = vpop.f32.mrf.mxu3 }
  0xe7   : > { %v692_v45 = vpop.f32.mrf.mxu0 }
  0xe8   : > { %v706_v46 = vpop.f32.mrf.mxu1  ;;  %v693_v47 = vadd.f32 %v692_v45, %v678_v44 }
  0xea   : > { %v707_v49 = vadd.f32 %v706_v46, %v693_v47 }
  0xec   : > { %v712_v50 = vadd.f32 %v707_v49, %v316_v48 }
  0xee   : > { %716 = vst [vmem:[#allocation2] sm:$0xff] %v712_v50 }
  0xef   : > { %v694_v52 = vpop.f32.mrf.mxu0 }
  0xf0   : > { %v695_v53 = vadd.f32 %v694_v52, %v680_v51  ;;  %v708_v55 = vpop.f32.mrf.mxu1 }
  0xf2   : > { %v709_v56 = vadd.f32 %v708_v55, %v695_v53  ;;  %722 = sbr.rel (%p1089_p11) target bundleno = 259 (0x103), region = 66 }
  0xf4   : > { %v714_v57 = vadd.f32 %v709_v56, %v318_v54 }
  0xf6   : > { %718 = vst [vmem:[#allocation2 + $0x8] sm:$0xff] %v714_v57 }
  0xf7   : > { %v723_v58 = vld [vmem:[#allocation2 + $0x10] sm:$0xff]  ;;  %v727_v59 = vld [vmem:[%s1449_s2] sm:$0x3]  ;;  %v725_v63 = vld [vmem:[#allocation2 + $0x18] sm:$0xff] }
  0xf8   : > { %v724_v60 = vld [vmem:[#allocation2] sm:$0xff]  ;;  %v729_v61 = vperm.slane %v727_v59, 0  ;;  %v730_v62 = vperm.slane %v727_v59, 1 }
  0xfa   : > { %v733_v1 = vadd.f32 %v729_v61, %v723_v58  ;;  %v734_v2 = vadd.f32 %v730_v62, %v724_v60  ;;  %v735_v3 = vadd.f32 %v729_v61, %v725_v63 }
  0xfc   : > { %v737_v5 = vmax.f32 %v733_v1, 0.0  ;;  %v738_v6 = vmax.f32 %v734_v2, 0.0  ;;  %v739_v7 = vmax.f32 %v735_v3, 0.0 }
  0xfd   : > { %v726_v0 = vld [vmem:[#allocation2 + $0x8] sm:$0xff] }
  0xfe   : > { %v736_v4 = vadd.f32 %v730_v62, %v726_v0  ;;  %741 = vst [vmem:[%s1450_s3] sm:$0xff] %v737_v5 }
  0xff   : > { %742 = vst [vmem:[%s1450_s3 + $0x8] sm:$0xff] %v738_v6 }
 0x100   : > { %v740_v8 = vmax.f32 %v736_v4, 0.0  ;;  %743 = vst [vmem:[%s1450_s3 + $0x10] sm:$0xff] %v739_v7 }
 0x102   : > { %744 = vst [vmem:[%s1450_s3 + $0x18] sm:$0xff] %v740_v8 }
 0x103 PF: > { %s13_s16 = sadd.s32 1, %s1228_s16   ;;  %s1451_s12 = smov %s1216_s13 }
 0x104   : > { %p10_p12 = scmp.ge.s32.totalorder %s13_s16, 5   ;;  %s1452_s13 = smov %s1286_s20 }
 0x105   : > { %s1453_s14 = smov %s1224_s15  ;;  %s1454_s15 = smov %s1456_s17 }
 0x106   :  { %12 = sbr.rel (!%p10_p12) target bundleno = 3 (0x3), region = 113 }

// kernel: resnet18_forward.14
= control target key start
LH: loop header
LB: loop body
LE: loop exit
PB: predicated region body
PF: predicated region fallthrough
CT: control target
= control target key end

     0   :  { %s822_s12 = smov 0   ;;  %s824_s13 = smov 0   ;;  %s943_s0 = inlined_call_operand.vmem [shape: bf16[16,2432], index: 0, kind: input, shape index: {}]   ;;  %s944_s1 = inlined_call_operand.vmem [shape: bf16[2432,256], index: 1, kind: input, shape index: {}]   ;;  %s945_s2 = inlined_call_operand.vmem [shape: f32[1,256], index: 2, kind: input, shape index: {}]   ;;  %s946_s3 = inlined_call_operand.vmem [shape: f32[16,256], index: 3, kind: output, shape index: {}]  }
   0x1   :  { %s826_s14 = smov 0   ;;  %s828_s15 = smov 0  }
   0x2   :  { %s830_s16 = smov 0  }
   0x3 LB: > { %s25_s17 = sadd.s32 1, %s795_s15  ;;  %p48_p1 = scmp.ne.s32.totalorder %s787_s13, %s783_s12  ;;  %s799_s16 = sphi %s830_s16, %s13_s16   ;;  %s795_s15 = sphi %s828_s15, %s950_s15   ;;  %s791_s14 = sphi %s826_s14, %s949_s14   ;;  %s787_s13 = sphi %s824_s13, %s948_s13   ;;  %s783_s12 = sphi %s822_s12, %s947_s12  }
   0x4   : > { %p26_p0 = scmp.ge.s32.totalorder %s25_s17, 19  ;;  %p49_p2 = scmp.eq.s32.totalorder %s799_s16, 0 }
   0x5   : > { %s41_s19 = sadd.s32 1, %s787_s13  ;;  %p620_p5 = scmp.ge.s32.totalorder %s799_s16, 19 }
   0x6   : > { %s952_s17 = smov (%p26_p0, %s25_s17), 0  ;;  %p50_p3 = por %p49_p2, %p48_p1 }
   0x7   : > { %s37_s18 = ssub.s32 %s795_s15, %s952_s17  ;;  %164 = sbr.rel (%p620_p5) target bundleno = 18 (0x12), region = 20 }
   0x8   : > { %p39_p4 = scmp.eq.s32.totalorder %s37_s18, 0 }
   0xa   : > { %s857_s20 = scalar_select %p39_p4, %s787_s13, %s41_s19  }
   0xc   : > { %167 = sbr.rel (!%p50_p3) target bundleno = 18 (0x12), region = 24  ;;  %s169_s21 = sand.u32 (%p50_p3), 1, %s787_s13  }
   0xd   : > { %s622_s22 = sshll.u32 (%p50_p3), %s795_s15, 2  ;;  %s621_s23 = sshll.u32 (%p50_p3), %s169_s21, 3 }
   0xe   : > { %s176_s26 = scalar_lea.vmem (%p50_p3), %s943_s0, %s622_s22  ;;  %s171_s27 = scalar_lea.vmem (%p50_p3), [#allocation3], %s621_s23 }
   0xf   : > { %v193_v0 = vld [vmem:[%s176_s26] sm:$0xf] (%p50_p3)  ;;  %v195_v1 = vld [vmem:[%s176_s26 + $0x4c] sm:$0xf] (%p50_p3) }
  0x10   : > { %194 = vst [vmem:[%s171_s27] sm:$0xf] (%p50_p3), %v193_v0 }
  0x11   : > { %196 = vst [vmem:[%s171_s27 + $0x4] sm:$0xf] %v195_v1 }
  0x12 PF: > { %p623_p6 = scmp.ge.s32.totalorder %s799_s16, 1  ;;  %p238_p7 = scmp.lt.s32.totalorder %s799_s16, 20 }
  0x14   : > { %p239_p8 = pnand %p623_p6, %p238_p7 }
  0x15   : > { %s245_s28 = sand.u32 (!%p239_p8), 1, %s783_s12   ;;  %s625_s29 = sshll.u32 (!%p239_p8), %s791_s14, 4 }
  0x16   : > { %242 = sbr.rel (%p239_p8) target bundleno = 221 (0xdd), region = 69  ;;  %s869_s30 = sshll.u32 (!%p239_p8), %s245_s28, 3 }
  0x17   : > { %p290_p9 = scmp.lt.s32.totalorder (!%p239_p8), %s625_s29, 303  ;;  %s247_s8 = scalar_lea.vmem (!%p239_p8), [#allocation3], %s869_s30 }
  0x18   : > { %p628_p10 = scmp.ne.s32.totalorder (!%p239_p8), %s791_s14, 0 }
  0x1b   : > { %s954_s29 = smov (!%p290_p9, %s625_s29), 303  ;;  %320 = sbr.rel (%p628_p10) target bundleno = 37 (0x25), region = 77 }
  0x1c   : > { %s702_s4 = sshll.u32 %s954_s29, 3 }
  0x1d   : > { %s874_s7 = scalar_lea.vmem %s944_s1, %s702_s4 }
  0x20   : > { %v801_v2 = vmov 0.0  }
  0x21   : > { %321 = vst [vmem:[#allocation2 + $0x10] sm:$0xff] %v801_v2 }
  0x22   : > { %322 = vst [vmem:[#allocation2] sm:$0xff] %v801_v2 }
  0x23   : > { %323 = vst [vmem:[#allocation2 + $0x18] sm:$0xff] %v801_v2 }
  0x24   : > { %324 = vst [vmem:[#allocation2 + $0x8] sm:$0xff] %v801_v2 }
  0x25 PF: > { %v691_v3 = vld [vmem:[%s874_s7 + $0x70] sm:$0xf]  ;;  %v719_v4 = vld [vmem:[%s874_s7 + $0x74] sm:$0xf0]  ;;  %v718_v5 = vld [vmem:[%s874_s7 + $0x74] sm:$0xf] }
  0x26   : > { %v692_v6 = vor.u32 %v719_v4, %v691_v3  ;;  %v693_v7 = vld [vmem:[%s874_s7 + $0x78] sm:$0xf0]  ;;  %v683_v8 = vld [vmem:[%s874_s7 + $0x60] sm:$0xf]  ;;  %v717_v9 = vld [vmem:[%s874_s7 + $0x64] sm:$0xf0] }
  0x27   : > { %v696_v10 = vor.u32 %v718_v5, %v693_v7  ;;  %v716_v11 = vld [vmem:[%s874_s7 + $0x64] sm:$0xf]  ;;  %v685_v12 = vld [vmem:[%s874_s7 + $0x68] sm:$0xf0]  ;;  %v684_v13 = vor.u32 %v717_v9, %v683_v8  ;;  %v675_v15 = vld [vmem:[%s874_s7 + $0x50] sm:$0xf] }
  0x28   : > { %433 = vmatpush.bf16.msra.mxu0 %v692_v6  ;;  %v688_v14 = vor.u32 %v716_v11, %v685_v12  ;;  %v715_v16 = vld [vmem:[%s874_s7 + $0x54] sm:$0xf0]  ;;  %v714_v17 = vld [vmem:[%s874_s7 + $0x54] sm:$0xf]  ;;  %v677_v18 = vld [vmem:[%s874_s7 + $0x58] sm:$0xf0] }
  0x29   : > { %447 = vmatpush.bf16.msra.mxu1 %v696_v10  ;;  %v676_v19 = vor.u32 %v715_v16, %v675_v15  ;;  %v680_v20 = vor.u32 %v714_v17, %v677_v18  ;;  %v667_v21 = vld [vmem:[%s874_s7 + $0x40] sm:$0xf]  ;;  %v713_v22 = vld [vmem:[%s874_s7 + $0x44] sm:$0xf0]  ;;  %v712_v23 = vld [vmem:[%s874_s7 + $0x44] sm:$0xf] }
  0x2a   : > { %v669_v24 = vld [vmem:[%s874_s7 + $0x48] sm:$0xf0]  ;;  %v668_v25 = vor.u32 %v713_v22, %v667_v21  ;;  %v659_v27 = vld [vmem:[%s874_s7 + $0x30] sm:$0xf]  ;;  %v711_v28 = vld [vmem:[%s874_s7 + $0x34] sm:$0xf0] }
  0x2b   : > { %v672_v26 = vor.u32 %v712_v23, %v669_v24  ;;  %v710_v29 = vld [vmem:[%s874_s7 + $0x34] sm:$0xf]  ;;  %v661_v30 = vld [vmem:[%s874_s7 + $0x38] sm:$0xf0]  ;;  %v660_v31 = vor.u32 %v711_v28, %v659_v27  ;;  %v651_v33 = vld [vmem:[%s874_s7 + $0x20] sm:$0xf] }
  0x2c   : > { %434 = vmatpush.bf16.msra.mxu0 %v684_v13  ;;  %v664_v32 = vor.u32 %v710_v29, %v661_v30  ;;  %v709_v34 = vld [vmem:[%s874_s7 + $0x24] sm:$0xf0]  ;;  %v708_v35 = vld [vmem:[%s874_s7 + $0x24] sm:$0xf]  ;;  %v653_v36 = vld [vmem:[%s874_s7 + $0x28] sm:$0xf0] }
  0x2d   : > { %448 = vmatpush.bf16.msra.mxu1 %v688_v14  ;;  %v652_v37 = vor.u32 %v709_v34, %v651_v33  ;;  %v656_v38 = vor.u32 %v708_v35, %v653_v36  ;;  %v643_v39 = vld [vmem:[%s874_s7 + $0x10] sm:$0xf]  ;;  %v707_v40 = vld [vmem:[%s874_s7 + $0x14] sm:$0xf0]  ;;  %v706_v41 = vld [vmem:[%s874_s7 + $0x14] sm:$0xf] }
  0x2e   : > { %v645_v42 = vld [vmem:[%s874_s7 + $0x18] sm:$0xf0]  ;;  %v644_v43 = vor.u32 %v707_v40, %v643_v39  ;;  %v635_v45 = vld [vmem:[%s874_s7] sm:$0xf]  ;;  %v705_v46 = vld [vmem:[%s874_s7 + $0x4] sm:$0xf0] }
  0x2f   : > { %v648_v44 = vor.u32 %v706_v41, %v645_v42  ;;  %v704_v47 = vld [vmem:[%s874_s7 + $0x4] sm:$0xf]  ;;  %v637_v48 = vld [vmem:[%s874_s7 + $0x8] sm:$0xf0]  ;;  %v636_v49 = vor.u32 %v705_v46, %v635_v45  ;;  %v325_v52 = vld [vmem:[#allocation2 + $0x10] sm:$0xff]  ;;  %p697_p11 = scmp.ne.s32.totalorder %s791_s14, 18 }
  0x30   : > { %435 = vmatpush.bf16.msra.mxu0 %v676_v19  ;;  %v640_v50 = vor.u32 %v704_v47, %v637_v48  ;;  %v703_v51 = vld [vmem:[%s247_s8] sm:$0xff]  ;;  %v327_v58 = vld [vmem:[#allocation2 + $0x18] sm:$0xff] }
  0x31   : > { %449 = vmatpush.bf16.msra.mxu1 %v680_v20  ;;  %v326_v53 = vld [vmem:[#allocation2] sm:$0xff]  ;;  %v328_v59 = vld [vmem:[#allocation2 + $0x8] sm:$0xff] }
  0x34   : > { %436 = vmatpush.bf16.msra.mxu0 %v668_v25 }
  0x35   : > { %450 = vmatpush.bf16.msra.mxu1 %v672_v26 }
  0x38   : > { %437 = vmatpush.bf16.msra.mxu0 %v660_v31 }
  0x39   : > { %451 = vmatpush.bf16.msra.mxu1 %v664_v32 }
  0x3c   : > { %438 = vmatpush.bf16.msra.mxu0 %v652_v37 }
  0x3d   : > { %452 = vmatpush.bf16.msra.mxu1 %v656_v38 }
  0x40   : > { %439 = vmatpush.bf16.msra.mxu0 %v644_v43 }
  0x41   : > { %453 = vmatpush.bf16.msra.mxu1 %v648_v44 }
  0x44   : > { %440 = vmatpush.bf16.msra.mxu0 %v636_v49 }
  0x45   : > { %454 = vmatpush.bf16.msra.mxu1 %v640_v50 }
  0x47   : > { %441 = vmatmul.bf16.vlgmr.msra.gmra.mxu0 %v703_v51 }
  0x48   : > { %455 = vmatmul.bf16.vlgmr.msra.gmra.mxu1 %v703_v51 }
  0xc4   : > { %v442_v54 = vpop.f32.mrf.mxu0 }
  0xc5   : > { %v461_v55 = vadd.f32 %v442_v54, %v325_v52  ;;  %v456_v56 = vpop.f32.mrf.mxu1 }
  0xc6   : > { %v462_v57 = vadd.f32 %v456_v56, %v326_v53 }
  0xc7   : > { %465 = vst [vmem:[#allocation2 + $0x10] sm:$0xff] %v461_v55 }
  0xc8   : > { %466 = vst [vmem:[#allocation2] sm:$0xff] %v462_v57 }
  0xcc   : > { %v444_v60 = vpop.f32.mrf.mxu0  ;;  %472 = sbr.rel (%p697_p11) target bundleno = 221 (0xdd), region = 81 }
  0xcd   : > { %v463_v61 = vadd.f32 %v444_v60, %v327_v58  ;;  %v458_v62 = vpop.f32.mrf.mxu1 }
  0xce   : > { %v464_v63 = vadd.f32 %v458_v62, %v328_v59 }
  0xcf   : > { %467 = vst [vmem:[#allocation2 + $0x18] sm:$0xff] %v463_v61 }
  0xd0   : > { %468 = vst [vmem:[#allocation2 + $0x8] sm:$0xff] %v464_v63 }
  0xd1   : > { %v473_v0 = vld [vmem:[#allocation2 + $0x10] sm:$0xff]  ;;  %v477_v1 = vld [vmem:[%s945_s2] sm:$0x3] }
  0xd2   : > { %v474_v2 = vld [vmem:[#allocation2] sm:$0xff]  ;;  %v479_v3 = vperm.slane %v477_v1, 0  ;;  %v480_v4 = vperm.slane %v477_v1, 1 }
  0xd4   : > { %v483_v7 = vadd.f32 %v479_v3, %v473_v0  ;;  %v484_v8 = vadd.f32 %v480_v4, %v474_v2 }
  0xd6   : > { %v475_v5 = vld [vmem:[#allocation2 + $0x18] sm:$0xff]  ;;  %v487_v11 = vmax.f32 %v483_v7, 0.0  ;;  %v488_v12 = vmax.f32 %v484_v8, 0.0 }
  0xd7   : > { %v476_v6 = vld [vmem:[#allocation2 + $0x8] sm:$0xff]  ;;  %v485_v9 = vadd.f32 %v479_v3, %v475_v5 }
  0xd8   : > { %v486_v10 = vadd.f32 %v480_v4, %v476_v6  ;;  %491 = vst [vmem:[%s946_s3] sm:$0xff] %v487_v11 }
  0xd9   : > { %v489_v13 = vmax.f32 %v485_v9, 0.0  ;;  %492 = vst [vmem:[%s946_s3 + $0x8] sm:$0xff] %v488_v12 }
  0xda   : > { %v490_v14 = vmax.f32 %v486_v10, 0.0 }
  0xdb   : > { %493 = vst [vmem:[%s946_s3 + $0x10] sm:$0xff] %v489_v13 }
  0xdc   : > { %494 = vst [vmem:[%s946_s3 + $0x18] sm:$0xff] %v490_v14 }
  0xdd PF: > { %s13_s16 = sadd.s32 1, %s799_s16   ;;  %s947_s12 = smov %s787_s13 }
  0xde   : > { %p10_p12 = scmp.ge.s32.totalorder %s13_s16, 21   ;;  %s948_s13 = smov %s857_s20 }
  0xdf   : > { %s949_s14 = smov %s795_s15  ;;  %s950_s15 = smov %s952_s17 }
  0xe0   :  { %12 = sbr.rel (!%p10_p12) target bundleno = 3 (0x3), region = 122 }

// kernel: resnet18_forward.15
= control target key start
LH: loop header
LB: loop body
LE: loop exit
PB: predicated region body
PF: predicated region fallthrough
CT: control target
= control target key end

     0   :  { %s1964_s0 = inlined_call_operand.vmem [shape: bf16[16,2304], index: 0, kind: input, shape index: {}]   ;;  %s1965_s1 = inlined_call_operand.vmem [shape: bf16[2304,512], index: 1, kind: input, shape index: {}]   ;;  %s1966_s2 = inlined_call_operand.vmem [shape: f32[1,512], index: 2, kind: input, shape index: {}]   ;;  %s1967_s3 = inlined_call_operand.vmem [shape: f32[16,512], index: 3, kind: output, shape index: {}]  }
   0x1   :  { %1969 = sst [smem:[#allocation7_spill]] %s1964_s0 }
   0x2   :  { %1970 = sst [smem:[#allocation8_spill]] %s1965_s1 }
   0x3   :  { %s1568_s12 = smov 0   ;;  %s1570_s13 = smov 0  }
   0x4   :  { %s1572_s14 = smov 0   ;;  %s1574_s15 = smov 0  }
   0x5   :  { %s1576_s16 = smov 0   ;;  %s1578_s17 = smov 0  }
   0x6   :  { %s1580_s18 = smov 0   ;;  %s1582_s19 = smov 0  }
   0x7   :  { %s1584_s20 = smov 0   ;;  %s1586_s21 = smov 0  }
   0x8   :  { %s1588_s22 = smov 0  }
   0x9 LB: > { %s1086_s23 = sadd.s32 4294967295, %s1545_s22   ;;  %s25_s24 = sadd.s32 1, %s1537_s20  ;;  %s1545_s22 = sphi %s1588_s22, %s13_s22   ;;  %s1541_s21 = sphi %s1586_s21, %s1987_s21   ;;  %s1537_s20 = sphi %s1584_s20, %s1986_s20   ;;  %s1533_s19 = sphi %s1582_s19, %s1985_s19   ;;  %s1529_s18 = sphi %s1580_s18, %s1984_s18   ;;  %s1525_s17 = sphi %s1578_s17, %s1983_s17   ;;  %s1521_s16 = sphi %s1576_s16, %s1982_s16   ;;  %s1517_s15 = sphi %s1574_s15, %s1981_s15   ;;  %s1513_s14 = sphi %s1572_s14, %s1980_s14   ;;  %s1509_s13 = sphi %s1570_s13, %s1979_s13   ;;  %s1505_s12 = sphi %s1568_s12, %s1978_s12  }
   0xa   : > { %p26_p0 = scmp.ge.s32.totalorder %s25_s24, 6  ;;  %s28_s25 = sadd.s32 1, %s1541_s21 }
   0xb   : > { %s41_s26 = sadd.s32 1, %s1525_s17  ;;  %p48_p1 = scmp.ne.s32.totalorder %s1525_s17, %s1521_s16 }
   0xc   : > { %s1989_s24 = smov (%p26_p0, %s25_s24), 0  ;;  %s1991_s25 = smov (!%p26_p0, %s28_s25), %s1541_s21 }
   0xd   : > { %s37_s27 = ssub.s32 %s1537_s20, %s1989_s24  ;;  %p49_p2 = scmp.eq.s32.totalorder %s1545_s22, 0 }
   0xe   : > { %p30_p3 = scmp.ge.s32.totalorder %s1991_s25, 2  ;;  %p39_p4 = scmp.eq.s32.totalorder %s37_s27, 0 }
   0xf   : > { %p1635_p5 = por %p49_p2, %p48_p1  ;;  %s69_s29 = sadd.s32 1, %s1517_s15 }
  0x10   : > { %s1993_s25 = smov (%p30_p3, %s1991_s25), 0  ;;  %p76_p6 = scmp.ne.s32.totalorder %s1517_s15, %s1513_s14 }
  0x11   : > { %1972 = sst [smem:[#allocation6_spill]] %s1993_s25  ;;  %s65_s4 = ssub.s32 %s1541_s21, %s1993_s25 }
  0x12   : > { %s1643_s30 = scalar_select %p39_p4, %s1525_s17, %s41_s26  }
  0x13   : > { %s66_s5 = sor.u32 %s65_s4, %s37_s27  ;;  %p121_p7 = scmp.eq.s32.totalorder %s65_s4, 0 }
  0x14   : > { %p67_p8 = scmp.eq.s32.totalorder %s66_s5, 0  ;;  %p1649_p9 = por %p76_p6, %p49_p2 }
  0x15   : > { %s123_s7 = sadd.s32 1, %s1509_s13  ;;  %p133_p10 = scmp.ne.s32.totalorder %s1509_s13, %s1505_s12 }
  0x16   : > { %s1657_s8 = scalar_select %p67_p8, %s1517_s15, %s69_s29  }
  0x17   : > { %s1660_s9 = scalar_select %p121_p7, %s1509_s13, %s123_s7  }
  0x18   : > { %p134_p11 = scmp.eq.s32.totalorder %s1086_s23, 11  ;;  %p1089_p13 = scmp.ge.s32.totalorder %s1545_s22, 12 }
  0x1a   : > { %p1662_p12 = por %p134_p11, %p133_p10  ;;  %156 = sbr.rel (%p1089_p13) target bundleno = 102 (0x66), region = 16 }
  0x1f   : > { %159 = sbr.rel (!%p1635_p5) target bundleno = 44 (0x2c), region = 20  ;;  %s161_s11 = sand.u32 (%p1635_p5), 1, %s1525_s17  }
  0x20   : > { %s1312_s26 = smul.u32 (%p1635_p5), 12, %s1537_s20  ;;  %s1975_s0 = sld [smem:[#allocation7_spill]] (%p1635_p5) }
  0x21   : > { %s1366_s27 = smul.u32 (%p1635_p5), 24, %s161_s11 }
  0x23   : > { %s163_s23 = scalar_lea.vmem (%p1635_p5), [#allocation3], %s1366_s27 }
  0x26   : > { %s169_s5 = scalar_lea.vmem %s1975_s0, %s1312_s26 }
  0x27   : > { %v184_v0 = vld [vmem:[%s169_s5] sm:$0xff]  ;;  %v186_v1 = vld [vmem:[%s169_s5 + $0x48] sm:$0xff]  ;;  %v1093_v3 = vld [vmem:[%s169_s5 + $0x50] sm:$0xf] }
  0x28   : > { %v1091_v2 = vld [vmem:[%s169_s5 + $0x8] sm:$0xf]  ;;  %185 = vst [vmem:[%s163_s23] sm:$0xff] %v184_v0 }
  0x29   : > { %187 = vst [vmem:[%s163_s23 + $0xc] sm:$0xff] %v186_v1 }
  0x2a   : > { %1092 = vst [vmem:[%s163_s23 + $0x8] sm:$0xf] %v1091_v2 }
  0x2b   : > { %1094 = vst [vmem:[%s163_s23 + $0x14] sm:$0xf] %v1093_v3 }
  0x2c PF: > { %205 = sbr.rel (!%p1649_p9) target bundleno = 102 (0x66), region = 46  ;;  %s207_s28 = sand.u32 (%p1649_p9), 1, %s1517_s15  }
  0x2d   : > { %s1367_s7 = smul.u32 (%p1649_p9), 384, %s207_s28  ;;  %s1095_s11 = sshll.u32 (%p1649_p9), %s1541_s21, 1 }
  0x2e   : > { %s1313_s26 = smul.u32 (%p1649_p9), 192, %s1537_s20  ;;  %s1976_s1 = sld [smem:[#allocation8_spill]] (%p1649_p9) }
  0x2f   : > { %s1687_s6 = scalar_lea.vmem (%p1649_p9), [#allocation4], %s1367_s7 }
  0x30   : > { %s213_s29 = sadd.s32 (%p1649_p9), %s1313_s26, %s1095_s11 }
  0x31   : > { %s1097_s4 = sshll.u32 %s213_s29, 2 }
  0x34   : > { %s1682_s5 = scalar_lea.vmem %s1976_s1, %s1097_s4 }
  0x35   : > { %v338_v4 = vld [vmem:[%s1682_s5] sm:$0xff]  ;;  %v340_v5 = vld [vmem:[%s1682_s5 + $0x10] sm:$0xff] }
  0x36   : > { %v342_v6 = vld [vmem:[%s1682_s5 + $0x20] sm:$0xff]  ;;  %339 = vst [vmem:[%s1687_s6] sm:$0xff] %v338_v4  ;;  %v344_v7 = vld [vmem:[%s1682_s5 + $0x30] sm:$0xff] }
  0x37   : > { %341 = vst [vmem:[%s1687_s6 + $0x8] sm:$0xff] %v340_v5  ;;  %v346_v8 = vld [vmem:[%s1682_s5 + $0x40] sm:$0xff]  ;;  %v348_v9 = vld [vmem:[%s1682_s5 + $0x50] sm:$0xff] }
  0x38   : > { %343 = vst [vmem:[%s1687_s6 + $0x10] sm:$0xff] %v342_v6  ;;  %v350_v10 = vld [vmem:[%s1682_s5 + $0x60] sm:$0xff]  ;;  %v352_v11 = vld [vmem:[%s1682_s5 + $0x70] sm:$0xff] }
  0x39   : > { %345 = vst [vmem:[%s1687_s6 + $0x18] sm:$0xff] %v344_v7  ;;  %v354_v12 = vld [vmem:[%s1682_s5 + $0x80] sm:$0xff]  ;;  %v356_v13 = vld [vmem:[%s1682_s5 + $0x90] sm:$0xff] }
  0x3a   : > { %347 = vst [vmem:[%s1687_s6 + $0x20] sm:$0xff] %v346_v8  ;;  %v358_v14 = vld [vmem:[%s1682_s5 + $0xa0] sm:$0xff]  ;;  %v360_v15 = vld [vmem:[%s1682_s5 + $0xb0] sm:$0xff] }
  0x3b   : > { %349 = vst [vmem:[%s1687_s6 + $0x28] sm:$0xff] %v348_v9  ;;  %v362_v16 = vld [vmem:[%s1682_s5 + $0xc0] sm:$0xff]  ;;  %v364_v17 = vld [vmem:[%s1682_s5 + $0xd0] sm:$0xff] }
  0x3c   : > { %351 = vst [vmem:[%s1687_s6 + $0x30] sm:$0xff] %v350_v10  ;;  %v366_v18 = vld [vmem:[%s1682_s5 + $0xe0] sm:$0xff]  ;;  %v368_v19 = vld [vmem:[%s1682_s5 + $0xf0] sm:$0xff] }
  0x3d   : > { %353 = vst [vmem:[%s1687_s6 + $0x38] sm:$0xff] %v352_v11  ;;  %v370_v20 = vld [vmem:[%s1682_s5 + $0x100] sm:$0xff]  ;;  %v372_v21 = vld [vmem:[%s1682_s5 + $0x110] sm:$0xff] }
  0x3e   : > { %355 = vst [vmem:[%s1687_s6 + $0x40] sm:$0xff] %v354_v12  ;;  %v374_v22 = vld [vmem:[%s1682_s5 + $0x120] sm:$0xff]  ;;  %v376_v23 = vld [vmem:[%s1682_s5 + $0x130] sm:$0xff] }
  0x3f   : > { %357 = vst [vmem:[%s1687_s6 + $0x48] sm:$0xff] %v356_v13  ;;  %v378_v24 = vld [vmem:[%s1682_s5 + $0x140] sm:$0xff]  ;;  %v380_v25 = vld [vmem:[%s1682_s5 + $0x150] sm:$0xff] }
  0x40   : > { %359 = vst [vmem:[%s1687_s6 + $0x50] sm:$0xff] %v358_v14  ;;  %v382_v26 = vld [vmem:[%s1682_s5 + $0x160] sm:$0xff]  ;;  %v384_v27 = vld [vmem:[%s1682_s5 + $0x170] sm:$0xff] }
  0x41   : > { %361 = vst [vmem:[%s1687_s6 + $0x58] sm:$0xff] %v360_v15  ;;  %v386_v28 = vld [vmem:[%s1682_s5 + $0x180] sm:$0xff]  ;;  %v388_v29 = vld [vmem:[%s1682_s5 + $0x190] sm:$0xff] }
  0x42   : > { %363 = vst [vmem:[%s1687_s6 + $0x60] sm:$0xff] %v362_v16  ;;  %v390_v30 = vld [vmem:[%s1682_s5 + $0x1a0] sm:$0xff]  ;;  %v392_v31 = vld [vmem:[%s1682_s5 + $0x1b0] sm:$0xff] }
  0x43   : > { %365 = vst [vmem:[%s1687_s6 + $0x68] sm:$0xff] %v364_v17  ;;  %v394_v32 = vld [vmem:[%s1682_s5 + $0x1c0] sm:$0xff]  ;;  %v396_v33 = vld [vmem:[%s1682_s5 + $0x1d0] sm:$0xff] }
  0x44   : > { %367 = vst [vmem:[%s1687_s6 + $0x70] sm:$0xff] %v366_v18  ;;  %v398_v34 = vld [vmem:[%s1682_s5 + $0x1e0] sm:$0xff]  ;;  %v400_v35 = vld [vmem:[%s1682_s5 + $0x1f0] sm:$0xff] }
  0x45   : > { %369 = vst [vmem:[%s1687_s6 + $0x78] sm:$0xff] %v368_v19  ;;  %v402_v36 = vld [vmem:[%s1682_s5 + $0x200] sm:$0xff]  ;;  %v404_v37 = vld [vmem:[%s1682_s5 + $0x210] sm:$0xff] }
  0x46   : > { %371 = vst [vmem:[%s1687_s6 + $0x80] sm:$0xff] %v370_v20  ;;  %v406_v38 = vld [vmem:[%s1682_s5 + $0x220] sm:$0xff]  ;;  %v408_v39 = vld [vmem:[%s1682_s5 + $0x230] sm:$0xff] }
  0x47   : > { %373 = vst [vmem:[%s1687_s6 + $0x88] sm:$0xff] %v372_v21  ;;  %v410_v40 = vld [vmem:[%s1682_s5 + $0x240] sm:$0xff]  ;;  %v412_v41 = vld [vmem:[%s1682_s5 + $0x250] sm:$0xff] }
  0x48   : > { %375 = vst [vmem:[%s1687_s6 + $0x90] sm:$0xff] %v374_v22  ;;  %v414_v42 = vld [vmem:[%s1682_s5 + $0x260] sm:$0xff]  ;;  %v416_v43 = vld [vmem:[%s1682_s5 + $0x270] sm:$0xff] }
  0x49   : > { %377 = vst [vmem:[%s1687_s6 + $0x98] sm:$0xff] %v376_v23  ;;  %v418_v44 = vld [vmem:[%s1682_s5 + $0x280] sm:$0xff]  ;;  %v420_v45 = vld [vmem:[%s1682_s5 + $0x290] sm:$0xff] }
  0x4a   : > { %379 = vst [vmem:[%s1687_s6 + $0xa0] sm:$0xff] %v378_v24  ;;  %v422_v46 = vld [vmem:[%s1682_s5 + $0x2a0] sm:$0xff]  ;;  %v424_v47 = vld [vmem:[%s1682_s5 + $0x2b0] sm:$0xff] }
  0x4b   : > { %381 = vst [vmem:[%s1687_s6 + $0xa8] sm:$0xff] %v380_v25  ;;  %v426_v48 = vld [vmem:[%s1682_s5 + $0x2c0] sm:$0xff]  ;;  %v428_v49 = vld [vmem:[%s1682_s5 + $0x2d0] sm:$0xff] }
  0x4c   : > { %383 = vst [vmem:[%s1687_s6 + $0xb0] sm:$0xff] %v382_v26  ;;  %v430_v50 = vld [vmem:[%s1682_s5 + $0x2e0] sm:$0xff]  ;;  %v432_v51 = vld [vmem:[%s1682_s5 + $0x2f0] sm:$0xff] }
  0x4d   : > { %385 = vst [vmem:[%s1687_s6 + $0xb8] sm:$0xff] %v384_v27 }
  0x4e   : > { %387 = vst [vmem:[%s1687_s6 + $0xc0] sm:$0xff] %v386_v28 }
  0x4f   : > { %389 = vst [vmem:[%s1687_s6 + $0xc8] sm:$0xff] %v388_v29 }
  0x50   : > { %391 = vst [vmem:[%s1687_s6 + $0xd0] sm:$0xff] %v390_v30 }
  0x51   : > { %393 = vst [vmem:[%s1687_s6 + $0xd8] sm:$0xff] %v392_v31 }
  0x52   : > { %395 = vst [vmem:[%s1687_s6 + $0xe0] sm:$0xff] %v394_v32 }
  0x53   : > { %397 = vst [vmem:[%s1687_s6 + $0xe8] sm:$0xff] %v396_v33 }
  0x54   : > { %399 = vst [vmem:[%s1687_s6 + $0xf0] sm:$0xff] %v398_v34 }
  0x55   : > { %401 = vst [vmem:[%s1687_s6 + $0xf8] sm:$0xff] %v400_v35 }
  0x56   : > { %403 = vst [vmem:[%s1687_s6 + $0x100] sm:$0xff] %v402_v36 }
  0x57   : > { %405 = vst [vmem:[%s1687_s6 + $0x108] sm:$0xff] %v404_v37 }
  0x58   : > { %407 = vst [vmem:[%s1687_s6 + $0x110] sm:$0xff] %v406_v38 }
  0x59   : > { %409 = vst [vmem:[%s1687_s6 + $0x118] sm:$0xff] %v408_v39 }
  0x5a   : > { %411 = vst [vmem:[%s1687_s6 + $0x120] sm:$0xff] %v410_v40 }
  0x5b   : > { %413 = vst [vmem:[%s1687_s6 + $0x128] sm:$0xff] %v412_v41 }
  0x5c   : > { %415 = vst [vmem:[%s1687_s6 + $0x130] sm:$0xff] %v414_v42 }
  0x5d   : > { %417 = vst [vmem:[%s1687_s6 + $0x138] sm:$0xff] %v416_v43 }
  0x5e   : > { %419 = vst [vmem:[%s1687_s6 + $0x140] sm:$0xff] %v418_v44 }
  0x5f   : > { %421 = vst [vmem:[%s1687_s6 + $0x148] sm:$0xff] %v420_v45 }
  0x60   : > { %423 = vst [vmem:[%s1687_s6 + $0x150] sm:$0xff] %v422_v46 }
  0x61   : > { %425 = vst [vmem:[%s1687_s6 + $0x158] sm:$0xff] %v424_v47 }
  0x62   : > { %427 = vst [vmem:[%s1687_s6 + $0x160] sm:$0xff] %v426_v48 }
  0x63   : > { %429 = vst [vmem:[%s1687_s6 + $0x168] sm:$0xff] %v428_v49 }
  0x64   : > { %431 = vst [vmem:[%s1687_s6 + $0x170] sm:$0xff] %v430_v50 }
  0x65   : > { %433 = vst [vmem:[%s1687_s6 + $0x178] sm:$0xff] %v432_v51 }
  0x66 PF: > { %p1098_p0 = scmp.ge.s32.totalorder %s1545_s22, 1  ;;  %p446_p1 = scmp.lt.s32.totalorder %s1545_s22, 13 }
  0x68   : > { %p447_p2 = pnand %p1098_p0, %p446_p1 }
  0x69   : > { %s453_s0 = sand.u32 (!%p447_p2), 1, %s1521_s16   ;;  %s460_s23 = sand.u32 (!%p447_p2), 1, %s1513_s14  }
  0x6a   : > { %450 = sbr.rel (%p447_p2) target bundleno = 350 (0x15e), region = 88  ;;  %s487_s7 = sand.u32 (!%p447_p2), 1, %s1505_s12  }
  0x6b   : > { %s1368_s28 = smul.u32 (!%p447_p2), 24, %s453_s0  ;;  %s1099_s26 = sshll.u32 (!%p447_p2), %s487_s7, 5 }
  0x6c   : > { %s1369_s11 = smul.u32 (!%p447_p2), 384, %s460_s23  ;;  %s1100_s29 = sshll.u32 (!%p447_p2), %s1533_s19, 1 }
  0x6d   : > { %p495_p3 = scmp.lt.s32.totalorder (!%p447_p2), %s1100_s29, 3  ;;  %s1794_s6 = scalar_lea.vmem (!%p447_p2), [#allocation3], %s1368_s28 }
  0x6e   : > { %s1796_s1 = scalar_lea.vmem (!%p447_p2), [#allocation4], %s1369_s11  ;;  %s1798_s25 = scalar_lea.vmem (!%p447_p2), [#allocation5], %s1099_s26 }
  0x6f   : > { %s1995_s29 = smov (!%p495_p3, %s1100_s29), 3  ;;  %p1101_p4 = scmp.ne.s32.totalorder %s1529_s18, 0 }
  0x70   : > { %s497_s5 = scalar_lea.vmem %s1966_s2, %s1995_s29 }
  0x71   : > { %504 = sbr.rel (%p1101_p4) target bundleno = 123 (0x7b), region = 100 }
  0x76   : > { %v1547_v52 = vmov 0.0  }
  0x77   : > { %505 = vst [vmem:[#allocation2 + $0x10] sm:$0xff] %v1547_v52 }
  0x78   : > { %506 = vst [vmem:[#allocation2] sm:$0xff] %v1547_v52 }
  0x79   : > { %507 = vst [vmem:[#allocation2 + $0x18] sm:$0xff] %v1547_v52 }
  0x7a   : > { %508 = vst [vmem:[#allocation2 + $0x8] sm:$0xff] %v1547_v52 }
  0x7b PF: > { %v1172_v53 = vld [vmem:[%s1796_s1 + $0x70] sm:$0xf]  ;;  %v1332_v54 = vld [vmem:[%s1796_s1 + $0x74] sm:$0xf0]  ;;  %v1164_v62 = vld [vmem:[%s1796_s1 + $0x60] sm:$0xf] }
  0x7c   : > { %v1236_v55 = vld [vmem:[%s1796_s1 + $0xf0] sm:$0xf]  ;;  %v1173_v56 = vor.u32 %v1332_v54, %v1172_v53  ;;  %v1348_v57 = vld [vmem:[%s1796_s1 + $0xf4] sm:$0xf0]  ;;  %v1330_v63 = vld [vmem:[%s1796_s1 + $0x64] sm:$0xf0] }
  0x7d   : > { %v1300_v58 = vld [vmem:[%s1796_s1 + $0x170] sm:$0xf]  ;;  %v1364_v59 = vld [vmem:[%s1796_s1 + $0x174] sm:$0xf0]  ;;  %v1237_v60 = vor.u32 %v1348_v57, %v1236_v55  ;;  %v1228_v0 = vld [vmem:[%s1796_s1 + $0xe0] sm:$0xf]  ;;  %v1165_v1 = vor.u32 %v1330_v63, %v1164_v62 }
  0x7e   : > { %v1301_v61 = vor.u32 %v1364_v59, %v1300_v58  ;;  %821 = vmatpush.bf16.msra.mxu0 %v1173_v56  ;;  %v1346_v2 = vld [vmem:[%s1796_s1 + $0xe4] sm:$0xf0]  ;;  %v1292_v3 = vld [vmem:[%s1796_s1 + $0x160] sm:$0xf]  ;;  %v1156_v7 = vld [vmem:[%s1796_s1 + $0x50] sm:$0xf] }
  0x7f   : > { %v1362_v4 = vld [vmem:[%s1796_s1 + $0x164] sm:$0xf0]  ;;  %835 = vmatpush.bf16.msra.mxu1 %v1237_v60  ;;  %v1229_v5 = vor.u32 %v1346_v2, %v1228_v0  ;;  %v1328_v8 = vld [vmem:[%s1796_s1 + $0x54] sm:$0xf0]  ;;  %v1220_v9 = vld [vmem:[%s1796_s1 + $0xd0] sm:$0xf] }
  0x80   : > { %849 = vmatpush.bf16.msra.mxu2 %v1301_v61  ;;  %v1293_v6 = vor.u32 %v1362_v4, %v1292_v3  ;;  %v1344_v10 = vld [vmem:[%s1796_s1 + $0xd4] sm:$0xf0]  ;;  %v1284_v11 = vld [vmem:[%s1796_s1 + $0x150] sm:$0xf]  ;;  %v1157_v13 = vor.u32 %v1328_v8, %v1156_v7  ;;  %v1148_v14 = vld [vmem:[%s1796_s1 + $0x40] sm:$0xf] }
  0x81   : > { %v1360_v12 = vld [vmem:[%s1796_s1 + $0x154] sm:$0xf0]  ;;  %v1326_v15 = vld [vmem:[%s1796_s1 + $0x44] sm:$0xf0]  ;;  %v1221_v16 = vor.u32 %v1344_v10, %v1220_v9  ;;  %v1212_v18 = vld [vmem:[%s1796_s1 + $0xc0] sm:$0xf] }
  0x82   : > { %822 = vmatpush.bf16.msra.mxu0 %v1165_v1  ;;  %v1285_v17 = vor.u32 %v1360_v12, %v1284_v11  ;;  %v1331_v19 = vld [vmem:[%s1796_s1 + $0x74] sm:$0xf]  ;;  %v1174_v20 = vld [vmem:[%s1796_s1 + $0x78] sm:$0xf0]  ;;  %v1342_v21 = vld [vmem:[%s1796_s1 + $0xc4] sm:$0xf0]  ;;  %v1149_v26 = vor.u32 %v1326_v15, %v1148_v14 }
  0x83   : > { %836 = vmatpush.bf16.msra.mxu1 %v1229_v5  ;;  %v1276_v22 = vld [vmem:[%s1796_s1 + $0x140] sm:$0xf]  ;;  %v1358_v23 = vld [vmem:[%s1796_s1 + $0x144] sm:$0xf0]  ;;  %v1177_v24 = vor.u32 %v1331_v19, %v1174_v20  ;;  %v1329_v25 = vld [vmem:[%s1796_s1 + $0x64] sm:$0xf]  ;;  %v1213_v30 = vor.u32 %v1342_v21, %v1212_v18 }
  0x84   : > { %850 = vmatpush.bf16.msra.mxu2 %v1293_v6  ;;  %v1140_v27 = vld [vmem:[%s1796_s1 + $0x30] sm:$0xf]  ;;  %v1324_v28 = vld [vmem:[%s1796_s1 + $0x34] sm:$0xf0]  ;;  %v1166_v29 = vld [vmem:[%s1796_s1 + $0x68] sm:$0xf0]  ;;  %v1277_v31 = vor.u32 %v1358_v23, %v1276_v22 }
  0x85   : > { %863 = vmatpush.bf16.msra.mxu3 %v1177_v24  ;;  %v1204_v32 = vld [vmem:[%s1796_s1 + $0xb0] sm:$0xf]  ;;  %v1340_v33 = vld [vmem:[%s1796_s1 + $0xb4] sm:$0xf0]  ;;  %v1169_v35 = vor.u32 %v1329_v25, %v1166_v29  ;;  %v1327_v37 = vld [vmem:[%s1796_s1 + $0x54] sm:$0xf]  ;;  %v1141_v39 = vor.u32 %v1324_v28, %v1140_v27 }
  0x86   : > { %823 = vmatpush.bf16.msra.mxu0 %v1157_v13  ;;  %v1268_v34 = vld [vmem:[%s1796_s1 + $0x130] sm:$0xf]  ;;  %v1356_v36 = vld [vmem:[%s1796_s1 + $0x134] sm:$0xf0]  ;;  %v1158_v38 = vld [vmem:[%s1796_s1 + $0x58] sm:$0xf0]  ;;  %v1205_v43 = vor.u32 %v1340_v33, %v1204_v32 }
  0x87   : > { %837 = vmatpush.bf16.msra.mxu1 %v1221_v16  ;;  %v1132_v40 = vld [vmem:[%s1796_s1 + $0x20] sm:$0xf]  ;;  %v1322_v41 = vld [vmem:[%s1796_s1 + $0x24] sm:$0xf0]  ;;  %v1161_v42 = vor.u32 %v1327_v37, %v1158_v38  ;;  %v1269_v44 = vor.u32 %v1356_v36, %v1268_v34  ;;  %v1325_v46 = vld [vmem:[%s1796_s1 + $0x44] sm:$0xf] }
  0x88   : > { %851 = vmatpush.bf16.msra.mxu2 %v1285_v17  ;;  %v1196_v45 = vld [vmem:[%s1796_s1 + $0xa0] sm:$0xf]  ;;  %v1150_v47 = vld [vmem:[%s1796_s1 + $0x48] sm:$0xf0]  ;;  %v1338_v48 = vld [vmem:[%s1796_s1 + $0xa4] sm:$0xf0]  ;;  %v1133_v51 = vor.u32 %v1322_v41, %v1132_v40 }
  0x89   : > { %864 = vmatpush.bf16.msra.mxu3 %v1169_v35  ;;  %v1260_v49 = vld [vmem:[%s1796_s1 + $0x120] sm:$0xf]  ;;  %v1354_v50 = vld [vmem:[%s1796_s1 + $0x124] sm:$0xf0]  ;;  %v1124_v52 = vld [vmem:[%s1796_s1 + $0x10] sm:$0xf]  ;;  %v1153_v54 = vor.u32 %v1325_v46, %v1150_v47  ;;  %v1197_v55 = vor.u32 %v1338_v48, %v1196_v45 }
  0x8a   : > { %824 = vmatpush.bf16.msra.mxu0 %v1149_v26  ;;  %v1320_v53 = vld [vmem:[%s1796_s1 + $0x14] sm:$0xf0]  ;;  %v1261_v56 = vor.u32 %v1354_v50, %v1260_v49  ;;  %v1188_v57 = vld [vmem:[%s1796_s1 + $0x90] sm:$0xf]  ;;  %v1323_v58 = vld [vmem:[%s1796_s1 + $0x34] sm:$0xf] }
  0x8b   : > { %838 = vmatpush.bf16.msra.mxu1 %v1213_v30  ;;  %v1142_v59 = vld [vmem:[%s1796_s1 + $0x38] sm:$0xf0]  ;;  %v1336_v60 = vld [vmem:[%s1796_s1 + $0x94] sm:$0xf0]  ;;  %v1252_v61 = vld [vmem:[%s1796_s1 + $0x110] sm:$0xf]  ;;  %v1125_v63 = vor.u32 %v1320_v53, %v1124_v52 }
  0x8c   : > { %852 = vmatpush.bf16.msra.mxu2 %v1277_v31  ;;  %v1352_v62 = vld [vmem:[%s1796_s1 + $0x114] sm:$0xf0]  ;;  %v1116_v0 = vld [vmem:[%s1796_s1] sm:$0xf]  ;;  %v1318_v1 = vld [vmem:[%s1796_s1 + $0x4] sm:$0xf0]  ;;  %v1145_v3 = vor.u32 %v1323_v58, %v1142_v59  ;;  %v1189_v4 = vor.u32 %v1336_v60, %v1188_v57 }
  0x8d   : > { %865 = vmatpush.bf16.msra.mxu3 %v1161_v42  ;;  %v1180_v2 = vld [vmem:[%s1796_s1 + $0x80] sm:$0xf]  ;;  %v1253_v5 = vor.u32 %v1352_v62, %v1252_v61  ;;  %v1334_v6 = vld [vmem:[%s1796_s1 + $0x84] sm:$0xf0]  ;;  %v1321_v7 = vld [vmem:[%s1796_s1 + $0x24] sm:$0xf]  ;;  %v1117_v15 = vor.u32 %v1318_v1, %v1116_v0 }
  0x8e   : > { %825 = vmatpush.bf16.msra.mxu0 %v1141_v39  ;;  %v1134_v8 = vld [vmem:[%s1796_s1 + $0x28] sm:$0xf0]  ;;  %v1244_v9 = vld [vmem:[%s1796_s1 + $0x100] sm:$0xf]  ;;  %v1350_v10 = vld [vmem:[%s1796_s1 + $0x104] sm:$0xf0]  ;;  %v1181_v20 = vor.u32 %v1334_v6, %v1180_v2 }
  0x8f   : > { %839 = vmatpush.bf16.msra.mxu1 %v1205_v43  ;;  %v1347_v11 = vld [vmem:[%s1796_s1 + $0xf4] sm:$0xf]  ;;  %v1238_v12 = vld [vmem:[%s1796_s1 + $0xf8] sm:$0xf0]  ;;  %v1112_v16 = vld [vmem:[%s1794_s6 + $0x8] sm:$0xf]  ;;  %v1137_v17 = vor.u32 %v1321_v7, %v1134_v8  ;;  %v1245_v21 = vor.u32 %v1350_v10, %v1244_v9 }
  0x90   : > { %853 = vmatpush.bf16.msra.mxu2 %v1269_v44  ;;  %v1363_v13 = vld [vmem:[%s1796_s1 + $0x174] sm:$0xf]  ;;  %v1302_v14 = vld [vmem:[%s1796_s1 + $0x178] sm:$0xf0]  ;;  %v1104_v18 = vld [vmem:[%s1794_s6] sm:$0xf]  ;;  %v1241_v25 = vor.u32 %v1347_v11, %v1238_v12 }
  0x91   : > { %866 = vmatpush.bf16.msra.mxu3 %v1153_v54  ;;  %v1315_v19 = vld [vmem:[%s1794_s6 + $0x8] sm:$0xf0]  ;;  %v1316_v22 = vld [vmem:[%s1794_s6 + $0x10] sm:$0xf0]  ;;  %v1314_v23 = vld [vmem:[%s1794_s6 + $0x4] sm:$0xf]  ;;  %v1305_v26 = vor.u32 %v1363_v13, %v1302_v14 }
  0x92   : > { %826 = vmatpush.bf16.msra.mxu0 %v1133_v51  ;;  %v1106_v24 = vld [vmem:[%s1794_s6 + $0xc] sm:$0xf0]  ;;  %v1345_v27 = vld [vmem:[%s1796_s1 + $0xe4] sm:$0xf]  ;;  %v1319_v28 = vld [vmem:[%s1796_s1 + $0x14] sm:$0xf]  ;;  %v1105_v33 = vor.u32 %v1315_v19, %v1104_v18  ;;  %v1877_v34 = vor.u32 %v1316_v22, %v1112_v16 }
  0x93   : > { %840 = vmatpush.bf16.msra.mxu1 %v1197_v55  ;;  %v1126_v29 = vld [vmem:[%s1796_s1 + $0x18] sm:$0xf0]  ;;  %v1230_v30 = vld [vmem:[%s1796_s1 + $0xe8] sm:$0xf0]  ;;  %v1361_v31 = vld [vmem:[%s1796_s1 + $0x164] sm:$0xf]  ;;  %v1879_v35 = vor.u32 %v1314_v23, %v1106_v24 }
  0x94   : > { %854 = vmatpush.bf16.msra.mxu2 %v1261_v56  ;;  %v1294_v32 = vld [vmem:[%s1796_s1 + $0x168] sm:$0xf0]  ;;  %v1129_v36 = vor.u32 %v1319_v28, %v1126_v29  ;;  %v1233_v37 = vor.u32 %v1345_v27, %v1230_v30  ;;  %v1343_v39 = vld [vmem:[%s1796_s1 + $0xd4] sm:$0xf]  ;;  %v1317_v40 = vld [vmem:[%s1796_s1 + $0x4] sm:$0xf] }
  0x95   : > { %867 = vmatpush.bf16.msra.mxu3 %v1145_v3  ;;  %v1297_v38 = vor.u32 %v1361_v31, %v1294_v32  ;;  %v1118_v41 = vld [vmem:[%s1796_s1 + $0x8] sm:$0xf0]  ;;  %v1222_v42 = vld [vmem:[%s1796_s1 + $0xd8] sm:$0xf0]  ;;  %v1359_v43 = vld [vmem:[%s1796_s1 + $0x154] sm:$0xf] }
  0x96   : > { %827 = vmatpush.bf16.msra.mxu0 %v1125_v63  ;;  %v1286_v44 = vld [vmem:[%s1796_s1 + $0x158] sm:$0xf0]  ;;  %v1121_v45 = vor.u32 %v1317_v40, %v1118_v41  ;;  %v1225_v46 = vor.u32 %v1343_v39, %v1222_v42  ;;  %v1341_v48 = vld [vmem:[%s1796_s1 + $0xc4] sm:$0xf]  ;;  %v1214_v49 = vld [vmem:[%s1796_s1 + $0xc8] sm:$0xf0] }
  0x97   : > { %841 = vmatpush.bf16.msra.mxu1 %v1189_v4  ;;  %v1289_v47 = vor.u32 %v1359_v43, %v1286_v44  ;;  %v1357_v50 = vld [vmem:[%s1796_s1 + $0x144] sm:$0xf]  ;;  %v1278_v51 = vld [vmem:[%s1796_s1 + $0x148] sm:$0xf0]  ;;  %v1217_v52 = vor.u32 %v1341_v48, %v1214_v49  ;;  %v1339_v54 = vld [vmem:[%s1796_s1 + $0xb4] sm:$0xf] }
  0x98   : > { %855 = vmatpush.bf16.msra.mxu2 %v1253_v5  ;;  %v1281_v53 = vor.u32 %v1357_v50, %v1278_v51  ;;  %v1206_v55 = vld [vmem:[%s1796_s1 + $0xb8] sm:$0xf0]  ;;  %v1355_v56 = vld [vmem:[%s1796_s1 + $0x134] sm:$0xf]  ;;  %v1337_v60 = vld [vmem:[%s1796_s1 + $0xa4] sm:$0xf] }
  0x99   : > { %868 = vmatpush.bf16.msra.mxu3 %v1137_v17  ;;  %v1270_v57 = vld [vmem:[%s1796_s1 + $0x138] sm:$0xf0]  ;;  %v1209_v58 = vor.u32 %v1339_v54, %v1206_v55  ;;  %v1198_v61 = vld [vmem:[%s1796_s1 + $0xa8] sm:$0xf0]  ;;  %v1353_v62 = vld [vmem:[%s1796_s1 + $0x124] sm:$0xf] }
  0x9a   : > { %828 = vmatpush.bf16.msra.mxu0 %v1117_v15  ;;  %v1273_v59 = vor.u32 %v1355_v56, %v1270_v57  ;;  %v1262_v63 = vld [vmem:[%s1796_s1 + $0x128] sm:$0xf0]  ;;  %v1201_v0 = vor.u32 %v1337_v60, %v1198_v61  ;;  %v1335_v2 = vld [vmem:[%s1796_s1 + $0x94] sm:$0xf]  ;;  %v1190_v3 = vld [vmem:[%s1796_s1 + $0x98] sm:$0xf0] }
  0x9b   : > { %842 = vmatpush.bf16.msra.mxu1 %v1181_v20  ;;  %v1265_v1 = vor.u32 %v1353_v62, %v1262_v63  ;;  %v1351_v4 = vld [vmem:[%s1796_s1 + $0x114] sm:$0xf]  ;;  %v1254_v5 = vld [vmem:[%s1796_s1 + $0x118] sm:$0xf0]  ;;  %v1193_v6 = vor.u32 %v1335_v2, %v1190_v3  ;;  %v1333_v8 = vld [vmem:[%s1796_s1 + $0x84] sm:$0xf] }
  0x9c   : > { %856 = vmatpush.bf16.msra.mxu2 %v1245_v21  ;;  %v1257_v7 = vor.u32 %v1351_v4, %v1254_v5  ;;  %v1182_v9 = vld [vmem:[%s1796_s1 + $0x88] sm:$0xf0]  ;;  %v1349_v10 = vld [vmem:[%s1796_s1 + $0x104] sm:$0xf]  ;;  %v510_v32 = vld [vmem:[#allocation2] sm:$0xff]  ;;  %p1306_p5 = scmp.ne.s32.totalorder %s1529_s18, 5 }
  0x9d   : > { %829 = vmatmul.bf16.vlgmr.msra.gmra.mxu0 %v1105_v33  ;;  %869 = vmatpush.bf16.msra.mxu3 %v1129_v36  ;;  %v1246_v11 = vld [vmem:[%s1796_s1 + $0x108] sm:$0xf0]  ;;  %v1185_v12 = vor.u32 %v1333_v8, %v1182_v9  ;;  %v509_v17 = vld [vmem:[#allocation2 + $0x10] sm:$0xff] }
  0x9e   : > { %877 = vmatpush.bf16.msrb.mxu0 %v1241_v25  ;;  %843 = vmatmul.bf16.vlgmr.msra.gmra.mxu1 %v1879_v35  ;;  %v1249_v13 = vor.u32 %v1349_v10, %v1246_v11  ;;  %v511_v24 = vld [vmem:[#allocation2 + $0x18] sm:$0xff] }
  0x9f   : > { %891 = vmatpush.bf16.msrb.mxu1 %v1305_v26  ;;  %857 = vmatmul.bf16.vlgmr.msra.gmra.mxu2 %v1877_v34 }
  0xa1   : > { %870 = vmatpush.bf16.msra.mxu3 %v1121_v45 }
  0xa2   : > { %878 = vmatpush.bf16.msrb.mxu0 %v1233_v37 }
  0xa3   : > { %892 = vmatpush.bf16.msrb.mxu1 %v1297_v38  ;;  %v512_v38 = vld [vmem:[#allocation2 + $0x8] sm:$0xff] }
  0xa4   : > { %871 = vmatmul.bf16.vlgmr.msra.gmra.mxu3 %v1105_v33 }
  0xa6   : > { %879 = vmatpush.bf16.msrb.mxu0 %v1225_v46 }
  0xa7   : > { %893 = vmatpush.bf16.msrb.mxu1 %v1289_v47 }
  0xaa   : > { %880 = vmatpush.bf16.msrb.mxu0 %v1217_v52 }
  0xab   : > { %894 = vmatpush.bf16.msrb.mxu1 %v1281_v53 }
  0xae   : > { %881 = vmatpush.bf16.msrb.mxu0 %v1209_v58 }
  0xaf   : > { %895 = vmatpush.bf16.msrb.mxu1 %v1273_v59 }
  0xb2   : > { %882 = vmatpush.bf16.msrb.mxu0 %v1201_v0 }
  0xb3   : > { %896 = vmatpush.bf16.msrb.mxu1 %v1265_v1 }
  0xb6   : > { %883 = vmatpush.bf16.msrb.mxu0 %v1193_v6 }
  0xb7   : > { %897 = vmatpush.bf16.msrb.mxu1 %v1257_v7 }
  0xba   : > { %884 = vmatpush.bf16.msrb.mxu0 %v1185_v12 }
  0xbb   : > { %898 = vmatpush.bf16.msrb.mxu1 %v1249_v13 }
  0xbd   : > { %885 = vmatmul.bf16.vlgmr.msrb.gmra.mxu0 %v1879_v35 }
  0xbe   : > { %899 = vmatmul.bf16.vlgmr.msrb.gmra.mxu1 %v1877_v34 }
 0x11a   : > { %v830_v14 = vpop.f32.mrf.mxu0 }
 0x11b   : > { %v844_v15 = vpop.f32.mrf.mxu1 }
 0x11c   : > { %v845_v16 = vadd.f32 %v844_v15, %v830_v14 }
 0x122   : > { %v858_v18 = vpop.f32.mrf.mxu2  ;;  %v832_v20 = vpop.f32.mrf.mxu0 }
 0x123   : > { %v859_v19 = vadd.f32 %v858_v18, %v845_v16  ;;  %v846_v21 = vpop.f32.mrf.mxu1 }
 0x124   : > { %v847_v23 = vadd.f32 %v846_v21, %v832_v20 }
 0x125   : > { %v905_v22 = vadd.f32 %v859_v19, %v509_v17 }
 0x127   : > { %909 = vst [vmem:[#allocation2 + $0x10] sm:$0xff] %v905_v22  ;;  %v872_v28 = vpop.f32.mrf.mxu3 }
 0x12a   : > { %v860_v25 = vpop.f32.mrf.mxu2 }
 0x12b   : > { %v861_v26 = vadd.f32 %v860_v25, %v847_v23 }
 0x12d   : > { %v907_v27 = vadd.f32 %v861_v26, %v511_v24 }
 0x12f   : > { %911 = vst [vmem:[#allocation2 + $0x18] sm:$0xff] %v907_v27  ;;  %v874_v35 = vpop.f32.mrf.mxu3 }
 0x13a   : > { %v886_v29 = vpop.f32.mrf.mxu0 }
 0x13b   : > { %v900_v30 = vpop.f32.mrf.mxu1  ;;  %v887_v31 = vadd.f32 %v886_v29, %v872_v28 }
 0x13d   : > { %v901_v33 = vadd.f32 %v900_v30, %v887_v31 }
 0x13f   : > { %v906_v34 = vadd.f32 %v901_v33, %v510_v32 }
 0x141   : > { %910 = vst [vmem:[#allocation2] sm:$0xff] %v906_v34 }
 0x142   : > { %v888_v36 = vpop.f32.mrf.mxu0 }
 0x143   : > { %v889_v37 = vadd.f32 %v888_v36, %v874_v35  ;;  %v902_v39 = vpop.f32.mrf.mxu1 }
 0x145   : > { %v903_v40 = vadd.f32 %v902_v39, %v889_v37  ;;  %916 = sbr.rel (%p1306_p5) target bundleno = 342 (0x156), region = 104 }
 0x147   : > { %v908_v41 = vadd.f32 %v903_v40, %v512_v38 }
 0x149   : > { %912 = vst [vmem:[#allocation2 + $0x8] sm:$0xff] %v908_v41 }
 0x14a   : > { %v917_v42 = vld [vmem:[#allocation2 + $0x10] sm:$0xff]  ;;  %v921_v43 = vld [vmem:[%s497_s5] sm:$0x3]  ;;  %v919_v47 = vld [vmem:[#allocation2 + $0x18] sm:$0xff] }
 0x14b   : > { %v918_v44 = vld [vmem:[#allocation2] sm:$0xff]  ;;  %v923_v45 = vperm.slane %v921_v43, 0  ;;  %v924_v46 = vperm.slane %v921_v43, 1 }
 0x14d   : > { %v927_v49 = vadd.f32 %v923_v45, %v917_v42  ;;  %v928_v50 = vadd.f32 %v924_v46, %v918_v44  ;;  %v929_v51 = vadd.f32 %v923_v45, %v919_v47 }
 0x14f   : > { %v931_v53 = vmax.f32 %v927_v49, 0.0  ;;  %v932_v54 = vmax.f32 %v928_v50, 0.0  ;;  %v933_v55 = vmax.f32 %v929_v51, 0.0 }
 0x150   : > { %v920_v48 = vld [vmem:[#allocation2 + $0x8] sm:$0xff] }
 0x151   : > { %v930_v52 = vadd.f32 %v924_v46, %v920_v48  ;;  %935 = vst [vmem:[%s1798_s25] sm:$0xff] %v931_v53 }
 0x152   : > { %936 = vst [vmem:[%s1798_s25 + $0x8] sm:$0xff] %v932_v54 }
 0x153   : > { %v934_v56 = vmax.f32 %v930_v52, 0.0  ;;  %937 = vst [vmem:[%s1798_s25 + $0x10] sm:$0xff] %v933_v55 }
 0x155   : > { %938 = vst [vmem:[%s1798_s25 + $0x18] sm:$0xff] %v934_v56 }
 0x156 PF: > { %945 = sbr.rel (!%p1662_p12) target bundleno = 350 (0x15e), region = 108  ;;  %s1365_s14 = sshll.u32 (%p1662_p12), %s1533_s19, 4 }
 0x157   : > { %s951_s0 = scalar_lea.vmem (%p1662_p12), %s1967_s3, %s1365_s14 }
 0x158   : > { %v964_v57 = vld [vmem:[%s1798_s25] sm:$0xff] (%p1662_p12) }
 0x159   : > { %v966_v58 = vld [vmem:[%s1798_s25 + $0x8] sm:$0xff] (%p1662_p12)  ;;  %965 = vst [vmem:[%s951_s0] sm:$0xff] (%p1662_p12), %v964_v57 }
 0x15a   : > { %v968_v59 = vld [vmem:[%s1798_s25 + $0x10] sm:$0xff] (%p1662_p12)  ;;  %967 = vst [vmem:[%s951_s0 + $0x8] sm:$0xff] (%p1662_p12), %v966_v58 }
 0x15b   : > { %969 = vst [vmem:[%s951_s0 + $0x20] sm:$0xff] %v968_v59 }
 0x15c   : > { %v970_v60 = vld [vmem:[%s1798_s25 + $0x18] sm:$0xff] }
 0x15d   : > { %971 = vst [vmem:[%s951_s0 + $0x28] sm:$0xff] %v970_v60 }
 0x15e PF: > { %s13_s22 = sadd.s32 1, %s1545_s22   ;;  %s1977_s10 = sld [smem:[#allocation6_spill]] }
 0x15f   : > { %p10_p6 = scmp.ge.s32.totalorder %s13_s22, 14   ;;  %s1978_s12 = smov %s1509_s13 }
 0x160   : > { %s1979_s13 = smov %s1660_s9  ;;  %s1980_s14 = smov %s1517_s15 }
 0x161   : > { %s1981_s15 = smov %s1657_s8  ;;  %s1982_s16 = smov %s1525_s17 }
 0x162   : > { %s1983_s17 = smov %s1643_s30  ;;  %s1984_s18 = smov %s1537_s20 }
 0x163   : > { %s1985_s19 = smov %s1541_s21  ;;  %s1986_s20 = smov %s1989_s24 }
 0x164   : > { %s1987_s21 = smov %s1977_s10  ;;  %12 = sbr.rel (!%p10_p6) target bundleno = 9 (0x9), region = 179 }

// kernel: resnet18_forward.16
= control target key start
LH: loop header
LB: loop body
LE: loop exit
PB: predicated region body
PF: predicated region fallthrough
CT: control target
= control target key end

     0   :  { %s1285_s12 = smov 0   ;;  %s1287_s13 = smov 0   ;;  %s1607_s0 = inlined_call_operand.vmem [shape: bf16[16,4864], index: 0, kind: input, shape index: {}]   ;;  %s1608_s1 = inlined_call_operand.vmem [shape: bf16[4864,512], index: 1, kind: input, shape index: {}]   ;;  %s1609_s2 = inlined_call_operand.vmem [shape: f32[1,512], index: 2, kind: input, shape index: {}]   ;;  %s1610_s3 = inlined_call_operand.vmem [shape: f32[16,512], index: 3, kind: output, shape index: {}]  }
   0x1   :  { %s1289_s14 = smov 0   ;;  %s1291_s15 = smov 0  }
   0x2   :  { %s1293_s16 = smov 0   ;;  %s1295_s17 = smov 0  }
   0x3   :  { %s1297_s18 = smov 0   ;;  %s1299_s19 = smov 0  }
   0x4   :  { %s1301_s20 = smov 0   ;;  %s1303_s21 = smov 0  }
   0x5   :  { %s1305_s22 = smov 0  }
   0x6 LB: > { %s890_s23 = sadd.s32 4294967295, %s1262_s22   ;;  %s25_s24 = sadd.s32 1, %s1254_s20  ;;  %s1262_s22 = sphi %s1305_s22, %s13_s22   ;;  %s1258_s21 = sphi %s1303_s21, %s1631_s21   ;;  %s1254_s20 = sphi %s1301_s20, %s1630_s20   ;;  %s1250_s19 = sphi %s1299_s19, %s1629_s19   ;;  %s1246_s18 = sphi %s1297_s18, %s1628_s18   ;;  %s1242_s17 = sphi %s1295_s17, %s1627_s17   ;;  %s1238_s16 = sphi %s1293_s16, %s1626_s16   ;;  %s1234_s15 = sphi %s1291_s15, %s1625_s15   ;;  %s1230_s14 = sphi %s1289_s14, %s1624_s14   ;;  %s1226_s13 = sphi %s1287_s13, %s1623_s13   ;;  %s1222_s12 = sphi %s1285_s12, %s1622_s12  }
   0x7   : > { %p26_p0 = scmp.ge.s32.totalorder %s25_s24, 19  ;;  %s28_s25 = sadd.s32 1, %s1258_s21 }
   0x8   : > { %s41_s26 = sadd.s32 1, %s1242_s17  ;;  %p48_p1 = scmp.ne.s32.totalorder %s1242_s17, %s1238_s16 }
   0x9   : > { %s1633_s24 = smov (%p26_p0, %s25_s24), 0  ;;  %s1635_s25 = smov (!%p26_p0, %s28_s25), %s1258_s21 }
   0xa   : > { %1613 = sst [smem:[#allocation6_spill]] %s1633_s24  ;;  %s37_s27 = ssub.s32 %s1254_s20, %s1633_s24 }
   0xb   : > { %p49_p2 = scmp.eq.s32.totalorder %s1262_s22, 0  ;;  %p30_p3 = scmp.ge.s32.totalorder %s1635_s25, 2 }
   0xc   : > { %p39_p4 = scmp.eq.s32.totalorder %s37_s27, 0  ;;  %s69_s29 = sadd.s32 1, %s1234_s15 }
   0xd   : > { %p1352_p5 = por %p49_p2, %p48_p1  ;;  %s1637_s25 = smov (%p30_p3, %s1635_s25), 0 }
   0xe   : > { %1615 = sst [smem:[#allocation7_spill]] %s1637_s25  ;;  %s65_s4 = ssub.s32 %s1258_s21, %s1637_s25 }
   0xf   : > { %s1360_s30 = scalar_select %p39_p4, %s1242_s17, %s41_s26  }
  0x10   : > { %p76_p6 = scmp.ne.s32.totalorder %s1234_s15, %s1230_s14  ;;  %s66_s5 = sor.u32 %s65_s4, %s37_s27 }
  0x11   : > { %1616 = sst [smem:[#allocation8_spill]] %s1360_s30  ;;  %p121_p7 = scmp.eq.s32.totalorder %s65_s4, 0 }
  0x12   : > { %p67_p8 = scmp.eq.s32.totalorder %s66_s5, 0  ;;  %p1366_p9 = por %p76_p6, %p49_p2 }
  0x13   : > { %s123_s7 = sadd.s32 1, %s1226_s13  ;;  %p133_p10 = scmp.ne.s32.totalorder %s1226_s13, %s1222_s12 }
  0x14   : > { %s1374_s8 = scalar_select %p67_p8, %s1234_s15, %s69_s29  }
  0x15   : > { %s1377_s9 = scalar_select %p121_p7, %s1226_s13, %s123_s7  }
  0x16   : > { %p134_p11 = scmp.eq.s32.totalorder %s890_s23, 37  ;;  %p893_p13 = scmp.ge.s32.totalorder %s1262_s22, 38 }
  0x18   : > { %p1379_p12 = por %p134_p11, %p133_p10  ;;  %156 = sbr.rel (%p893_p13) target bundleno = 74 (0x4a), region = 16 }
  0x1d   : > { %159 = sbr.rel (!%p1352_p5) target bundleno = 35 (0x23), region = 20  ;;  %s161_s11 = sand.u32 (%p1352_p5), 1, %s1242_s17  }
  0x1e   : > { %s1050_s26 = sshll.u32 (%p1352_p5), %s1254_s20, 3  ;;  %s894_s27 = sshll.u32 (%p1352_p5), %s161_s11, 4 }
  0x1f   : > { %s169_s5 = scalar_lea.vmem (%p1352_p5), %s1607_s0, %s1050_s26  ;;  %s163_s23 = scalar_lea.vmem (%p1352_p5), [#allocation3], %s894_s27 }
  0x20   : > { %v200_v0 = vld [vmem:[%s169_s5] sm:$0xff] (%p1352_p5)  ;;  %v202_v1 = vld [vmem:[%s169_s5 + $0x98] sm:$0xff] (%p1352_p5) }
  0x21   : > { %201 = vst [vmem:[%s163_s23] sm:$0xff] (%p1352_p5), %v200_v0 }
  0x22   : > { %203 = vst [vmem:[%s163_s23 + $0x8] sm:$0xff] %v202_v1 }
  0x23 PF: > { %209 = sbr.rel (!%p1366_p9) target bundleno = 74 (0x4a), region = 58  ;;  %s211_s28 = sand.u32 (%p1366_p9), 1, %s1234_s15  }
  0x24   : > { %s899_s7 = sshll.u32 (%p1366_p9), %s1258_s21, 1  ;;  %s897_s25 = sshll.u32 (%p1366_p9), %s211_s28, 8 }
  0x25   : > { %s1051_s11 = sshll.u32 (%p1366_p9), %s1254_s20, 7  ;;  %s1404_s6 = scalar_lea.vmem (%p1366_p9), [#allocation4], %s897_s25 }
  0x26   : > { %s217_s24 = sadd.s32 (%p1366_p9), %s1051_s11, %s899_s7 }
  0x27   : > { %s901_s30 = sshll.u32 (%p1366_p9), %s217_s24, 2 }
  0x28   : > { %s1399_s4 = scalar_lea.vmem %s1608_s1, %s901_s30 }
  0x29   : > { %v310_v2 = vld [vmem:[%s1399_s4] sm:$0xff]  ;;  %v312_v3 = vld [vmem:[%s1399_s4 + $0x10] sm:$0xff] }
  0x2a   : > { %v314_v4 = vld [vmem:[%s1399_s4 + $0x20] sm:$0xff]  ;;  %311 = vst [vmem:[%s1404_s6] sm:$0xff] %v310_v2  ;;  %v316_v5 = vld [vmem:[%s1399_s4 + $0x30] sm:$0xff] }
  0x2b   : > { %313 = vst [vmem:[%s1404_s6 + $0x8] sm:$0xff] %v312_v3  ;;  %v318_v6 = vld [vmem:[%s1399_s4 + $0x40] sm:$0xff]  ;;  %v320_v7 = vld [vmem:[%s1399_s4 + $0x50] sm:$0xff] }
  0x2c   : > { %315 = vst [vmem:[%s1404_s6 + $0x10] sm:$0xff] %v314_v4  ;;  %v322_v8 = vld [vmem:[%s1399_s4 + $0x60] sm:$0xff]  ;;  %v324_v9 = vld [vmem:[%s1399_s4 + $0x70] sm:$0xff] }
  0x2d   : > { %317 = vst [vmem:[%s1404_s6 + $0x18] sm:$0xff] %v316_v5  ;;  %v326_v10 = vld [vmem:[%s1399_s4 + $0x80] sm:$0xff]  ;;  %v328_v11 = vld [vmem:[%s1399_s4 + $0x90] sm:$0xff] }
  0x2e   : > { %319 = vst [vmem:[%s1404_s6 + $0x20] sm:$0xff] %v318_v6  ;;  %v330_v12 = vld [vmem:[%s1399_s4 + $0xa0] sm:$0xff]  ;;  %v332_v13 = vld [vmem:[%s1399_s4 + $0xb0] sm:$0xff] }
  0x2f   : > { %321 = vst [vmem:[%s1404_s6 + $0x28] sm:$0xff] %v320_v7  ;;  %v334_v14 = vld [vmem:[%s1399_s4 + $0xc0] sm:$0xff]  ;;  %v336_v15 = vld [vmem:[%s1399_s4 + $0xd0] sm:$0xff] }
  0x30   : > { %323 = vst [vmem:[%s1404_s6 + $0x30] sm:$0xff] %v322_v8  ;;  %v338_v16 = vld [vmem:[%s1399_s4 + $0xe0] sm:$0xff]  ;;  %v340_v17 = vld [vmem:[%s1399_s4 + $0xf0] sm:$0xff] }
  0x31   : > { %325 = vst [vmem:[%s1404_s6 + $0x38] sm:$0xff] %v324_v9  ;;  %v342_v18 = vld [vmem:[%s1399_s4 + $0x100] sm:$0xff]  ;;  %v344_v19 = vld [vmem:[%s1399_s4 + $0x110] sm:$0xff] }
  0x32   : > { %327 = vst [vmem:[%s1404_s6 + $0x40] sm:$0xff] %v326_v10  ;;  %v346_v20 = vld [vmem:[%s1399_s4 + $0x120] sm:$0xff]  ;;  %v348_v21 = vld [vmem:[%s1399_s4 + $0x130] sm:$0xff] }
  0x33   : > { %329 = vst [vmem:[%s1404_s6 + $0x48] sm:$0xff] %v328_v11  ;;  %v350_v22 = vld [vmem:[%s1399_s4 + $0x140] sm:$0xff]  ;;  %v352_v23 = vld [vmem:[%s1399_s4 + $0x150] sm:$0xff] }
  0x34   : > { %331 = vst [vmem:[%s1404_s6 + $0x50] sm:$0xff] %v330_v12  ;;  %v354_v24 = vld [vmem:[%s1399_s4 + $0x160] sm:$0xff]  ;;  %v356_v25 = vld [vmem:[%s1399_s4 + $0x170] sm:$0xff] }
  0x35   : > { %333 = vst [vmem:[%s1404_s6 + $0x58] sm:$0xff] %v332_v13  ;;  %v358_v26 = vld [vmem:[%s1399_s4 + $0x180] sm:$0xff]  ;;  %v360_v27 = vld [vmem:[%s1399_s4 + $0x190] sm:$0xff] }
  0x36   : > { %335 = vst [vmem:[%s1404_s6 + $0x60] sm:$0xff] %v334_v14  ;;  %v362_v28 = vld [vmem:[%s1399_s4 + $0x1a0] sm:$0xff]  ;;  %v364_v29 = vld [vmem:[%s1399_s4 + $0x1b0] sm:$0xff] }
  0x37   : > { %337 = vst [vmem:[%s1404_s6 + $0x68] sm:$0xff] %v336_v15  ;;  %v366_v30 = vld [vmem:[%s1399_s4 + $0x1c0] sm:$0xff]  ;;  %v368_v31 = vld [vmem:[%s1399_s4 + $0x1d0] sm:$0xff] }
  0x38   : > { %339 = vst [vmem:[%s1404_s6 + $0x70] sm:$0xff] %v338_v16  ;;  %v370_v32 = vld [vmem:[%s1399_s4 + $0x1e0] sm:$0xff]  ;;  %v372_v33 = vld [vmem:[%s1399_s4 + $0x1f0] sm:$0xff] }
  0x39   : > { %341 = vst [vmem:[%s1404_s6 + $0x78] sm:$0xff] %v340_v17 }
  0x3a   : > { %343 = vst [vmem:[%s1404_s6 + $0x80] sm:$0xff] %v342_v18 }
  0x3b   : > { %345 = vst [vmem:[%s1404_s6 + $0x88] sm:$0xff] %v344_v19 }
  0x3c   : > { %347 = vst [vmem:[%s1404_s6 + $0x90] sm:$0xff] %v346_v20 }
  0x3d   : > { %349 = vst [vmem:[%s1404_s6 + $0x98] sm:$0xff] %v348_v21 }
  0x3e   : > { %351 = vst [vmem:[%s1404_s6 + $0xa0] sm:$0xff] %v350_v22 }
  0x3f   : > { %353 = vst [vmem:[%s1404_s6 + $0xa8] sm:$0xff] %v352_v23 }
  0x40   : > { %355 = vst [vmem:[%s1404_s6 + $0xb0] sm:$0xff] %v354_v24 }
  0x41   : > { %357 = vst [vmem:[%s1404_s6 + $0xb8] sm:$0xff] %v356_v25 }
  0x42   : > { %359 = vst [vmem:[%s1404_s6 + $0xc0] sm:$0xff] %v358_v26 }
  0x43   : > { %361 = vst [vmem:[%s1404_s6 + $0xc8] sm:$0xff] %v360_v27 }
  0x44   : > { %363 = vst [vmem:[%s1404_s6 + $0xd0] sm:$0xff] %v362_v28 }
  0x45   : > { %365 = vst [vmem:[%s1404_s6 + $0xd8] sm:$0xff] %v364_v29 }
  0x46   : > { %367 = vst [vmem:[%s1404_s6 + $0xe0] sm:$0xff] %v366_v30 }
  0x47   : > { %369 = vst [vmem:[%s1404_s6 + $0xe8] sm:$0xff] %v368_v31 }
  0x48   : > { %371 = vst [vmem:[%s1404_s6 + $0xf0] sm:$0xff] %v370_v32 }
  0x49   : > { %373 = vst [vmem:[%s1404_s6 + $0xf8] sm:$0xff] %v372_v33 }
  0x4a PF: > { %p902_p0 = scmp.ge.s32.totalorder %s1262_s22, 1  ;;  %p386_p1 = scmp.lt.s32.totalorder %s1262_s22, 39 }
  0x4c   : > { %p387_p2 = pnand %p902_p0, %p386_p1 }
  0x4d   : > { %s393_s24 = sand.u32 (!%p387_p2), 1, %s1238_s16   ;;  %s400_s25 = sand.u32 (!%p387_p2), 1, %s1230_s14  }
  0x4e   : > { %390 = sbr.rel (%p387_p2) target bundleno = 296 (0x128), region = 100  ;;  %s903_s30 = sshll.u32 (!%p387_p2), %s393_s24, 4 }
  0x4f   : > { %s904_s27 = sshll.u32 (!%p387_p2), %s400_s25, 8  ;;  %s427_s5 = sand.u32 (!%p387_p2), 1, %s1222_s12  }
  0x50   : > { %s906_s23 = sshll.u32 (!%p387_p2), %s1250_s19, 1  ;;  %s905_s28 = sshll.u32 (!%p387_p2), %s427_s5, 5 }
  0x51   : > { %p435_p3 = scmp.lt.s32.totalorder (!%p387_p2), %s906_s23, 3  ;;  %s1479_s26 = scalar_lea.vmem (!%p387_p2), [#allocation3], %s903_s30 }
  0x52   : > { %s1481_s4 = scalar_lea.vmem (!%p387_p2), [#allocation4], %s904_s27  ;;  %s1483_s6 = scalar_lea.vmem (!%p387_p2), [#allocation5], %s905_s28 }
  0x53   : > { %s1639_s23 = smov (!%p435_p3, %s906_s23), 3  ;;  %p907_p4 = scmp.ne.s32.totalorder %s1246_s18, 0 }
  0x54   : > { %s437_s29 = scalar_lea.vmem %s1609_s2, %s1639_s23 }
  0x55   : > { %444 = sbr.rel (%p907_p4) target bundleno = 95 (0x5f), region = 112 }
  0x5a   : > { %v1264_v34 = vmov 0.0  }
  0x5b   : > { %445 = vst [vmem:[#allocation2 + $0x10] sm:$0xff] %v1264_v34 }
  0x5c   : > { %446 = vst [vmem:[#allocation2] sm:$0xff] %v1264_v34 }
  0x5d   : > { %447 = vst [vmem:[#allocation2 + $0x18] sm:$0xff] %v1264_v34 }
  0x5e   : > { %448 = vst [vmem:[#allocation2 + $0x8] sm:$0xff] %v1264_v34 }
  0x5f PF: > { %v974_v35 = vld [vmem:[%s1481_s4 + $0x70] sm:$0xf]  ;;  %v1069_v36 = vld [vmem:[%s1481_s4 + $0x74] sm:$0xf0]  ;;  %v1068_v40 = vld [vmem:[%s1481_s4 + $0x74] sm:$0xf] }
  0x60   : > { %v1038_v37 = vld [vmem:[%s1481_s4 + $0xf0] sm:$0xf]  ;;  %v975_v38 = vor.u32 %v1069_v36, %v974_v35  ;;  %v1085_v39 = vld [vmem:[%s1481_s4 + $0xf4] sm:$0xf0]  ;;  %v976_v41 = vld [vmem:[%s1481_s4 + $0x78] sm:$0xf0] }
  0x61   : > { %v1039_v42 = vor.u32 %v1085_v39, %v1038_v37  ;;  %v979_v43 = vor.u32 %v1068_v40, %v976_v41  ;;  %v1084_v44 = vld [vmem:[%s1481_s4 + $0xf4] sm:$0xf]  ;;  %v1040_v45 = vld [vmem:[%s1481_s4 + $0xf8] sm:$0xf0]  ;;  %v966_v46 = vld [vmem:[%s1481_s4 + $0x60] sm:$0xf] }
  0x62   : > { %657 = vmatpush.bf16.msra.mxu0 %v975_v38  ;;  %v1043_v47 = vor.u32 %v1084_v44, %v1040_v45  ;;  %v1067_v48 = vld [vmem:[%s1481_s4 + $0x64] sm:$0xf0]  ;;  %v1030_v49 = vld [vmem:[%s1481_s4 + $0xe0] sm:$0xf]  ;;  %v1066_v53 = vld [vmem:[%s1481_s4 + $0x64] sm:$0xf] }
  0x63   : > { %v1083_v50 = vld [vmem:[%s1481_s4 + $0xe4] sm:$0xf0]  ;;  %671 = vmatpush.bf16.msra.mxu1 %v1039_v42  ;;  %685 = vmatpush.bf16.msra.mxu2 %v979_v43  ;;  %v967_v51 = vor.u32 %v1067_v48, %v966_v46  ;;  %v968_v54 = vld [vmem:[%s1481_s4 + $0x68] sm:$0xf0]  ;;  %v1082_v55 = vld [vmem:[%s1481_s4 + $0xe4] sm:$0xf] }
  0x64   : > { %v1031_v52 = vor.u32 %v1083_v50, %v1030_v49  ;;  %699 = vmatpush.bf16.msra.mxu3 %v1043_v47  ;;  %v971_v56 = vor.u32 %v1066_v53, %v968_v54  ;;  %v1032_v57 = vld [vmem:[%s1481_s4 + $0xe8] sm:$0xf0]  ;;  %v958_v58 = vld [vmem:[%s1481_s4 + $0x50] sm:$0xf]  ;;  %v1065_v59 = vld [vmem:[%s1481_s4 + $0x54] sm:$0xf0] }
  0x65   : > { %v1035_v60 = vor.u32 %v1082_v55, %v1032_v57  ;;  %v1022_v61 = vld [vmem:[%s1481_s4 + $0xd0] sm:$0xf]  ;;  %v1081_v62 = vld [vmem:[%s1481_s4 + $0xd4] sm:$0xf0]  ;;  %v1064_v63 = vld [vmem:[%s1481_s4 + $0x54] sm:$0xf]  ;;  %v959_v0 = vor.u32 %v1065_v59, %v958_v58 }
  0x66   : > { %658 = vmatpush.bf16.msra.mxu0 %v967_v51  ;;  %v960_v1 = vld [vmem:[%s1481_s4 + $0x58] sm:$0xf0]  ;;  %v1080_v2 = vld [vmem:[%s1481_s4 + $0xd4] sm:$0xf]  ;;  %v1023_v4 = vor.u32 %v1081_v62, %v1022_v61  ;;  %v950_v6 = vld [vmem:[%s1481_s4 + $0x40] sm:$0xf] }
  0x67   : > { %v1024_v3 = vld [vmem:[%s1481_s4 + $0xd8] sm:$0xf0]  ;;  %672 = vmatpush.bf16.msra.mxu1 %v1031_v52  ;;  %686 = vmatpush.bf16.msra.mxu2 %v971_v56  ;;  %v963_v5 = vor.u32 %v1064_v63, %v960_v1  ;;  %v1063_v7 = vld [vmem:[%s1481_s4 + $0x44] sm:$0xf0]  ;;  %v1014_v8 = vld [vmem:[%s1481_s4 + $0xc0] sm:$0xf] }
  0x68   : > { %700 = vmatpush.bf16.msra.mxu3 %v1035_v60  ;;  %v1027_v9 = vor.u32 %v1080_v2, %v1024_v3  ;;  %v1079_v10 = vld [vmem:[%s1481_s4 + $0xc4] sm:$0xf0]  ;;  %v1062_v11 = vld [vmem:[%s1481_s4 + $0x44] sm:$0xf]  ;;  %v952_v12 = vld [vmem:[%s1481_s4 + $0x48] sm:$0xf0]  ;;  %v951_v15 = vor.u32 %v1063_v7, %v950_v6 }
  0x69   : > { %v1078_v13 = vld [vmem:[%s1481_s4 + $0xc4] sm:$0xf]  ;;  %v1016_v14 = vld [vmem:[%s1481_s4 + $0xc8] sm:$0xf0]  ;;  %v1015_v16 = vor.u32 %v1079_v10, %v1014_v8  ;;  %v955_v17 = vor.u32 %v1062_v11, %v952_v12  ;;  %v942_v18 = vld [vmem:[%s1481_s4 + $0x30] sm:$0xf] }
  0x6a   : > { %659 = vmatpush.bf16.msra.mxu0 %v959_v0  ;;  %v1061_v19 = vld [vmem:[%s1481_s4 + $0x34] sm:$0xf0]  ;;  %v1006_v20 = vld [vmem:[%s1481_s4 + $0xb0] sm:$0xf]  ;;  %v1019_v21 = vor.u32 %v1078_v13, %v1016_v14  ;;  %v1060_v23 = vld [vmem:[%s1481_s4 + $0x34] sm:$0xf] }
  0x6b   : > { %673 = vmatpush.bf16.msra.mxu1 %v1023_v4  ;;  %687 = vmatpush.bf16.msra.mxu2 %v963_v5  ;;  %v1077_v22 = vld [vmem:[%s1481_s4 + $0xb4] sm:$0xf0]  ;;  %v944_v24 = vld [vmem:[%s1481_s4 + $0x38] sm:$0xf0]  ;;  %v1076_v25 = vld [vmem:[%s1481_s4 + $0xb4] sm:$0xf]  ;;  %v943_v27 = vor.u32 %v1061_v19, %v942_v18 }
  0x6c   : > { %701 = vmatpush.bf16.msra.mxu3 %v1027_v9  ;;  %v1008_v26 = vld [vmem:[%s1481_s4 + $0xb8] sm:$0xf0]  ;;  %v1007_v28 = vor.u32 %v1077_v22, %v1006_v20  ;;  %v947_v29 = vor.u32 %v1060_v23, %v944_v24  ;;  %v934_v30 = vld [vmem:[%s1481_s4 + $0x20] sm:$0xf]  ;;  %v1059_v31 = vld [vmem:[%s1481_s4 + $0x24] sm:$0xf0] }
  0x6d   : > { %v998_v32 = vld [vmem:[%s1481_s4 + $0xa0] sm:$0xf]  ;;  %v1011_v33 = vor.u32 %v1076_v25, %v1008_v26  ;;  %v1075_v34 = vld [vmem:[%s1481_s4 + $0xa4] sm:$0xf0]  ;;  %v1058_v35 = vld [vmem:[%s1481_s4 + $0x24] sm:$0xf]  ;;  %v935_v39 = vor.u32 %v1059_v31, %v934_v30 }
  0x6e   : > { %660 = vmatpush.bf16.msra.mxu0 %v951_v15  ;;  %v936_v36 = vld [vmem:[%s1481_s4 + $0x28] sm:$0xf0]  ;;  %v1074_v37 = vld [vmem:[%s1481_s4 + $0xa4] sm:$0xf]  ;;  %v999_v40 = vor.u32 %v1075_v34, %v998_v32  ;;  %v926_v42 = vld [vmem:[%s1481_s4 + $0x10] sm:$0xf] }
  0x6f   : > { %674 = vmatpush.bf16.msra.mxu1 %v1015_v16  ;;  %688 = vmatpush.bf16.msra.mxu2 %v955_v17  ;;  %v1000_v38 = vld [vmem:[%s1481_s4 + $0xa8] sm:$0xf0]  ;;  %v939_v41 = vor.u32 %v1058_v35, %v936_v36  ;;  %v1057_v43 = vld [vmem:[%s1481_s4 + $0x14] sm:$0xf0]  ;;  %v990_v44 = vld [vmem:[%s1481_s4 + $0x90] sm:$0xf] }
  0x70   : > { %702 = vmatpush.bf16.msra.mxu3 %v1019_v21  ;;  %v1003_v45 = vor.u32 %v1074_v37, %v1000_v38  ;;  %v1073_v46 = vld [vmem:[%s1481_s4 + $0x94] sm:$0xf0]  ;;  %v1056_v47 = vld [vmem:[%s1481_s4 + $0x14] sm:$0xf]  ;;  %v928_v48 = vld [vmem:[%s1481_s4 + $0x18] sm:$0xf0]  ;;  %v927_v51 = vor.u32 %v1057_v43, %v926_v42 }
  0x71   : > { %v1072_v49 = vld [vmem:[%s1481_s4 + $0x94] sm:$0xf]  ;;  %v992_v50 = vld [vmem:[%s1481_s4 + $0x98] sm:$0xf0]  ;;  %v991_v52 = vor.u32 %v1073_v46, %v990_v44  ;;  %v931_v53 = vor.u32 %v1056_v47, %v928_v48  ;;  %v918_v54 = vld [vmem:[%s1481_s4] sm:$0xf] }
  0x72   : > { %661 = vmatpush.bf16.msra.mxu0 %v943_v27  ;;  %v1055_v55 = vld [vmem:[%s1481_s4 + $0x4] sm:$0xf0]  ;;  %v982_v56 = vld [vmem:[%s1481_s4 + $0x80] sm:$0xf]  ;;  %v995_v57 = vor.u32 %v1072_v49, %v992_v50  ;;  %v1054_v59 = vld [vmem:[%s1481_s4 + $0x4] sm:$0xf] }
  0x73   : > { %675 = vmatpush.bf16.msra.mxu1 %v1007_v28  ;;  %689 = vmatpush.bf16.msra.mxu2 %v947_v29  ;;  %v1071_v58 = vld [vmem:[%s1481_s4 + $0x84] sm:$0xf0]  ;;  %v920_v60 = vld [vmem:[%s1481_s4 + $0x8] sm:$0xf0]  ;;  %v1070_v61 = vld [vmem:[%s1481_s4 + $0x84] sm:$0xf]  ;;  %v919_v63 = vor.u32 %v1055_v55, %v918_v54 }
  0x74   : > { %703 = vmatpush.bf16.msra.mxu3 %v1011_v33  ;;  %v984_v62 = vld [vmem:[%s1481_s4 + $0x88] sm:$0xf0]  ;;  %v910_v0 = vld [vmem:[%s1479_s26] sm:$0xf]  ;;  %v1053_v1 = vld [vmem:[%s1479_s26 + $0x4] sm:$0xf0]  ;;  %v983_v2 = vor.u32 %v1071_v58, %v982_v56  ;;  %v923_v3 = vor.u32 %v1054_v59, %v920_v60 }
  0x75   : > { %v1052_v4 = vld [vmem:[%s1479_s26 + $0x4] sm:$0xf]  ;;  %v912_v5 = vld [vmem:[%s1479_s26 + $0x8] sm:$0xf0]  ;;  %v987_v6 = vor.u32 %v1070_v61, %v984_v62  ;;  %v911_v7 = vor.u32 %v1053_v1, %v910_v0  ;;  %p1044_p5 = scmp.ne.s32.totalorder %s1246_s18, 18 }
  0x76   : > { %662 = vmatpush.bf16.msra.mxu0 %v935_v39  ;;  %v915_v8 = vor.u32 %v1052_v4, %v912_v5  ;;  %v449_v10 = vld [vmem:[#allocation2 + $0x10] sm:$0xff]  ;;  %v450_v15 = vld [vmem:[#allocation2] sm:$0xff]  ;;  %v451_v19 = vld [vmem:[#allocation2 + $0x18] sm:$0xff] }
  0x77   : > { %676 = vmatpush.bf16.msra.mxu1 %v999_v40  ;;  %690 = vmatpush.bf16.msra.mxu2 %v939_v41  ;;  %v452_v25 = vld [vmem:[#allocation2 + $0x8] sm:$0xff] }
  0x78   : > { %704 = vmatpush.bf16.msra.mxu3 %v1003_v45 }
  0x7a   : > { %663 = vmatpush.bf16.msra.mxu0 %v927_v51 }
  0x7b   : > { %677 = vmatpush.bf16.msra.mxu1 %v991_v52  ;;  %691 = vmatpush.bf16.msra.mxu2 %v931_v53 }
  0x7c   : > { %705 = vmatpush.bf16.msra.mxu3 %v995_v57 }
  0x7e   : > { %664 = vmatpush.bf16.msra.mxu0 %v919_v63 }
  0x7f   : > { %678 = vmatpush.bf16.msra.mxu1 %v983_v2  ;;  %692 = vmatpush.bf16.msra.mxu2 %v923_v3 }
  0x80   : > { %706 = vmatpush.bf16.msra.mxu3 %v987_v6 }
  0x81   : > { %665 = vmatmul.bf16.vlgmr.msra.gmra.mxu0 %v911_v7 }
  0x82   : > { %679 = vmatmul.bf16.vlgmr.msra.gmra.mxu1 %v915_v8  ;;  %693 = vmatmul.bf16.vlgmr.msra.gmra.mxu2 %v911_v7 }
  0x83   : > { %707 = vmatmul.bf16.vlgmr.msra.gmra.mxu3 %v915_v8 }
  0xfe   : > { %v666_v9 = vpop.f32.mrf.mxu0 }
  0xff   : > { %v680_v11 = vpop.f32.mrf.mxu1 }
 0x100   : > { %v681_v12 = vadd.f32 %v680_v11, %v666_v9 }
 0x102   : > { %v713_v13 = vadd.f32 %v681_v12, %v449_v10 }
 0x104   : > { %717 = vst [vmem:[#allocation2 + $0x10] sm:$0xff] %v713_v13 }
 0x105   : > { %v694_v14 = vpop.f32.mrf.mxu2 }
 0x106   : > { %v708_v16 = vpop.f32.mrf.mxu3  ;;  %v668_v17 = vpop.f32.mrf.mxu0 }
 0x107   : > { %v709_v18 = vadd.f32 %v708_v16, %v694_v14  ;;  %v682_v20 = vpop.f32.mrf.mxu1 }
 0x108   : > { %v683_v21 = vadd.f32 %v682_v20, %v668_v17 }
 0x109   : > { %v714_v22 = vadd.f32 %v709_v18, %v450_v15 }
 0x10a   : > { %v715_v23 = vadd.f32 %v683_v21, %v451_v19 }
 0x10b   : > { %718 = vst [vmem:[#allocation2] sm:$0xff] %v714_v22 }
 0x10c   : > { %719 = vst [vmem:[#allocation2 + $0x18] sm:$0xff] %v715_v23 }
 0x10d   : > { %v696_v24 = vpop.f32.mrf.mxu2 }
 0x10e   : > { %v710_v26 = vpop.f32.mrf.mxu3 }
 0x10f   : > { %v711_v27 = vadd.f32 %v710_v26, %v696_v24  ;;  %724 = sbr.rel (%p1044_p5) target bundleno = 288 (0x120), region = 116 }
 0x111   : > { %v716_v28 = vadd.f32 %v711_v27, %v452_v25 }
 0x113   : > { %720 = vst [vmem:[#allocation2 + $0x8] sm:$0xff] %v716_v28 }
 0x114   : > { %v725_v29 = vld [vmem:[#allocation2 + $0x10] sm:$0xff]  ;;  %v729_v30 = vld [vmem:[%s437_s29] sm:$0x3]  ;;  %v727_v34 = vld [vmem:[#allocation2 + $0x18] sm:$0xff] }
 0x115   : > { %v726_v31 = vld [vmem:[#allocation2] sm:$0xff]  ;;  %v731_v32 = vperm.slane %v729_v30, 0  ;;  %v732_v33 = vperm.slane %v729_v30, 1 }
 0x117   : > { %v735_v36 = vadd.f32 %v731_v32, %v725_v29  ;;  %v736_v37 = vadd.f32 %v732_v33, %v726_v31  ;;  %v737_v38 = vadd.f32 %v731_v32, %v727_v34 }
 0x119   : > { %v739_v40 = vmax.f32 %v735_v36, 0.0  ;;  %v740_v41 = vmax.f32 %v736_v37, 0.0  ;;  %v741_v42 = vmax.f32 %v737_v38, 0.0 }
 0x11a   : > { %v728_v35 = vld [vmem:[#allocation2 + $0x8] sm:$0xff] }
 0x11b   : > { %v738_v39 = vadd.f32 %v732_v33, %v728_v35  ;;  %743 = vst [vmem:[%s1483_s6] sm:$0xff] %v739_v40 }
 0x11c   : > { %744 = vst [vmem:[%s1483_s6 + $0x8] sm:$0xff] %v740_v41 }
 0x11d   : > { %v742_v43 = vmax.f32 %v738_v39, 0.0  ;;  %745 = vst [vmem:[%s1483_s6 + $0x10] sm:$0xff] %v741_v42 }
 0x11f   : > { %746 = vst [vmem:[%s1483_s6 + $0x18] sm:$0xff] %v742_v43 }
 0x120 PF: > { %753 = sbr.rel (!%p1379_p12) target bundleno = 296 (0x128), region = 120  ;;  %s1086_s16 = sshll.u32 (%p1379_p12), %s1250_s19, 4 }
 0x121   : > { %s759_s25 = scalar_lea.vmem (%p1379_p12), %s1610_s3, %s1086_s16 }
 0x122   : > { %v772_v44 = vld [vmem:[%s1483_s6] sm:$0xff] (%p1379_p12) }
 0x123   : > { %v774_v45 = vld [vmem:[%s1483_s6 + $0x8] sm:$0xff] (%p1379_p12)  ;;  %773 = vst [vmem:[%s759_s25] sm:$0xff] (%p1379_p12), %v772_v44 }
 0x124   : > { %v776_v46 = vld [vmem:[%s1483_s6 + $0x10] sm:$0xff] (%p1379_p12)  ;;  %775 = vst [vmem:[%s759_s25 + $0x8] sm:$0xff] (%p1379_p12), %v774_v45 }
 0x125   : > { %777 = vst [vmem:[%s759_s25 + $0x20] sm:$0xff] %v776_v46 }
 0x126   : > { %v778_v47 = vld [vmem:[%s1483_s6 + $0x18] sm:$0xff] }
 0x127   : > { %779 = vst [vmem:[%s759_s25 + $0x28] sm:$0xff] %v778_v47 }
 0x128 PF: > { %s13_s22 = sadd.s32 1, %s1262_s22   ;;  %s1619_s19 = sld [smem:[#allocation8_spill]] }
 0x129   : > { %p10_p6 = scmp.ge.s32.totalorder %s13_s22, 40   ;;  %s1620_s10 = sld [smem:[#allocation6_spill]] }
 0x12a   : > { %s1621_s30 = sld [smem:[#allocation7_spill]]  ;;  %s1622_s12 = smov %s1226_s13 }
 0x12b   : > { %s1623_s13 = smov %s1377_s9  ;;  %s1624_s14 = smov %s1234_s15 }
 0x12c   : > { %s1625_s15 = smov %s1374_s8  ;;  %s1626_s16 = smov %s1242_s17 }
 0x12d   : > { %s1628_s18 = smov %s1254_s20  ;;  %12 = sbr.rel (!%p10_p6) target bundleno = 6 (0x6), region = 185 }
 0x12e   : > { %s1627_s17 = smov %s1619_s19  ;;  %s1629_s19 = smov %s1258_s21 }
 0x12f   : > { %s1630_s20 = smov %s1620_s10 }
 0x130   : > { %s1631_s21 = smov %s1621_s30 }

// kernel: resnet18_forward.17
= control target key start
LH: loop header
LB: loop body
LE: loop exit
PB: predicated region body
PF: predicated region fallthrough
CT: control target
= control target key end

     0   :  { %s2299_s0 = inlined_call_operand.vmem [shape: bf16[16,4608], index: 0, kind: input, shape index: {}]   ;;  %s2300_s1 = inlined_call_operand.vmem [shape: bf16[4608,512], index: 1, kind: input, shape index: {}]   ;;  %s2301_s2 = inlined_call_operand.vmem [shape: f32[1,512], index: 2, kind: input, shape index: {}]   ;;  %s2302_s3 = inlined_call_operand.vmem [shape: f32[16,512], index: 3, kind: output, shape index: {}]  }
   0x1   :  { %2304 = sst [smem:[#allocation7_spill]] %s2299_s0 }
   0x2   :  { %2305 = sst [smem:[#allocation8_spill]] %s2300_s1 }
   0x3   :  { %s1829_s12 = smov 0   ;;  %s1831_s13 = smov 0  }
   0x4   :  { %s1833_s14 = smov 0   ;;  %s1835_s15 = smov 0  }
   0x5   :  { %s1837_s16 = smov 0   ;;  %s1839_s17 = smov 0  }
   0x6   :  { %s1841_s18 = smov 0   ;;  %s1843_s19 = smov 0  }
   0x7   :  { %s1845_s20 = smov 0   ;;  %s1847_s21 = smov 0  }
   0x8   :  { %s1849_s22 = smov 0  }
   0x9 LB: > { %s1264_s23 = sadd.s32 4294967295, %s1806_s22   ;;  %s25_s24 = sadd.s32 1, %s1798_s20  ;;  %s1806_s22 = sphi %s1849_s22, %s13_s22   ;;  %s1802_s21 = sphi %s1847_s21, %s2322_s21   ;;  %s1798_s20 = sphi %s1845_s20, %s2321_s20   ;;  %s1794_s19 = sphi %s1843_s19, %s2320_s19   ;;  %s1790_s18 = sphi %s1841_s18, %s2319_s18   ;;  %s1786_s17 = sphi %s1839_s17, %s2318_s17   ;;  %s1782_s16 = sphi %s1837_s16, %s2317_s16   ;;  %s1778_s15 = sphi %s1835_s15, %s2316_s15   ;;  %s1774_s14 = sphi %s1833_s14, %s2315_s14   ;;  %s1770_s13 = sphi %s1831_s13, %s2314_s13   ;;  %s1766_s12 = sphi %s1829_s12, %s2313_s12  }
   0xa   : > { %p26_p0 = scmp.ge.s32.totalorder %s25_s24, 9  ;;  %s28_s25 = sadd.s32 1, %s1802_s21 }
   0xb   : > { %s41_s26 = sadd.s32 1, %s1786_s17  ;;  %p48_p1 = scmp.ne.s32.totalorder %s1786_s17, %s1782_s16 }
   0xc   : > { %s2324_s24 = smov (%p26_p0, %s25_s24), 0  ;;  %s2326_s25 = smov (!%p26_p0, %s28_s25), %s1802_s21 }
   0xd   : > { %s37_s27 = ssub.s32 %s1798_s20, %s2324_s24  ;;  %p49_p2 = scmp.eq.s32.totalorder %s1806_s22, 0 }
   0xe   : > { %p30_p3 = scmp.ge.s32.totalorder %s2326_s25, 2  ;;  %p39_p4 = scmp.eq.s32.totalorder %s37_s27, 0 }
   0xf   : > { %p1896_p5 = por %p49_p2, %p48_p1  ;;  %s69_s29 = sadd.s32 1, %s1778_s15 }
  0x10   : > { %s2328_s25 = smov (%p30_p3, %s2326_s25), 0  ;;  %p76_p6 = scmp.ne.s32.totalorder %s1778_s15, %s1774_s14 }
  0x11   : > { %2307 = sst [smem:[#allocation6_spill]] %s2328_s25  ;;  %s65_s4 = ssub.s32 %s1802_s21, %s2328_s25 }
  0x12   : > { %s1904_s30 = scalar_select %p39_p4, %s1786_s17, %s41_s26  }
  0x13   : > { %s66_s5 = sor.u32 %s65_s4, %s37_s27  ;;  %p121_p7 = scmp.eq.s32.totalorder %s65_s4, 0 }
  0x14   : > { %p67_p8 = scmp.eq.s32.totalorder %s66_s5, 0  ;;  %p1910_p9 = por %p76_p6, %p49_p2 }
  0x15   : > { %s123_s7 = sadd.s32 1, %s1770_s13  ;;  %p133_p10 = scmp.ne.s32.totalorder %s1770_s13, %s1766_s12 }
  0x16   : > { %s1918_s8 = scalar_select %p67_p8, %s1778_s15, %s69_s29  }
  0x17   : > { %s1921_s9 = scalar_select %p121_p7, %s1770_s13, %s123_s7  }
  0x18   : > { %p134_p11 = scmp.eq.s32.totalorder %s1264_s23, 17  ;;  %p1267_p13 = scmp.ge.s32.totalorder %s1806_s22, 18 }
  0x1a   : > { %p1923_p12 = por %p134_p11, %p133_p10  ;;  %156 = sbr.rel (%p1267_p13) target bundleno = 119 (0x77), region = 16 }
  0x1f   : > { %159 = sbr.rel (!%p1896_p5) target bundleno = 45 (0x2d), region = 20  ;;  %s161_s11 = sand.u32 (%p1896_p5), 1, %s1786_s17  }
  0x20   : > { %s1560_s26 = sshll.u32 (%p1896_p5), %s1798_s20, 4  ;;  %s1268_s27 = sshll.u32 (%p1896_p5), %s161_s11, 5 }
  0x21   : > { %s2310_s0 = sld [smem:[#allocation7_spill]] (%p1896_p5)  ;;  %s163_s23 = scalar_lea.vmem (%p1896_p5), [#allocation3], %s1268_s27 }
  0x27   : > { %s169_s5 = scalar_lea.vmem %s2310_s0, %s1560_s26 }
  0x28   : > { %v182_v0 = vld [vmem:[%s169_s5] sm:$0xff]  ;;  %v184_v1 = vld [vmem:[%s169_s5 + $0x8] sm:$0xff]  ;;  %v186_v2 = vld [vmem:[%s169_s5 + $0x90] sm:$0xff] }
  0x29   : > { %183 = vst [vmem:[%s163_s23] sm:$0xff] %v182_v0  ;;  %v188_v3 = vld [vmem:[%s169_s5 + $0x98] sm:$0xff] }
  0x2a   : > { %185 = vst [vmem:[%s163_s23 + $0x8] sm:$0xff] %v184_v1 }
  0x2b   : > { %187 = vst [vmem:[%s163_s23 + $0x10] sm:$0xff] %v186_v2 }
  0x2c   : > { %189 = vst [vmem:[%s163_s23 + $0x18] sm:$0xff] %v188_v3 }
  0x2d PF: > { %195 = sbr.rel (!%p1910_p9) target bundleno = 119 (0x77), region = 43  ;;  %s197_s28 = sand.u32 (%p1910_p9), 1, %s1778_s15  }
  0x2e   : > { %s1273_s7 = sshll.u32 (%p1910_p9), %s1802_s21, 1  ;;  %s1271_s11 = sshll.u32 (%p1910_p9), %s197_s28, 9 }
  0x2f   : > { %s1561_s26 = sshll.u32 (%p1910_p9), %s1798_s20, 8  ;;  %s2311_s1 = sld [smem:[#allocation8_spill]] (%p1910_p9) }
  0x30   : > { %s203_s29 = sadd.s32 (%p1910_p9), %s1561_s26, %s1273_s7  ;;  %s1948_s6 = scalar_lea.vmem (%p1910_p9), [#allocation4], %s1271_s11 }
  0x31   : > { %s1275_s4 = sshll.u32 (%p1910_p9), %s203_s29, 2 }
  0x35   : > { %s1943_s5 = scalar_lea.vmem %s2311_s1, %s1275_s4 }
  0x36   : > { %v360_v4 = vld [vmem:[%s1943_s5] sm:$0xff]  ;;  %v362_v5 = vld [vmem:[%s1943_s5 + $0x10] sm:$0xff] }
  0x37   : > { %v364_v6 = vld [vmem:[%s1943_s5 + $0x20] sm:$0xff]  ;;  %361 = vst [vmem:[%s1948_s6] sm:$0xff] %v360_v4  ;;  %v366_v7 = vld [vmem:[%s1943_s5 + $0x30] sm:$0xff] }
  0x38   : > { %363 = vst [vmem:[%s1948_s6 + $0x8] sm:$0xff] %v362_v5  ;;  %v368_v8 = vld [vmem:[%s1943_s5 + $0x40] sm:$0xff]  ;;  %v370_v9 = vld [vmem:[%s1943_s5 + $0x50] sm:$0xff] }
  0x39   : > { %365 = vst [vmem:[%s1948_s6 + $0x10] sm:$0xff] %v364_v6  ;;  %v372_v10 = vld [vmem:[%s1943_s5 + $0x60] sm:$0xff]  ;;  %v374_v11 = vld [vmem:[%s1943_s5 + $0x70] sm:$0xff] }
  0x3a   : > { %367 = vst [vmem:[%s1948_s6 + $0x18] sm:$0xff] %v366_v7  ;;  %v376_v12 = vld [vmem:[%s1943_s5 + $0x80] sm:$0xff]  ;;  %v378_v13 = vld [vmem:[%s1943_s5 + $0x90] sm:$0xff] }
  0x3b   : > { %369 = vst [vmem:[%s1948_s6 + $0x20] sm:$0xff] %v368_v8  ;;  %v380_v14 = vld [vmem:[%s1943_s5 + $0xa0] sm:$0xff]  ;;  %v382_v15 = vld [vmem:[%s1943_s5 + $0xb0] sm:$0xff] }
  0x3c   : > { %371 = vst [vmem:[%s1948_s6 + $0x28] sm:$0xff] %v370_v9  ;;  %v384_v16 = vld [vmem:[%s1943_s5 + $0xc0] sm:$0xff]  ;;  %v386_v17 = vld [vmem:[%s1943_s5 + $0xd0] sm:$0xff] }
  0x3d   : > { %373 = vst [vmem:[%s1948_s6 + $0x30] sm:$0xff] %v372_v10  ;;  %v388_v18 = vld [vmem:[%s1943_s5 + $0xe0] sm:$0xff]  ;;  %v390_v19 = vld [vmem:[%s1943_s5 + $0xf0] sm:$0xff] }
  0x3e   : > { %375 = vst [vmem:[%s1948_s6 + $0x38] sm:$0xff] %v374_v11  ;;  %v392_v20 = vld [vmem:[%s1943_s5 + $0x100] sm:$0xff]  ;;  %v394_v21 = vld [vmem:[%s1943_s5 + $0x110] sm:$0xff] }
  0x3f   : > { %377 = vst [vmem:[%s1948_s6 + $0x40] sm:$0xff] %v376_v12  ;;  %v396_v22 = vld [vmem:[%s1943_s5 + $0x120] sm:$0xff]  ;;  %v398_v23 = vld [vmem:[%s1943_s5 + $0x130] sm:$0xff] }
  0x40   : > { %379 = vst [vmem:[%s1948_s6 + $0x48] sm:$0xff] %v378_v13  ;;  %v400_v24 = vld [vmem:[%s1943_s5 + $0x140] sm:$0xff]  ;;  %v402_v25 = vld [vmem:[%s1943_s5 + $0x150] sm:$0xff] }
  0x41   : > { %381 = vst [vmem:[%s1948_s6 + $0x50] sm:$0xff] %v380_v14  ;;  %v404_v26 = vld [vmem:[%s1943_s5 + $0x160] sm:$0xff]  ;;  %v406_v27 = vld [vmem:[%s1943_s5 + $0x170] sm:$0xff] }
  0x42   : > { %383 = vst [vmem:[%s1948_s6 + $0x58] sm:$0xff] %v382_v15  ;;  %v408_v28 = vld [vmem:[%s1943_s5 + $0x180] sm:$0xff]  ;;  %v410_v29 = vld [vmem:[%s1943_s5 + $0x190] sm:$0xff] }
  0x43   : > { %385 = vst [vmem:[%s1948_s6 + $0x60] sm:$0xff] %v384_v16  ;;  %v412_v30 = vld [vmem:[%s1943_s5 + $0x1a0] sm:$0xff]  ;;  %v414_v31 = vld [vmem:[%s1943_s5 + $0x1b0] sm:$0xff] }
  0x44   : > { %387 = vst [vmem:[%s1948_s6 + $0x68] sm:$0xff] %v386_v17  ;;  %v416_v32 = vld [vmem:[%s1943_s5 + $0x1c0] sm:$0xff]  ;;  %v418_v33 = vld [vmem:[%s1943_s5 + $0x1d0] sm:$0xff] }
  0x45   : > { %389 = vst [vmem:[%s1948_s6 + $0x70] sm:$0xff] %v388_v18  ;;  %v420_v34 = vld [vmem:[%s1943_s5 + $0x1e0] sm:$0xff]  ;;  %v422_v35 = vld [vmem:[%s1943_s5 + $0x1f0] sm:$0xff] }
  0x46   : > { %391 = vst [vmem:[%s1948_s6 + $0x78] sm:$0xff] %v390_v19  ;;  %v424_v36 = vld [vmem:[%s1943_s5 + $0x200] sm:$0xff]  ;;  %v426_v37 = vld [vmem:[%s1943_s5 + $0x210] sm:$0xff] }
  0x47   : > { %393 = vst [vmem:[%s1948_s6 + $0x80] sm:$0xff] %v392_v20  ;;  %v428_v38 = vld [vmem:[%s1943_s5 + $0x220] sm:$0xff]  ;;  %v430_v39 = vld [vmem:[%s1943_s5 + $0x230] sm:$0xff] }
  0x48   : > { %395 = vst [vmem:[%s1948_s6 + $0x88] sm:$0xff] %v394_v21  ;;  %v432_v40 = vld [vmem:[%s1943_s5 + $0x240] sm:$0xff]  ;;  %v434_v41 = vld [vmem:[%s1943_s5 + $0x250] sm:$0xff] }
  0x49   : > { %397 = vst [vmem:[%s1948_s6 + $0x90] sm:$0xff] %v396_v22  ;;  %v436_v42 = vld [vmem:[%s1943_s5 + $0x260] sm:$0xff]  ;;  %v438_v43 = vld [vmem:[%s1943_s5 + $0x270] sm:$0xff] }
  0x4a   : > { %399 = vst [vmem:[%s1948_s6 + $0x98] sm:$0xff] %v398_v23  ;;  %v440_v44 = vld [vmem:[%s1943_s5 + $0x280] sm:$0xff]  ;;  %v442_v45 = vld [vmem:[%s1943_s5 + $0x290] sm:$0xff] }
  0x4b   : > { %401 = vst [vmem:[%s1948_s6 + $0xa0] sm:$0xff] %v400_v24  ;;  %v444_v46 = vld [vmem:[%s1943_s5 + $0x2a0] sm:$0xff]  ;;  %v446_v47 = vld [vmem:[%s1943_s5 + $0x2b0] sm:$0xff] }
  0x4c   : > { %403 = vst [vmem:[%s1948_s6 + $0xa8] sm:$0xff] %v402_v25  ;;  %v448_v48 = vld [vmem:[%s1943_s5 + $0x2c0] sm:$0xff]  ;;  %v450_v49 = vld [vmem:[%s1943_s5 + $0x2d0] sm:$0xff] }
  0x4d   : > { %405 = vst [vmem:[%s1948_s6 + $0xb0] sm:$0xff] %v404_v26  ;;  %v452_v50 = vld [vmem:[%s1943_s5 + $0x2e0] sm:$0xff]  ;;  %v454_v51 = vld [vmem:[%s1943_s5 + $0x2f0] sm:$0xff] }
  0x4e   : > { %407 = vst [vmem:[%s1948_s6 + $0xb8] sm:$0xff] %v406_v27  ;;  %v456_v52 = vld [vmem:[%s1943_s5 + $0x300] sm:$0xff]  ;;  %v458_v53 = vld [vmem:[%s1943_s5 + $0x310] sm:$0xff] }
  0x4f   : > { %409 = vst [vmem:[%s1948_s6 + $0xc0] sm:$0xff] %v408_v28  ;;  %v460_v54 = vld [vmem:[%s1943_s5 + $0x320] sm:$0xff]  ;;  %v462_v55 = vld [vmem:[%s1943_s5 + $0x330] sm:$0xff] }
  0x50   : > { %411 = vst [vmem:[%s1948_s6 + $0xc8] sm:$0xff] %v410_v29  ;;  %v464_v56 = vld [vmem:[%s1943_s5 + $0x340] sm:$0xff]  ;;  %v466_v57 = vld [vmem:[%s1943_s5 + $0x350] sm:$0xff] }
  0x51   : > { %413 = vst [vmem:[%s1948_s6 + $0xd0] sm:$0xff] %v412_v30  ;;  %v468_v58 = vld [vmem:[%s1943_s5 + $0x360] sm:$0xff]  ;;  %v470_v59 = vld [vmem:[%s1943_s5 + $0x370] sm:$0xff] }
  0x52   : > { %415 = vst [vmem:[%s1948_s6 + $0xd8] sm:$0xff] %v414_v31  ;;  %v472_v60 = vld [vmem:[%s1943_s5 + $0x380] sm:$0xff]  ;;  %v474_v61 = vld [vmem:[%s1943_s5 + $0x390] sm:$0xff] }
  0x53   : > { %417 = vst [vmem:[%s1948_s6 + $0xe0] sm:$0xff] %v416_v32  ;;  %v476_v62 = vld [vmem:[%s1943_s5 + $0x3a0] sm:$0xff]  ;;  %v478_v63 = vld [vmem:[%s1943_s5 + $0x3b0] sm:$0xff] }
  0x54   : > { %419 = vst [vmem:[%s1948_s6 + $0xe8] sm:$0xff] %v418_v33  ;;  %v480_v0 = vld [vmem:[%s1943_s5 + $0x3c0] sm:$0xff]  ;;  %v482_v1 = vld [vmem:[%s1943_s5 + $0x3d0] sm:$0xff] }
  0x55   : > { %421 = vst [vmem:[%s1948_s6 + $0xf0] sm:$0xff] %v420_v34  ;;  %v484_v2 = vld [vmem:[%s1943_s5 + $0x3e0] sm:$0xff]  ;;  %v486_v3 = vld [vmem:[%s1943_s5 + $0x3f0] sm:$0xff] }
  0x56   : > { %423 = vst [vmem:[%s1948_s6 + $0xf8] sm:$0xff] %v422_v35 }
  0x57   : > { %425 = vst [vmem:[%s1948_s6 + $0x100] sm:$0xff] %v424_v36 }
  0x58   : > { %427 = vst [vmem:[%s1948_s6 + $0x108] sm:$0xff] %v426_v37 }
  0x59   : > { %429 = vst [vmem:[%s1948_s6 + $0x110] sm:$0xff] %v428_v38 }
  0x5a   : > { %431 = vst [vmem:[%s1948_s6 + $0x118] sm:$0xff] %v430_v39 }
  0x5b   : > { %433 = vst [vmem:[%s1948_s6 + $0x120] sm:$0xff] %v432_v40 }
  0x5c   : > { %435 = vst [vmem:[%s1948_s6 + $0x128] sm:$0xff] %v434_v41 }
  0x5d   : > { %437 = vst [vmem:[%s1948_s6 + $0x130] sm:$0xff] %v436_v42 }
  0x5e   : > { %439 = vst [vmem:[%s1948_s6 + $0x138] sm:$0xff] %v438_v43 }
  0x5f   : > { %441 = vst [vmem:[%s1948_s6 + $0x140] sm:$0xff] %v440_v44 }
  0x60   : > { %443 = vst [vmem:[%s1948_s6 + $0x148] sm:$0xff] %v442_v45 }
  0x61   : > { %445 = vst [vmem:[%s1948_s6 + $0x150] sm:$0xff] %v444_v46 }
  0x62   : > { %447 = vst [vmem:[%s1948_s6 + $0x158] sm:$0xff] %v446_v47 }
  0x63   : > { %449 = vst [vmem:[%s1948_s6 + $0x160] sm:$0xff] %v448_v48 }
  0x64   : > { %451 = vst [vmem:[%s1948_s6 + $0x168] sm:$0xff] %v450_v49 }
  0x65   : > { %453 = vst [vmem:[%s1948_s6 + $0x170] sm:$0xff] %v452_v50 }
  0x66   : > { %455 = vst [vmem:[%s1948_s6 + $0x178] sm:$0xff] %v454_v51 }
  0x67   : > { %457 = vst [vmem:[%s1948_s6 + $0x180] sm:$0xff] %v456_v52 }
  0x68   : > { %459 = vst [vmem:[%s1948_s6 + $0x188] sm:$0xff] %v458_v53 }
  0x69   : > { %461 = vst [vmem:[%s1948_s6 + $0x190] sm:$0xff] %v460_v54 }
  0x6a   : > { %463 = vst [vmem:[%s1948_s6 + $0x198] sm:$0xff] %v462_v55 }
  0x6b   : > { %465 = vst [vmem:[%s1948_s6 + $0x1a0] sm:$0xff] %v464_v56 }
  0x6c   : > { %467 = vst [vmem:[%s1948_s6 + $0x1a8] sm:$0xff] %v466_v57 }
  0x6d   : > { %469 = vst [vmem:[%s1948_s6 + $0x1b0] sm:$0xff] %v468_v58 }
  0x6e   : > { %471 = vst [vmem:[%s1948_s6 + $0x1b8] sm:$0xff] %v470_v59 }
  0x6f   : > { %473 = vst [vmem:[%s1948_s6 + $0x1c0] sm:$0xff] %v472_v60 }
  0x70   : > { %475 = vst [vmem:[%s1948_s6 + $0x1c8] sm:$0xff] %v474_v61 }
  0x71   : > { %477 = vst [vmem:[%s1948_s6 + $0x1d0] sm:$0xff] %v476_v62 }
  0x72   : > { %479 = vst [vmem:[%s1948_s6 + $0x1d8] sm:$0xff] %v478_v63 }
  0x73   : > { %481 = vst [vmem:[%s1948_s6 + $0x1e0] sm:$0xff] %v480_v0 }
  0x74   : > { %483 = vst [vmem:[%s1948_s6 + $0x1e8] sm:$0xff] %v482_v1 }
  0x75   : > { %485 = vst [vmem:[%s1948_s6 + $0x1f0] sm:$0xff] %v484_v2 }
  0x76   : > { %487 = vst [vmem:[%s1948_s6 + $0x1f8] sm:$0xff] %v486_v3 }
  0x77 PF: > { %p1276_p0 = scmp.ge.s32.totalorder %s1806_s22, 1  ;;  %p500_p1 = scmp.lt.s32.totalorder %s1806_s22, 19 }
  0x79   : > { %p501_p2 = pnand %p1276_p0, %p500_p1 }
  0x7a   : > { %s507_s0 = sand.u32 (!%p501_p2), 1, %s1782_s16   ;;  %s514_s23 = sand.u32 (!%p501_p2), 1, %s1774_s14  }
  0x7b   : > { %504 = sbr.rel (%p501_p2) target bundleno = 375 (0x177), region = 85  ;;  %s1277_s28 = sshll.u32 (!%p501_p2), %s507_s0, 5 }
  0x7c   : > { %s1278_s7 = sshll.u32 (!%p501_p2), %s514_s23, 9  ;;  %s541_s11 = sand.u32 (!%p501_p2), 1, %s1766_s12  }
  0x7d   : > { %s1280_s26 = sshll.u32 (!%p501_p2), %s1794_s19, 1  ;;  %s1279_s29 = sshll.u32 (!%p501_p2), %s541_s11, 5 }
  0x7e   : > { %p549_p3 = scmp.lt.s32.totalorder (!%p501_p2), %s1280_s26, 3  ;;  %s2087_s6 = scalar_lea.vmem (!%p501_p2), [#allocation3], %s1277_s28 }
  0x7f   : > { %s2089_s1 = scalar_lea.vmem (!%p501_p2), [#allocation4], %s1278_s7  ;;  %s2091_s25 = scalar_lea.vmem (!%p501_p2), [#allocation5], %s1279_s29 }
  0x80   : > { %s2330_s26 = smov (!%p549_p3, %s1280_s26), 3  ;;  %p1281_p4 = scmp.ne.s32.totalorder %s1790_s18, 0 }
  0x81   : > { %s551_s5 = scalar_lea.vmem %s2301_s2, %s2330_s26 }
  0x82   : > { %558 = sbr.rel (%p1281_p4) target bundleno = 140 (0x8c), region = 97 }
  0x87   : > { %v1808_v4 = vmov 0.0  }
  0x88   : > { %559 = vst [vmem:[#allocation2 + $0x10] sm:$0xff] %v1808_v4 }
  0x89   : > { %560 = vst [vmem:[#allocation2] sm:$0xff] %v1808_v4 }
  0x8a   : > { %561 = vst [vmem:[#allocation2 + $0x18] sm:$0xff] %v1808_v4 }
  0x8b   : > { %562 = vst [vmem:[#allocation2 + $0x8] sm:$0xff] %v1808_v4 }
  0x8c PF: > { %v1356_v5 = vld [vmem:[%s2089_s1 + $0x70] sm:$0xf]  ;;  %v1581_v6 = vld [vmem:[%s2089_s1 + $0x74] sm:$0xf0]  ;;  %v1348_v16 = vld [vmem:[%s2089_s1 + $0x60] sm:$0xf] }
  0x8d   : > { %v1420_v7 = vld [vmem:[%s2089_s1 + $0xf0] sm:$0xf]  ;;  %v1357_v8 = vor.u32 %v1581_v6, %v1356_v5  ;;  %v1597_v9 = vld [vmem:[%s2089_s1 + $0xf4] sm:$0xf0]  ;;  %v1579_v18 = vld [vmem:[%s2089_s1 + $0x64] sm:$0xf0] }
  0x8e   : > { %v1484_v10 = vld [vmem:[%s2089_s1 + $0x170] sm:$0xf]  ;;  %v1613_v11 = vld [vmem:[%s2089_s1 + $0x174] sm:$0xf0]  ;;  %v1421_v12 = vor.u32 %v1597_v9, %v1420_v7  ;;  %v1412_v19 = vld [vmem:[%s2089_s1 + $0xe0] sm:$0xf]  ;;  %v1349_v21 = vor.u32 %v1579_v18, %v1348_v16 }
  0x8f   : > { %v1485_v13 = vor.u32 %v1613_v11, %v1484_v10  ;;  %v1548_v14 = vld [vmem:[%s2089_s1 + $0x1f0] sm:$0xf]  ;;  %v1629_v15 = vld [vmem:[%s2089_s1 + $0x1f4] sm:$0xf0]  ;;  %975 = vmatpush.bf16.msra.mxu0 %v1357_v8  ;;  %v1595_v20 = vld [vmem:[%s2089_s1 + $0xe4] sm:$0xf0] }
  0x90   : > { %v1549_v17 = vor.u32 %v1629_v15, %v1548_v14  ;;  %989 = vmatpush.bf16.msra.mxu1 %v1421_v12  ;;  %v1413_v22 = vor.u32 %v1595_v20, %v1412_v19  ;;  %v1476_v23 = vld [vmem:[%s2089_s1 + $0x160] sm:$0xf]  ;;  %v1611_v24 = vld [vmem:[%s2089_s1 + $0x164] sm:$0xf0]  ;;  %v1340_v28 = vld [vmem:[%s2089_s1 + $0x50] sm:$0xf] }
  0x91   : > { %1003 = vmatpush.bf16.msra.mxu2 %v1485_v13  ;;  %v1540_v25 = vld [vmem:[%s2089_s1 + $0x1e0] sm:$0xf]  ;;  %v1477_v26 = vor.u32 %v1611_v24, %v1476_v23  ;;  %v1627_v27 = vld [vmem:[%s2089_s1 + $0x1e4] sm:$0xf0]  ;;  %v1577_v29 = vld [vmem:[%s2089_s1 + $0x54] sm:$0xf0] }
  0x92   : > { %1017 = vmatpush.bf16.msra.mxu3 %v1549_v17  ;;  %v1541_v30 = vor.u32 %v1627_v27, %v1540_v25  ;;  %v1404_v31 = vld [vmem:[%s2089_s1 + $0xd0] sm:$0xf]  ;;  %v1593_v32 = vld [vmem:[%s2089_s1 + $0xd4] sm:$0xf0]  ;;  %v1341_v34 = vor.u32 %v1577_v29, %v1340_v28  ;;  %v1332_v40 = vld [vmem:[%s2089_s1 + $0x40] sm:$0xf] }
  0x93   : > { %v1468_v33 = vld [vmem:[%s2089_s1 + $0x150] sm:$0xf]  ;;  %976 = vmatpush.bf16.msra.mxu0 %v1349_v21  ;;  %v1609_v35 = vld [vmem:[%s2089_s1 + $0x154] sm:$0xf0]  ;;  %v1405_v38 = vor.u32 %v1593_v32, %v1404_v31  ;;  %v1575_v41 = vld [vmem:[%s2089_s1 + $0x44] sm:$0xf0] }
  0x94   : > { %v1532_v36 = vld [vmem:[%s2089_s1 + $0x1d0] sm:$0xf]  ;;  %v1625_v37 = vld [vmem:[%s2089_s1 + $0x1d4] sm:$0xf0]  ;;  %990 = vmatpush.bf16.msra.mxu1 %v1413_v22  ;;  %v1469_v39 = vor.u32 %v1609_v35, %v1468_v33  ;;  %v1396_v42 = vld [vmem:[%s2089_s1 + $0xc0] sm:$0xf]  ;;  %v1333_v49 = vor.u32 %v1575_v41, %v1332_v40 }
  0x95   : > { %1004 = vmatpush.bf16.msra.mxu2 %v1477_v26  ;;  %v1533_v43 = vor.u32 %v1625_v37, %v1532_v36  ;;  %v1591_v44 = vld [vmem:[%s2089_s1 + $0xc4] sm:$0xf0]  ;;  %v1460_v45 = vld [vmem:[%s2089_s1 + $0x140] sm:$0xf]  ;;  %v1324_v52 = vld [vmem:[%s2089_s1 + $0x30] sm:$0xf] }
  0x96   : > { %1018 = vmatpush.bf16.msra.mxu3 %v1541_v30  ;;  %v1607_v46 = vld [vmem:[%s2089_s1 + $0x144] sm:$0xf0]  ;;  %v1524_v47 = vld [vmem:[%s2089_s1 + $0x1c0] sm:$0xf]  ;;  %v1397_v50 = vor.u32 %v1591_v44, %v1396_v42  ;;  %v1573_v53 = vld [vmem:[%s2089_s1 + $0x34] sm:$0xf0] }
  0x97   : > { %v1623_v48 = vld [vmem:[%s2089_s1 + $0x1c4] sm:$0xf0]  ;;  %977 = vmatpush.bf16.msra.mxu0 %v1341_v34  ;;  %v1461_v51 = vor.u32 %v1607_v46, %v1460_v45  ;;  %v1388_v54 = vld [vmem:[%s2089_s1 + $0xb0] sm:$0xf]  ;;  %v1589_v56 = vld [vmem:[%s2089_s1 + $0xb4] sm:$0xf0]  ;;  %v1325_v61 = vor.u32 %v1573_v53, %v1324_v52 }
  0x98   : > { %991 = vmatpush.bf16.msra.mxu1 %v1405_v38  ;;  %v1525_v55 = vor.u32 %v1623_v48, %v1524_v47  ;;  %v1452_v57 = vld [vmem:[%s2089_s1 + $0x130] sm:$0xf]  ;;  %v1605_v58 = vld [vmem:[%s2089_s1 + $0x134] sm:$0xf0]  ;;  %v1389_v62 = vor.u32 %v1589_v56, %v1388_v54  ;;  %v1316_v0 = vld [vmem:[%s2089_s1 + $0x20] sm:$0xf] }
  0x99   : > { %1005 = vmatpush.bf16.msra.mxu2 %v1469_v39  ;;  %v1516_v59 = vld [vmem:[%s2089_s1 + $0x1b0] sm:$0xf]  ;;  %v1621_v60 = vld [vmem:[%s2089_s1 + $0x1b4] sm:$0xf0]  ;;  %v1453_v63 = vor.u32 %v1605_v58, %v1452_v57  ;;  %v1571_v1 = vld [vmem:[%s2089_s1 + $0x24] sm:$0xf0] }
  0x9a   : > { %1019 = vmatpush.bf16.msra.mxu3 %v1533_v43  ;;  %v1380_v2 = vld [vmem:[%s2089_s1 + $0xa0] sm:$0xf]  ;;  %v1517_v3 = vor.u32 %v1621_v60, %v1516_v59  ;;  %v1587_v4 = vld [vmem:[%s2089_s1 + $0xa4] sm:$0xf0]  ;;  %v1317_v9 = vor.u32 %v1571_v1, %v1316_v0  ;;  %v1308_v12 = vld [vmem:[%s2089_s1 + $0x10] sm:$0xf] }
  0x9b   : > { %978 = vmatpush.bf16.msra.mxu0 %v1333_v49  ;;  %v1444_v5 = vld [vmem:[%s2089_s1 + $0x120] sm:$0xf]  ;;  %v1603_v6 = vld [vmem:[%s2089_s1 + $0x124] sm:$0xf0]  ;;  %v1381_v10 = vor.u32 %v1587_v4, %v1380_v2  ;;  %v1569_v13 = vld [vmem:[%s2089_s1 + $0x14] sm:$0xf0] }
  0x9c   : > { %992 = vmatpush.bf16.msra.mxu1 %v1397_v50  ;;  %v1508_v7 = vld [vmem:[%s2089_s1 + $0x1a0] sm:$0xf]  ;;  %v1619_v8 = vld [vmem:[%s2089_s1 + $0x1a4] sm:$0xf0]  ;;  %v1445_v11 = vor.u32 %v1603_v6, %v1444_v5  ;;  %v1372_v14 = vld [vmem:[%s2089_s1 + $0x90] sm:$0xf]  ;;  %v1309_v22 = vor.u32 %v1569_v13, %v1308_v12 }
  0x9d   : > { %1006 = vmatpush.bf16.msra.mxu2 %v1461_v51  ;;  %v1509_v15 = vor.u32 %v1619_v8, %v1508_v7  ;;  %v1585_v16 = vld [vmem:[%s2089_s1 + $0x94] sm:$0xf0]  ;;  %v1436_v17 = vld [vmem:[%s2089_s1 + $0x110] sm:$0xf]  ;;  %v1300_v21 = vld [vmem:[%s2089_s1] sm:$0xf] }
  0x9e   : > { %1020 = vmatpush.bf16.msra.mxu3 %v1525_v55  ;;  %v1601_v18 = vld [vmem:[%s2089_s1 + $0x114] sm:$0xf0]  ;;  %v1500_v19 = vld [vmem:[%s2089_s1 + $0x190] sm:$0xf]  ;;  %v1567_v23 = vld [vmem:[%s2089_s1 + $0x4] sm:$0xf0]  ;;  %v1373_v26 = vor.u32 %v1585_v16, %v1372_v14 }
  0x9f   : > { %979 = vmatpush.bf16.msra.mxu0 %v1325_v61  ;;  %v1617_v20 = vld [vmem:[%s2089_s1 + $0x194] sm:$0xf0]  ;;  %v1364_v24 = vld [vmem:[%s2089_s1 + $0x80] sm:$0xf]  ;;  %v1583_v25 = vld [vmem:[%s2089_s1 + $0x84] sm:$0xf0]  ;;  %v1437_v27 = vor.u32 %v1601_v18, %v1436_v17  ;;  %v1301_v38 = vor.u32 %v1567_v23, %v1300_v21 }
  0xa0   : > { %993 = vmatpush.bf16.msra.mxu1 %v1389_v62  ;;  %v1428_v28 = vld [vmem:[%s2089_s1 + $0x100] sm:$0xf]  ;;  %v1599_v29 = vld [vmem:[%s2089_s1 + $0x104] sm:$0xf0]  ;;  %v1501_v31 = vor.u32 %v1617_v20, %v1500_v19  ;;  %v1580_v33 = vld [vmem:[%s2089_s1 + $0x74] sm:$0xf]  ;;  %v1365_v42 = vor.u32 %v1583_v25, %v1364_v24 }
  0xa1   : > { %1007 = vmatpush.bf16.msra.mxu2 %v1453_v63  ;;  %v1492_v30 = vld [vmem:[%s2089_s1 + $0x180] sm:$0xf]  ;;  %v1615_v32 = vld [vmem:[%s2089_s1 + $0x184] sm:$0xf0]  ;;  %v1358_v34 = vld [vmem:[%s2089_s1 + $0x78] sm:$0xf0]  ;;  %v1429_v43 = vor.u32 %v1599_v29, %v1428_v28 }
  0xa2   : > { %1021 = vmatpush.bf16.msra.mxu3 %v1517_v3  ;;  %v1596_v35 = vld [vmem:[%s2089_s1 + $0xf4] sm:$0xf]  ;;  %v1422_v36 = vld [vmem:[%s2089_s1 + $0xf8] sm:$0xf0]  ;;  %v1578_v44 = vld [vmem:[%s2089_s1 + $0x64] sm:$0xf]  ;;  %v1493_v48 = vor.u32 %v1615_v32, %v1492_v30  ;;  %v1361_v49 = vor.u32 %v1580_v33, %v1358_v34 }
  0xa3   : > { %980 = vmatpush.bf16.msra.mxu0 %v1317_v9  ;;  %v1612_v37 = vld [vmem:[%s2089_s1 + $0x174] sm:$0xf]  ;;  %v1486_v39 = vld [vmem:[%s2089_s1 + $0x178] sm:$0xf0]  ;;  %v1350_v45 = vld [vmem:[%s2089_s1 + $0x68] sm:$0xf0]  ;;  %v1425_v54 = vor.u32 %v1596_v35, %v1422_v36 }
  0xa4   : > { %994 = vmatpush.bf16.msra.mxu1 %v1381_v10  ;;  %v1628_v40 = vld [vmem:[%s2089_s1 + $0x1f4] sm:$0xf]  ;;  %v1550_v41 = vld [vmem:[%s2089_s1 + $0x1f8] sm:$0xf0]  ;;  %v1292_v46 = vld [vmem:[%s2087_s6 + $0x8] sm:$0xf]  ;;  %v1489_v55 = vor.u32 %v1612_v37, %v1486_v39  ;;  %v1353_v4 = vor.u32 %v1578_v44, %v1350_v45 }
  0xa5   : > { %1008 = vmatpush.bf16.msra.mxu2 %v1445_v11  ;;  %v1565_v47 = vld [vmem:[%s2087_s6 + $0x14] sm:$0xf0]  ;;  %v1594_v50 = vld [vmem:[%s2089_s1 + $0xe4] sm:$0xf]  ;;  %v1414_v51 = vld [vmem:[%s2089_s1 + $0xe8] sm:$0xf0]  ;;  %v1553_v59 = vor.u32 %v1628_v40, %v1550_v41 }
  0xa6   : > { %1022 = vmatpush.bf16.msra.mxu3 %v1509_v15  ;;  %v1610_v52 = vld [vmem:[%s2089_s1 + $0x164] sm:$0xf]  ;;  %v1478_v53 = vld [vmem:[%s2089_s1 + $0x168] sm:$0xf0]  ;;  %v1294_v57 = vld [vmem:[%s2087_s6 + $0x18] sm:$0xf0]  ;;  %v2177_v60 = vor.u32 %v1565_v47, %v1292_v46  ;;  %v1417_v6 = vor.u32 %v1594_v50, %v1414_v51 }
  0xa7   : > { %981 = vmatpush.bf16.msra.mxu0 %v1309_v22  ;;  %v1563_v56 = vld [vmem:[%s2087_s6 + $0xc] sm:$0xf]  ;;  %v1284_v58 = vld [vmem:[%s2087_s6] sm:$0xf]  ;;  %v1564_v61 = vld [vmem:[%s2087_s6 + $0xc] sm:$0xf0]  ;;  %v1481_v7 = vor.u32 %v1610_v52, %v1478_v53 }
  0xa8   : > { %995 = vmatpush.bf16.msra.mxu1 %v1373_v26  ;;  %v1562_v62 = vld [vmem:[%s2087_s6 + $0x4] sm:$0xf]  ;;  %v1286_v63 = vld [vmem:[%s2087_s6 + $0x10] sm:$0xf0]  ;;  %v1542_v1 = vld [vmem:[%s2089_s1 + $0x1e8] sm:$0xf0]  ;;  %v2184_v2 = vor.u32 %v1563_v56, %v1294_v57  ;;  %v2186_v3 = vor.u32 %v1564_v61, %v1284_v58 }
  0xa9   : > { %1009 = vmatpush.bf16.msra.mxu2 %v1437_v27  ;;  %v1626_v0 = vld [vmem:[%s2089_s1 + $0x1e4] sm:$0xf]  ;;  %v2188_v5 = vor.u32 %v1562_v62, %v1286_v63  ;;  %v1576_v8 = vld [vmem:[%s2089_s1 + $0x54] sm:$0xf]  ;;  %v1342_v9 = vld [vmem:[%s2089_s1 + $0x58] sm:$0xf0] }
  0xaa   : > { %1023 = vmatpush.bf16.msra.mxu3 %v1501_v31  ;;  %v1592_v10 = vld [vmem:[%s2089_s1 + $0xd4] sm:$0xf]  ;;  %v1545_v11 = vor.u32 %v1626_v0, %v1542_v1  ;;  %v1406_v12 = vld [vmem:[%s2089_s1 + $0xd8] sm:$0xf0]  ;;  %v1345_v17 = vor.u32 %v1576_v8, %v1342_v9  ;;  %v1574_v20 = vld [vmem:[%s2089_s1 + $0x44] sm:$0xf] }
  0xab   : > { %982 = vmatpush.bf16.msra.mxu0 %v1301_v38  ;;  %v1608_v13 = vld [vmem:[%s2089_s1 + $0x154] sm:$0xf]  ;;  %v1470_v14 = vld [vmem:[%s2089_s1 + $0x158] sm:$0xf0]  ;;  %v1409_v18 = vor.u32 %v1592_v10, %v1406_v12  ;;  %v1334_v21 = vld [vmem:[%s2089_s1 + $0x48] sm:$0xf0] }
  0xac   : > { %996 = vmatpush.bf16.msra.mxu1 %v1365_v42  ;;  %v1624_v15 = vld [vmem:[%s2089_s1 + $0x1d4] sm:$0xf]  ;;  %v1534_v16 = vld [vmem:[%s2089_s1 + $0x1d8] sm:$0xf0]  ;;  %v1473_v19 = vor.u32 %v1608_v13, %v1470_v14  ;;  %v1590_v22 = vld [vmem:[%s2089_s1 + $0xc4] sm:$0xf]  ;;  %v1337_v29 = vor.u32 %v1574_v20, %v1334_v21 }
  0xad   : > { %1010 = vmatpush.bf16.msra.mxu2 %v1429_v43  ;;  %v1537_v23 = vor.u32 %v1624_v15, %v1534_v16  ;;  %v1398_v24 = vld [vmem:[%s2089_s1 + $0xc8] sm:$0xf0]  ;;  %v1606_v25 = vld [vmem:[%s2089_s1 + $0x144] sm:$0xf]  ;;  %v1572_v32 = vld [vmem:[%s2089_s1 + $0x34] sm:$0xf] }
  0xae   : > { %1024 = vmatpush.bf16.msra.mxu3 %v1493_v48  ;;  %983 = vmatmul.bf16.vlgmr.msra.gmra.mxu0 %v2186_v3  ;;  %v1462_v26 = vld [vmem:[%s2089_s1 + $0x148] sm:$0xf0]  ;;  %v1622_v27 = vld [vmem:[%s2089_s1 + $0x1c4] sm:$0xf]  ;;  %v1401_v30 = vor.u32 %v1590_v22, %v1398_v24  ;;  %v1326_v33 = vld [vmem:[%s2089_s1 + $0x38] sm:$0xf0] }
  0xaf   : > { %1031 = vmatpush.bf16.msrb.mxu0 %v1361_v49  ;;  %997 = vmatmul.bf16.vlgmr.msra.gmra.mxu1 %v2188_v5  ;;  %v1526_v28 = vld [vmem:[%s2089_s1 + $0x1c8] sm:$0xf0]  ;;  %v1465_v31 = vor.u32 %v1606_v25, %v1462_v26  ;;  %v1588_v34 = vld [vmem:[%s2089_s1 + $0xb4] sm:$0xf]  ;;  %v1390_v36 = vld [vmem:[%s2089_s1 + $0xb8] sm:$0xf0]  ;;  %v1329_v41 = vor.u32 %v1572_v32, %v1326_v33 }
  0xb0   : > { %1045 = vmatpush.bf16.msrb.mxu1 %v1425_v54  ;;  %1011 = vmatmul.bf16.vlgmr.msra.gmra.mxu2 %v2177_v60  ;;  %v1529_v35 = vor.u32 %v1622_v27, %v1526_v28  ;;  %v1604_v37 = vld [vmem:[%s2089_s1 + $0x134] sm:$0xf]  ;;  %v1454_v38 = vld [vmem:[%s2089_s1 + $0x138] sm:$0xf0]  ;;  %v1393_v42 = vor.u32 %v1588_v34, %v1390_v36  ;;  %v1570_v44 = vld [vmem:[%s2089_s1 + $0x24] sm:$0xf] }
  0xb1   : > { %1059 = vmatpush.bf16.msrb.mxu2 %v1489_v55  ;;  %1025 = vmatmul.bf16.vlgmr.msra.gmra.mxu3 %v2184_v2  ;;  %v1620_v39 = vld [vmem:[%s2089_s1 + $0x1b4] sm:$0xf]  ;;  %v1518_v40 = vld [vmem:[%s2089_s1 + $0x1b8] sm:$0xf0]  ;;  %v1457_v43 = vor.u32 %v1604_v37, %v1454_v38  ;;  %v1318_v45 = vld [vmem:[%s2089_s1 + $0x28] sm:$0xf0] }
  0xb2   : > { %1073 = vmatpush.bf16.msrb.mxu3 %v1553_v59  ;;  %v1586_v46 = vld [vmem:[%s2089_s1 + $0xa4] sm:$0xf]  ;;  %v1521_v47 = vor.u32 %v1620_v39, %v1518_v40  ;;  %v1382_v48 = vld [vmem:[%s2089_s1 + $0xa8] sm:$0xf0]  ;;  %v1321_v53 = vor.u32 %v1570_v44, %v1318_v45  ;;  %v1568_v56 = vld [vmem:[%s2089_s1 + $0x14] sm:$0xf] }
  0xb3   : > { %1032 = vmatpush.bf16.msrb.mxu0 %v1353_v4  ;;  %v1602_v49 = vld [vmem:[%s2089_s1 + $0x124] sm:$0xf]  ;;  %v1446_v50 = vld [vmem:[%s2089_s1 + $0x128] sm:$0xf0]  ;;  %v1385_v54 = vor.u32 %v1586_v46, %v1382_v48  ;;  %v1310_v57 = vld [vmem:[%s2089_s1 + $0x18] sm:$0xf0] }
  0xb4   : > { %1046 = vmatpush.bf16.msrb.mxu1 %v1417_v6  ;;  %v1618_v51 = vld [vmem:[%s2089_s1 + $0x1a4] sm:$0xf]  ;;  %v1510_v52 = vld [vmem:[%s2089_s1 + $0x1a8] sm:$0xf0]  ;;  %v1449_v55 = vor.u32 %v1602_v49, %v1446_v50  ;;  %v1584_v58 = vld [vmem:[%s2089_s1 + $0x94] sm:$0xf]  ;;  %v1313_v4 = vor.u32 %v1568_v56, %v1310_v57 }
  0xb5   : > { %1060 = vmatpush.bf16.msrb.mxu2 %v1481_v7  ;;  %v1513_v59 = vor.u32 %v1618_v51, %v1510_v52  ;;  %v1374_v61 = vld [vmem:[%s2089_s1 + $0x98] sm:$0xf0]  ;;  %v1600_v62 = vld [vmem:[%s2089_s1 + $0x114] sm:$0xf]  ;;  %v1566_v8 = vld [vmem:[%s2089_s1 + $0x4] sm:$0xf] }
  0xb6   : > { %1074 = vmatpush.bf16.msrb.mxu3 %v1545_v11  ;;  %v1438_v63 = vld [vmem:[%s2089_s1 + $0x118] sm:$0xf0]  ;;  %v1616_v0 = vld [vmem:[%s2089_s1 + $0x194] sm:$0xf]  ;;  %v1377_v6 = vor.u32 %v1584_v58, %v1374_v61  ;;  %v1302_v9 = vld [vmem:[%s2089_s1 + $0x8] sm:$0xf0] }
  0xb7   : > { %1033 = vmatpush.bf16.msrb.mxu0 %v1345_v17  ;;  %v1502_v1 = vld [vmem:[%s2089_s1 + $0x198] sm:$0xf0]  ;;  %v1441_v7 = vor.u32 %v1600_v62, %v1438_v63  ;;  %v1582_v10 = vld [vmem:[%s2089_s1 + $0x84] sm:$0xf]  ;;  %v1366_v12 = vld [vmem:[%s2089_s1 + $0x88] sm:$0xf0]  ;;  %v1305_v17 = vor.u32 %v1566_v8, %v1302_v9 }
  0xb8   : > { %1047 = vmatpush.bf16.msrb.mxu1 %v1409_v18  ;;  %v1505_v11 = vor.u32 %v1616_v0, %v1502_v1  ;;  %v1598_v13 = vld [vmem:[%s2089_s1 + $0x104] sm:$0xf]  ;;  %v1430_v14 = vld [vmem:[%s2089_s1 + $0x108] sm:$0xf0]  ;;  %v1369_v18 = vor.u32 %v1582_v10, %v1366_v12  ;;  %v563_v27 = vld [vmem:[#allocation2 + $0x10] sm:$0xff]  ;;  %p1554_p5 = scmp.ne.s32.totalorder %s1790_s18, 8 }
  0xb9   : > { %1061 = vmatpush.bf16.msrb.mxu2 %v1473_v19  ;;  %v1614_v15 = vld [vmem:[%s2089_s1 + $0x184] sm:$0xf]  ;;  %v1494_v16 = vld [vmem:[%s2089_s1 + $0x188] sm:$0xf0]  ;;  %v1433_v19 = vor.u32 %v1598_v13, %v1430_v14  ;;  %v565_v34 = vld [vmem:[#allocation2 + $0x18] sm:$0xff] }
  0xba   : > { %1075 = vmatpush.bf16.msrb.mxu3 %v1537_v23  ;;  %v1497_v20 = vor.u32 %v1614_v15, %v1494_v16  ;;  %v566_v49 = vld [vmem:[#allocation2 + $0x8] sm:$0xff] }
  0xbb   : > { %1034 = vmatpush.bf16.msrb.mxu0 %v1337_v29 }
  0xbc   : > { %1048 = vmatpush.bf16.msrb.mxu1 %v1401_v30 }
  0xbd   : > { %1062 = vmatpush.bf16.msrb.mxu2 %v1465_v31 }
  0xbe   : > { %1076 = vmatpush.bf16.msrb.mxu3 %v1529_v35 }
  0xbf   : > { %1035 = vmatpush.bf16.msrb.mxu0 %v1329_v41  ;;  %v564_v41 = vld [vmem:[#allocation2] sm:$0xff] }
  0xc0   : > { %1049 = vmatpush.bf16.msrb.mxu1 %v1393_v42 }
  0xc1   : > { %1063 = vmatpush.bf16.msrb.mxu2 %v1457_v43 }
  0xc2   : > { %1077 = vmatpush.bf16.msrb.mxu3 %v1521_v47 }
  0xc3   : > { %1036 = vmatpush.bf16.msrb.mxu0 %v1321_v53 }
  0xc4   : > { %1050 = vmatpush.bf16.msrb.mxu1 %v1385_v54 }
  0xc5   : > { %1064 = vmatpush.bf16.msrb.mxu2 %v1449_v55 }
  0xc6   : > { %1078 = vmatpush.bf16.msrb.mxu3 %v1513_v59 }
  0xc7   : > { %1037 = vmatpush.bf16.msrb.mxu0 %v1313_v4 }
  0xc8   : > { %1051 = vmatpush.bf16.msrb.mxu1 %v1377_v6 }
  0xc9   : > { %1065 = vmatpush.bf16.msrb.mxu2 %v1441_v7 }
  0xca   : > { %1079 = vmatpush.bf16.msrb.mxu3 %v1505_v11 }
  0xcb   : > { %1038 = vmatpush.bf16.msrb.mxu0 %v1305_v17 }
  0xcc   : > { %1052 = vmatpush.bf16.msrb.mxu1 %v1369_v18 }
  0xcd   : > { %1066 = vmatpush.bf16.msrb.mxu2 %v1433_v19 }
  0xce   : > { %1080 = vmatpush.bf16.msrb.mxu3 %v1497_v20  ;;  %1039 = vmatmul.bf16.vlgmr.msrb.gmra.mxu0 %v2186_v3 }
  0xcf   : > { %1053 = vmatmul.bf16.vlgmr.msrb.gmra.mxu1 %v2188_v5 }
  0xd0   : > { %1067 = vmatmul.bf16.vlgmr.msrb.gmra.mxu2 %v2177_v60 }
  0xd1   : > { %1081 = vmatmul.bf16.vlgmr.msrb.gmra.mxu3 %v2184_v2 }
 0x12b   : > { %v984_v21 = vpop.f32.mrf.mxu0 }
 0x12c   : > { %v998_v22 = vpop.f32.mrf.mxu1 }
 0x12d   : > { %v999_v23 = vadd.f32 %v998_v22, %v984_v21 }
 0x133   : > { %v1012_v24 = vpop.f32.mrf.mxu2  ;;  %v986_v29 = vpop.f32.mrf.mxu0 }
 0x134   : > { %v1013_v25 = vadd.f32 %v1012_v24, %v999_v23  ;;  %v1026_v26 = vpop.f32.mrf.mxu3  ;;  %v1000_v30 = vpop.f32.mrf.mxu1 }
 0x135   : > { %v1001_v32 = vadd.f32 %v1000_v30, %v986_v29 }
 0x136   : > { %v1027_v28 = vadd.f32 %v1026_v26, %v1013_v25 }
 0x138   : > { %v1087_v31 = vadd.f32 %v1027_v28, %v563_v27 }
 0x13a   : > { %1091 = vst [vmem:[#allocation2 + $0x10] sm:$0xff] %v1087_v31 }
 0x13b   : > { %v1014_v3 = vpop.f32.mrf.mxu2 }
 0x13c   : > { %v1015_v33 = vadd.f32 %v1014_v3, %v1001_v32  ;;  %v1028_v5 = vpop.f32.mrf.mxu3 }
 0x13e   : > { %v1029_v60 = vadd.f32 %v1028_v5, %v1015_v33 }
 0x140   : > { %v1089_v35 = vadd.f32 %v1029_v60, %v565_v34 }
 0x142   : > { %1093 = vst [vmem:[#allocation2 + $0x18] sm:$0xff] %v1089_v35 }
 0x14b   : > { %v1040_v2 = vpop.f32.mrf.mxu0 }
 0x14c   : > { %v1054_v36 = vpop.f32.mrf.mxu1 }
 0x14d   : > { %v1055_v37 = vadd.f32 %v1054_v36, %v1040_v2 }
 0x153   : > { %v1068_v38 = vpop.f32.mrf.mxu2  ;;  %v1042_v43 = vpop.f32.mrf.mxu0 }
 0x154   : > { %v1069_v39 = vadd.f32 %v1068_v38, %v1055_v37  ;;  %v1082_v40 = vpop.f32.mrf.mxu3  ;;  %v1056_v44 = vpop.f32.mrf.mxu1 }
 0x155   : > { %v1057_v46 = vadd.f32 %v1056_v44, %v1042_v43 }
 0x156   : > { %v1083_v42 = vadd.f32 %v1082_v40, %v1069_v39 }
 0x158   : > { %v1088_v45 = vadd.f32 %v1083_v42, %v564_v41 }
 0x15a   : > { %1092 = vst [vmem:[#allocation2] sm:$0xff] %v1088_v45 }
 0x15b   : > { %v1070_v47 = vpop.f32.mrf.mxu2 }
 0x15c   : > { %v1071_v48 = vadd.f32 %v1070_v47, %v1057_v46  ;;  %v1084_v50 = vpop.f32.mrf.mxu3 }
 0x15e   : > { %v1085_v51 = vadd.f32 %v1084_v50, %v1071_v48  ;;  %1098 = sbr.rel (%p1554_p5) target bundleno = 367 (0x16f), region = 101 }
 0x160   : > { %v1090_v52 = vadd.f32 %v1085_v51, %v566_v49 }
 0x162   : > { %1094 = vst [vmem:[#allocation2 + $0x8] sm:$0xff] %v1090_v52 }
 0x163   : > { %v1099_v53 = vld [vmem:[#allocation2 + $0x10] sm:$0xff]  ;;  %v1103_v54 = vld [vmem:[%s551_s5] sm:$0x3]  ;;  %v1101_v58 = vld [vmem:[#allocation2 + $0x18] sm:$0xff] }
 0x164   : > { %v1100_v55 = vld [vmem:[#allocation2] sm:$0xff]  ;;  %v1105_v56 = vperm.slane %v1103_v54, 0  ;;  %v1106_v57 = vperm.slane %v1103_v54, 1 }
 0x166   : > { %v1109_v61 = vadd.f32 %v1105_v56, %v1099_v53  ;;  %v1110_v62 = vadd.f32 %v1106_v57, %v1100_v55  ;;  %v1111_v63 = vadd.f32 %v1105_v56, %v1101_v58 }
 0x168   : > { %v1113_v1 = vmax.f32 %v1109_v61, 0.0  ;;  %v1114_v4 = vmax.f32 %v1110_v62, 0.0  ;;  %v1115_v6 = vmax.f32 %v1111_v63, 0.0 }
 0x169   : > { %v1102_v59 = vld [vmem:[#allocation2 + $0x8] sm:$0xff] }
 0x16a   : > { %v1112_v0 = vadd.f32 %v1106_v57, %v1102_v59  ;;  %1117 = vst [vmem:[%s2091_s25] sm:$0xff] %v1113_v1 }
 0x16b   : > { %1118 = vst [vmem:[%s2091_s25 + $0x8] sm:$0xff] %v1114_v4 }
 0x16c   : > { %v1116_v7 = vmax.f32 %v1112_v0, 0.0  ;;  %1119 = vst [vmem:[%s2091_s25 + $0x10] sm:$0xff] %v1115_v6 }
 0x16e   : > { %1120 = vst [vmem:[%s2091_s25 + $0x18] sm:$0xff] %v1116_v7 }
 0x16f PF: > { %1127 = sbr.rel (!%p1923_p12) target bundleno = 375 (0x177), region = 105  ;;  %s1630_s14 = sshll.u32 (%p1923_p12), %s1794_s19, 4 }
 0x170   : > { %s1133_s0 = scalar_lea.vmem (%p1923_p12), %s2302_s3, %s1630_s14 }
 0x171   : > { %v1146_v8 = vld [vmem:[%s2091_s25] sm:$0xff] (%p1923_p12) }
 0x172   : > { %v1148_v9 = vld [vmem:[%s2091_s25 + $0x8] sm:$0xff] (%p1923_p12)  ;;  %1147 = vst [vmem:[%s1133_s0] sm:$0xff] (%p1923_p12), %v1146_v8 }
 0x173   : > { %v1150_v10 = vld [vmem:[%s2091_s25 + $0x10] sm:$0xff] (%p1923_p12)  ;;  %1149 = vst [vmem:[%s1133_s0 + $0x8] sm:$0xff] (%p1923_p12), %v1148_v9 }
 0x174   : > { %1151 = vst [vmem:[%s1133_s0 + $0x20] sm:$0xff] %v1150_v10 }
 0x175   : > { %v1152_v11 = vld [vmem:[%s2091_s25 + $0x18] sm:$0xff] }
 0x176   : > { %1153 = vst [vmem:[%s1133_s0 + $0x28] sm:$0xff] %v1152_v11 }
 0x177 PF: > { %s13_s22 = sadd.s32 1, %s1806_s22   ;;  %s2312_s10 = sld [smem:[#allocation6_spill]] }
 0x178   : > { %p10_p6 = scmp.ge.s32.totalorder %s13_s22, 20   ;;  %s2313_s12 = smov %s1770_s13 }
 0x179   : > { %s2314_s13 = smov %s1921_s9  ;;  %s2315_s14 = smov %s1778_s15 }
 0x17a   : > { %s2316_s15 = smov %s1918_s8  ;;  %s2317_s16 = smov %s1786_s17 }
 0x17b   : > { %s2318_s17 = smov %s1904_s30  ;;  %s2319_s18 = smov %s1798_s20 }
 0x17c   : > { %s2320_s19 = smov %s1802_s21  ;;  %s2321_s20 = smov %s2324_s24 }
 0x17d   : > { %s2322_s21 = smov %s2312_s10  ;;  %12 = sbr.rel (!%p10_p6) target bundleno = 9 (0x9), region = 170 }

// kernel: resnet18_forward.18
= control target key start
LH: loop header
LB: loop body
LE: loop exit
PB: predicated region body
PF: predicated region fallthrough
CT: control target
= control target key end

     0   :  { %s2441_s0 = inlined_call_operand.vmem [shape: bf16[16,4608], index: 0, kind: input, shape index: {}]   ;;  %s2442_s1 = inlined_call_operand.vmem [shape: bf16[4608,512], index: 1, kind: input, shape index: {}]   ;;  %s2443_s2 = inlined_call_operand.vmem [shape: f32[1,512], index: 2, kind: input, shape index: {}]   ;;  %s2444_s3 = inlined_call_operand.vmem [shape: f32[16,512], index: 3, kind: input, shape index: {}]   ;;  %s2445_s4 = inlined_call_operand.vmem [shape: f32[16,512], index: 4, kind: output, shape index: {}]  }
   0x1   :  { %2448 = sst [smem:[#allocation9_spill]] %s2441_s0 }
   0x2   :  { %2449 = sst [smem:[#allocation10_spill]] %s2442_s1 }
   0x3   :  { %s1948_s15 = smov 0   ;;  %s1950_s16 = smov 0  }
   0x4   :  { %s1952_s17 = smov 0   ;;  %s1954_s18 = smov 0  }
   0x5   :  { %s1956_s19 = smov 0   ;;  %s1958_s20 = smov 0  }
   0x6   :  { %s1960_s21 = smov 0   ;;  %s1962_s22 = smov 0  }
   0x7   :  { %s1964_s23 = smov 0   ;;  %s1966_s24 = smov 0  }
   0x8   :  { %s1968_s25 = smov 0  }
   0x9 LB: > { %s1373_s26 = sadd.s32 4294967295, %s1920_s25   ;;  %s26_s27 = sadd.s32 1, %s1912_s23  ;;  %s1920_s25 = sphi %s1968_s25, %s14_s25   ;;  %s1916_s24 = sphi %s1966_s24, %s2469_s24   ;;  %s1912_s23 = sphi %s1964_s23, %s2468_s23   ;;  %s1908_s22 = sphi %s1962_s22, %s2467_s22   ;;  %s1904_s21 = sphi %s1960_s21, %s2466_s21   ;;  %s1900_s20 = sphi %s1958_s20, %s2465_s20   ;;  %s1896_s19 = sphi %s1956_s19, %s2464_s19   ;;  %s1892_s18 = sphi %s1954_s18, %s2463_s18   ;;  %s1888_s17 = sphi %s1952_s17, %s2462_s17   ;;  %s1884_s16 = sphi %s1950_s16, %s2461_s16   ;;  %s1880_s15 = sphi %s1948_s15, %s2460_s15  }
   0xa   : > { %p27_p0 = scmp.ge.s32.totalorder %s26_s27, 9  ;;  %s29_s28 = sadd.s32 1, %s1916_s24 }
   0xb   : > { %s42_s29 = sadd.s32 1, %s1900_s20  ;;  %p49_p1 = scmp.ne.s32.totalorder %s1900_s20, %s1896_s19 }
   0xc   : > { %s2471_s27 = smov (%p27_p0, %s26_s27), 0  ;;  %s2473_s28 = smov (!%p27_p0, %s29_s28), %s1916_s24 }
   0xd   : > { %2450 = sst [smem:[#allocation7_spill]] %s2471_s27  ;;  %s38_s30 = ssub.s32 %s1912_s23, %s2471_s27 }
   0xe   : > { %p50_p2 = scmp.eq.s32.totalorder %s1920_s25, 0  ;;  %p31_p3 = scmp.ge.s32.totalorder %s2473_s28, 2 }
   0xf   : > { %p40_p4 = scmp.eq.s32.totalorder %s38_s30, 0  ;;  %s70_s6 = sadd.s32 1, %s1892_s18 }
  0x10   : > { %p2017_p5 = por %p50_p2, %p49_p1  ;;  %s2475_s28 = smov (%p31_p3, %s2473_s28), 0 }
  0x11   : > { %2452 = sst [smem:[#allocation8_spill]] %s2475_s28  ;;  %s66_s8 = ssub.s32 %s1916_s24, %s2475_s28 }
  0x12   : > { %s2025_s7 = scalar_select %p40_p4, %s1900_s20, %s42_s29  }
  0x13   : > { %p77_p6 = scmp.ne.s32.totalorder %s1892_s18, %s1888_s17  ;;  %s67_s9 = sor.u32 %s66_s8, %s38_s30 }
  0x14   : > { %p122_p7 = scmp.eq.s32.totalorder %s66_s8, 0  ;;  %p68_p8 = scmp.eq.s32.totalorder %s67_s9, 0 }
  0x15   : > { %p2033_p9 = por %p77_p6, %p50_p2  ;;  %s124_s11 = sadd.s32 1, %s1884_s16 }
  0x16   : > { %p131_p10 = scmp.ne.s32.totalorder %s1884_s16, %s1880_s15  ;;  %p163_p12 = scmp.eq.s32.totalorder %s1373_s26, 17 }
  0x17   : > { %s2041_s12 = scalar_select %p68_p8, %s1892_s18, %s70_s6  }
  0x18   : > { %s2044_s13 = scalar_select %p122_p7, %s1884_s16, %s124_s11  }
  0x19   : > { %p2048_p11 = por %p131_p10, %p50_p2  ;;  %p2052_p13 = por %p163_p12, %p131_p10 }
  0x1a   : > { %p1376_p0 = scmp.ge.s32.totalorder %s1920_s25, 18 }
  0x1c   : > { %185 = sbr.rel (%p1376_p0) target bundleno = 129 (0x81), region = 16 }
  0x21   : > { %188 = sbr.rel (!%p2017_p5) target bundleno = 47 (0x2f), region = 20  ;;  %s190_s30 = sand.u32 (%p2017_p5), 1, %s1900_s20  }
  0x22   : > { %s1673_s6 = sshll.u32 (%p2017_p5), %s1912_s23, 4  ;;  %s1377_s8 = sshll.u32 (%p2017_p5), %s190_s30, 5 }
  0x23   : > { %s2456_s0 = sld [smem:[#allocation9_spill]] (%p2017_p5)  ;;  %s192_s26 = scalar_lea.vmem (%p2017_p5), [#allocation3], %s1377_s8 }
  0x29   : > { %s198_s28 = scalar_lea.vmem %s2456_s0, %s1673_s6 }
  0x2a   : > { %v211_v0 = vld [vmem:[%s198_s28] sm:$0xff]  ;;  %v213_v1 = vld [vmem:[%s198_s28 + $0x8] sm:$0xff]  ;;  %v215_v2 = vld [vmem:[%s198_s28 + $0x90] sm:$0xff] }
  0x2b   : > { %212 = vst [vmem:[%s192_s26] sm:$0xff] %v211_v0  ;;  %v217_v3 = vld [vmem:[%s198_s28 + $0x98] sm:$0xff] }
  0x2c   : > { %214 = vst [vmem:[%s192_s26 + $0x8] sm:$0xff] %v213_v1 }
  0x2d   : > { %216 = vst [vmem:[%s192_s26 + $0x10] sm:$0xff] %v215_v2 }
  0x2e   : > { %218 = vst [vmem:[%s192_s26 + $0x18] sm:$0xff] %v217_v3 }
  0x2f PF: > { %224 = sbr.rel (!%p2033_p9) target bundleno = 121 (0x79), region = 43  ;;  %s226_s5 = sand.u32 (%p2033_p9), 1, %s1892_s18  }
  0x30   : > { %s1382_s30 = sshll.u32 (%p2033_p9), %s1916_s24, 1  ;;  %s1380_s9 = sshll.u32 (%p2033_p9), %s226_s5, 9 }
  0x31   : > { %s1674_s6 = sshll.u32 (%p2033_p9), %s1912_s23, 8  ;;  %s2457_s1 = sld [smem:[#allocation10_spill]] (%p2033_p9) }
  0x32   : > { %s232_s11 = sadd.s32 (%p2033_p9), %s1674_s6, %s1382_s30  ;;  %s2077_s10 = scalar_lea.vmem (%p2033_p9), [#allocation4], %s1380_s9 }
  0x33   : > { %s1384_s0 = sshll.u32 (%p2033_p9), %s232_s11, 2 }
  0x37   : > { %s2072_s28 = scalar_lea.vmem %s2457_s1, %s1384_s0 }
  0x38   : > { %v389_v4 = vld [vmem:[%s2072_s28] sm:$0xff]  ;;  %v391_v5 = vld [vmem:[%s2072_s28 + $0x10] sm:$0xff] }
  0x39   : > { %v393_v6 = vld [vmem:[%s2072_s28 + $0x20] sm:$0xff]  ;;  %390 = vst [vmem:[%s2077_s10] sm:$0xff] %v389_v4  ;;  %v395_v7 = vld [vmem:[%s2072_s28 + $0x30] sm:$0xff] }
  0x3a   : > { %392 = vst [vmem:[%s2077_s10 + $0x8] sm:$0xff] %v391_v5  ;;  %v397_v8 = vld [vmem:[%s2072_s28 + $0x40] sm:$0xff]  ;;  %v399_v9 = vld [vmem:[%s2072_s28 + $0x50] sm:$0xff] }
  0x3b   : > { %394 = vst [vmem:[%s2077_s10 + $0x10] sm:$0xff] %v393_v6  ;;  %v401_v10 = vld [vmem:[%s2072_s28 + $0x60] sm:$0xff]  ;;  %v403_v11 = vld [vmem:[%s2072_s28 + $0x70] sm:$0xff] }
  0x3c   : > { %396 = vst [vmem:[%s2077_s10 + $0x18] sm:$0xff] %v395_v7  ;;  %v405_v12 = vld [vmem:[%s2072_s28 + $0x80] sm:$0xff]  ;;  %v407_v13 = vld [vmem:[%s2072_s28 + $0x90] sm:$0xff] }
  0x3d   : > { %398 = vst [vmem:[%s2077_s10 + $0x20] sm:$0xff] %v397_v8  ;;  %v409_v14 = vld [vmem:[%s2072_s28 + $0xa0] sm:$0xff]  ;;  %v411_v15 = vld [vmem:[%s2072_s28 + $0xb0] sm:$0xff] }
  0x3e   : > { %400 = vst [vmem:[%s2077_s10 + $0x28] sm:$0xff] %v399_v9  ;;  %v413_v16 = vld [vmem:[%s2072_s28 + $0xc0] sm:$0xff]  ;;  %v415_v17 = vld [vmem:[%s2072_s28 + $0xd0] sm:$0xff] }
  0x3f   : > { %402 = vst [vmem:[%s2077_s10 + $0x30] sm:$0xff] %v401_v10  ;;  %v417_v18 = vld [vmem:[%s2072_s28 + $0xe0] sm:$0xff]  ;;  %v419_v19 = vld [vmem:[%s2072_s28 + $0xf0] sm:$0xff] }
  0x40   : > { %404 = vst [vmem:[%s2077_s10 + $0x38] sm:$0xff] %v403_v11  ;;  %v421_v20 = vld [vmem:[%s2072_s28 + $0x100] sm:$0xff]  ;;  %v423_v21 = vld [vmem:[%s2072_s28 + $0x110] sm:$0xff] }
  0x41   : > { %406 = vst [vmem:[%s2077_s10 + $0x40] sm:$0xff] %v405_v12  ;;  %v425_v22 = vld [vmem:[%s2072_s28 + $0x120] sm:$0xff]  ;;  %v427_v23 = vld [vmem:[%s2072_s28 + $0x130] sm:$0xff] }
  0x42   : > { %408 = vst [vmem:[%s2077_s10 + $0x48] sm:$0xff] %v407_v13  ;;  %v429_v24 = vld [vmem:[%s2072_s28 + $0x140] sm:$0xff]  ;;  %v431_v25 = vld [vmem:[%s2072_s28 + $0x150] sm:$0xff] }
  0x43   : > { %410 = vst [vmem:[%s2077_s10 + $0x50] sm:$0xff] %v409_v14  ;;  %v433_v26 = vld [vmem:[%s2072_s28 + $0x160] sm:$0xff]  ;;  %v435_v27 = vld [vmem:[%s2072_s28 + $0x170] sm:$0xff] }
  0x44   : > { %412 = vst [vmem:[%s2077_s10 + $0x58] sm:$0xff] %v411_v15  ;;  %v437_v28 = vld [vmem:[%s2072_s28 + $0x180] sm:$0xff]  ;;  %v439_v29 = vld [vmem:[%s2072_s28 + $0x190] sm:$0xff] }
  0x45   : > { %414 = vst [vmem:[%s2077_s10 + $0x60] sm:$0xff] %v413_v16  ;;  %v441_v30 = vld [vmem:[%s2072_s28 + $0x1a0] sm:$0xff]  ;;  %v443_v31 = vld [vmem:[%s2072_s28 + $0x1b0] sm:$0xff] }
  0x46   : > { %416 = vst [vmem:[%s2077_s10 + $0x68] sm:$0xff] %v415_v17  ;;  %v445_v32 = vld [vmem:[%s2072_s28 + $0x1c0] sm:$0xff]  ;;  %v447_v33 = vld [vmem:[%s2072_s28 + $0x1d0] sm:$0xff] }
  0x47   : > { %418 = vst [vmem:[%s2077_s10 + $0x70] sm:$0xff] %v417_v18  ;;  %v449_v34 = vld [vmem:[%s2072_s28 + $0x1e0] sm:$0xff]  ;;  %v451_v35 = vld [vmem:[%s2072_s28 + $0x1f0] sm:$0xff] }
  0x48   : > { %420 = vst [vmem:[%s2077_s10 + $0x78] sm:$0xff] %v419_v19  ;;  %v453_v36 = vld [vmem:[%s2072_s28 + $0x200] sm:$0xff]  ;;  %v455_v37 = vld [vmem:[%s2072_s28 + $0x210] sm:$0xff] }
  0x49   : > { %422 = vst [vmem:[%s2077_s10 + $0x80] sm:$0xff] %v421_v20  ;;  %v457_v38 = vld [vmem:[%s2072_s28 + $0x220] sm:$0xff]  ;;  %v459_v39 = vld [vmem:[%s2072_s28 + $0x230] sm:$0xff] }
  0x4a   : > { %424 = vst [vmem:[%s2077_s10 + $0x88] sm:$0xff] %v423_v21  ;;  %v461_v40 = vld [vmem:[%s2072_s28 + $0x240] sm:$0xff]  ;;  %v463_v41 = vld [vmem:[%s2072_s28 + $0x250] sm:$0xff] }
  0x4b   : > { %426 = vst [vmem:[%s2077_s10 + $0x90] sm:$0xff] %v425_v22  ;;  %v465_v42 = vld [vmem:[%s2072_s28 + $0x260] sm:$0xff]  ;;  %v467_v43 = vld [vmem:[%s2072_s28 + $0x270] sm:$0xff] }
  0x4c   : > { %428 = vst [vmem:[%s2077_s10 + $0x98] sm:$0xff] %v427_v23  ;;  %v469_v44 = vld [vmem:[%s2072_s28 + $0x280] sm:$0xff]  ;;  %v471_v45 = vld [vmem:[%s2072_s28 + $0x290] sm:$0xff] }
  0x4d   : > { %430 = vst [vmem:[%s2077_s10 + $0xa0] sm:$0xff] %v429_v24  ;;  %v473_v46 = vld [vmem:[%s2072_s28 + $0x2a0] sm:$0xff]  ;;  %v475_v47 = vld [vmem:[%s2072_s28 + $0x2b0] sm:$0xff] }
  0x4e   : > { %432 = vst [vmem:[%s2077_s10 + $0xa8] sm:$0xff] %v431_v25  ;;  %v477_v48 = vld [vmem:[%s2072_s28 + $0x2c0] sm:$0xff]  ;;  %v479_v49 = vld [vmem:[%s2072_s28 + $0x2d0] sm:$0xff] }
  0x4f   : > { %434 = vst [vmem:[%s2077_s10 + $0xb0] sm:$0xff] %v433_v26  ;;  %v481_v50 = vld [vmem:[%s2072_s28 + $0x2e0] sm:$0xff]  ;;  %v483_v51 = vld [vmem:[%s2072_s28 + $0x2f0] sm:$0xff] }
  0x50   : > { %436 = vst [vmem:[%s2077_s10 + $0xb8] sm:$0xff] %v435_v27  ;;  %v485_v52 = vld [vmem:[%s2072_s28 + $0x300] sm:$0xff]  ;;  %v487_v53 = vld [vmem:[%s2072_s28 + $0x310] sm:$0xff] }
  0x51   : > { %438 = vst [vmem:[%s2077_s10 + $0xc0] sm:$0xff] %v437_v28  ;;  %v489_v54 = vld [vmem:[%s2072_s28 + $0x320] sm:$0xff]  ;;  %v491_v55 = vld [vmem:[%s2072_s28 + $0x330] sm:$0xff] }
  0x52   : > { %440 = vst [vmem:[%s2077_s10 + $0xc8] sm:$0xff] %v439_v29  ;;  %v493_v56 = vld [vmem:[%s2072_s28 + $0x340] sm:$0xff]  ;;  %v495_v57 = vld [vmem:[%s2072_s28 + $0x350] sm:$0xff] }
  0x53   : > { %442 = vst [vmem:[%s2077_s10 + $0xd0] sm:$0xff] %v441_v30  ;;  %v497_v58 = vld [vmem:[%s2072_s28 + $0x360] sm:$0xff]  ;;  %v499_v59 = vld [vmem:[%s2072_s28 + $0x370] sm:$0xff] }
  0x54   : > { %444 = vst [vmem:[%s2077_s10 + $0xd8] sm:$0xff] %v443_v31  ;;  %v501_v60 = vld [vmem:[%s2072_s28 + $0x380] sm:$0xff]  ;;  %v503_v61 = vld [vmem:[%s2072_s28 + $0x390] sm:$0xff] }
  0x55   : > { %446 = vst [vmem:[%s2077_s10 + $0xe0] sm:$0xff] %v445_v32  ;;  %v505_v62 = vld [vmem:[%s2072_s28 + $0x3a0] sm:$0xff]  ;;  %v507_v63 = vld [vmem:[%s2072_s28 + $0x3b0] sm:$0xff] }
  0x56   : > { %448 = vst [vmem:[%s2077_s10 + $0xe8] sm:$0xff] %v447_v33  ;;  %v509_v0 = vld [vmem:[%s2072_s28 + $0x3c0] sm:$0xff]  ;;  %v511_v1 = vld [vmem:[%s2072_s28 + $0x3d0] sm:$0xff] }
  0x57   : > { %450 = vst [vmem:[%s2077_s10 + $0xf0] sm:$0xff] %v449_v34  ;;  %v513_v2 = vld [vmem:[%s2072_s28 + $0x3e0] sm:$0xff]  ;;  %v515_v3 = vld [vmem:[%s2072_s28 + $0x3f0] sm:$0xff] }
  0x58   : > { %452 = vst [vmem:[%s2077_s10 + $0xf8] sm:$0xff] %v451_v35 }
  0x59   : > { %454 = vst [vmem:[%s2077_s10 + $0x100] sm:$0xff] %v453_v36 }
  0x5a   : > { %456 = vst [vmem:[%s2077_s10 + $0x108] sm:$0xff] %v455_v37 }
  0x5b   : > { %458 = vst [vmem:[%s2077_s10 + $0x110] sm:$0xff] %v457_v38 }
  0x5c   : > { %460 = vst [vmem:[%s2077_s10 + $0x118] sm:$0xff] %v459_v39 }
  0x5d   : > { %462 = vst [vmem:[%s2077_s10 + $0x120] sm:$0xff] %v461_v40 }
  0x5e   : > { %464 = vst [vmem:[%s2077_s10 + $0x128] sm:$0xff] %v463_v41 }
  0x5f   : > { %466 = vst [vmem:[%s2077_s10 + $0x130] sm:$0xff] %v465_v42 }
  0x60   : > { %468 = vst [vmem:[%s2077_s10 + $0x138] sm:$0xff] %v467_v43 }
  0x61   : > { %470 = vst [vmem:[%s2077_s10 + $0x140] sm:$0xff] %v469_v44 }
  0x62   : > { %472 = vst [vmem:[%s2077_s10 + $0x148] sm:$0xff] %v471_v45 }
  0x63   : > { %474 = vst [vmem:[%s2077_s10 + $0x150] sm:$0xff] %v473_v46 }
  0x64   : > { %476 = vst [vmem:[%s2077_s10 + $0x158] sm:$0xff] %v475_v47 }
  0x65   : > { %478 = vst [vmem:[%s2077_s10 + $0x160] sm:$0xff] %v477_v48 }
  0x66   : > { %480 = vst [vmem:[%s2077_s10 + $0x168] sm:$0xff] %v479_v49 }
  0x67   : > { %482 = vst [vmem:[%s2077_s10 + $0x170] sm:$0xff] %v481_v50 }
  0x68   : > { %484 = vst [vmem:[%s2077_s10 + $0x178] sm:$0xff] %v483_v51 }
  0x69   : > { %486 = vst [vmem:[%s2077_s10 + $0x180] sm:$0xff] %v485_v52 }
  0x6a   : > { %488 = vst [vmem:[%s2077_s10 + $0x188] sm:$0xff] %v487_v53 }
  0x6b   : > { %490 = vst [vmem:[%s2077_s10 + $0x190] sm:$0xff] %v489_v54 }
  0x6c   : > { %492 = vst [vmem:[%s2077_s10 + $0x198] sm:$0xff] %v491_v55 }
  0x6d   : > { %494 = vst [vmem:[%s2077_s10 + $0x1a0] sm:$0xff] %v493_v56 }
  0x6e   : > { %496 = vst [vmem:[%s2077_s10 + $0x1a8] sm:$0xff] %v495_v57 }
  0x6f   : > { %498 = vst [vmem:[%s2077_s10 + $0x1b0] sm:$0xff] %v497_v58 }
  0x70   : > { %500 = vst [vmem:[%s2077_s10 + $0x1b8] sm:$0xff] %v499_v59 }
  0x71   : > { %502 = vst [vmem:[%s2077_s10 + $0x1c0] sm:$0xff] %v501_v60 }
  0x72   : > { %504 = vst [vmem:[%s2077_s10 + $0x1c8] sm:$0xff] %v503_v61 }
  0x73   : > { %506 = vst [vmem:[%s2077_s10 + $0x1d0] sm:$0xff] %v505_v62 }
  0x74   : > { %508 = vst [vmem:[%s2077_s10 + $0x1d8] sm:$0xff] %v507_v63 }
  0x75   : > { %510 = vst [vmem:[%s2077_s10 + $0x1e0] sm:$0xff] %v509_v0 }
  0x76   : > { %512 = vst [vmem:[%s2077_s10 + $0x1e8] sm:$0xff] %v511_v1 }
  0x77   : > { %514 = vst [vmem:[%s2077_s10 + $0x1f0] sm:$0xff] %v513_v2 }
  0x78   : > { %516 = vst [vmem:[%s2077_s10 + $0x1f8] sm:$0xff] %v515_v3 }
  0x79 PF: > { %530 = sbr.rel (!%p2048_p11) target bundleno = 129 (0x81), region = 85  ;;  %s532_s0 = sand.u32 (%p2048_p11), 1, %s1884_s16  }
  0x7a   : > { %s1675_s27 = sshll.u32 (%p2048_p11), %s1916_s24, 4  ;;  %s1385_s26 = sshll.u32 (%p2048_p11), %s532_s0, 5 }
  0x7b   : > { %s540_s9 = scalar_lea.vmem (%p2048_p11), %s2444_s3, %s1675_s27  ;;  %s534_s6 = scalar_lea.vmem (%p2048_p11), [#allocation5], %s1385_s26 }
  0x7c   : > { %v553_v4 = vld [vmem:[%s540_s9] sm:$0xff] (%p2048_p11)  ;;  %v555_v5 = vld [vmem:[%s540_s9 + $0x8] sm:$0xff] (%p2048_p11) }
  0x7d   : > { %v557_v6 = vld [vmem:[%s540_s9 + $0x20] sm:$0xff] (%p2048_p11)  ;;  %554 = vst [vmem:[%s534_s6] sm:$0xff] (%p2048_p11), %v553_v4  ;;  %v559_v7 = vld [vmem:[%s540_s9 + $0x28] sm:$0xff] (%p2048_p11) }
  0x7e   : > { %556 = vst [vmem:[%s534_s6 + $0x8] sm:$0xff] %v555_v5 }
  0x7f   : > { %558 = vst [vmem:[%s534_s6 + $0x10] sm:$0xff] %v557_v6 }
  0x80   : > { %560 = vst [vmem:[%s534_s6 + $0x18] sm:$0xff] %v559_v7 }
  0x81 PF: > { %p1388_p1 = scmp.ge.s32.totalorder %s1920_s25, 1  ;;  %p565_p2 = scmp.lt.s32.totalorder %s1920_s25, 19 }
  0x83   : > { %p566_p3 = pnand %p1388_p1, %p565_p2 }
  0x84   : > { %s572_s14 = sand.u32 (!%p566_p3), 1, %s1896_s19   ;;  %s579_s11 = sand.u32 (!%p566_p3), 1, %s1888_s17  }
  0x85   : > { %569 = sbr.rel (%p566_p3) target bundleno = 388 (0x184), region = 108  ;;  %s1389_s8 = sshll.u32 (!%p566_p3), %s572_s14, 5 }
  0x86   : > { %s1390_s28 = sshll.u32 (!%p566_p3), %s579_s11, 9  ;;  %s586_s10 = sand.u32 (!%p566_p3), 1, %s1880_s15  }
  0x87   : > { %s1393_s0 = sshll.u32 (!%p566_p3), %s1908_s22, 1  ;;  %s1391_s27 = sshll.u32 (!%p566_p3), %s586_s10, 5 }
  0x88   : > { %p627_p4 = scmp.lt.s32.totalorder (!%p566_p3), %s1393_s0, 3  ;;  %s2223_s9 = scalar_lea.vmem (!%p566_p3), [#allocation3], %s1389_s8 }
  0x89   : > { %s2225_s6 = scalar_lea.vmem (!%p566_p3), [#allocation4], %s1390_s28  ;;  %s2227_s1 = scalar_lea.vmem (!%p566_p3), [#allocation5], %s1391_s27 }
  0x8a   : > { %s2477_s0 = smov (!%p627_p4, %s1393_s0), 3  ;;  %s2229_s17 = scalar_lea.vmem [#allocation6], %s1391_s27 }
  0x8b   : > { %s629_s30 = scalar_lea.vmem %s2443_s2, %s2477_s0  ;;  %p1394_p5 = scmp.ne.s32.totalorder %s1904_s21, 0 }
  0x8d   : > { %638 = sbr.rel (%p1394_p5) target bundleno = 151 (0x97), region = 124 }
  0x92   : > { %v1922_v8 = vmov 0.0  }
  0x93   : > { %639 = vst [vmem:[#allocation2 + $0x10] sm:$0xff] %v1922_v8 }
  0x94   : > { %640 = vst [vmem:[#allocation2] sm:$0xff] %v1922_v8 }
  0x95   : > { %641 = vst [vmem:[#allocation2 + $0x18] sm:$0xff] %v1922_v8 }
  0x96   : > { %642 = vst [vmem:[#allocation2 + $0x8] sm:$0xff] %v1922_v8 }
  0x97 PF: > { %v1469_v9 = vld [vmem:[%s2225_s6 + $0x70] sm:$0xf]  ;;  %v1695_v10 = vld [vmem:[%s2225_s6 + $0x74] sm:$0xf0]  ;;  %v1461_v20 = vld [vmem:[%s2225_s6 + $0x60] sm:$0xf] }
  0x98   : > { %v1533_v11 = vld [vmem:[%s2225_s6 + $0xf0] sm:$0xf]  ;;  %v1470_v12 = vor.u32 %v1695_v10, %v1469_v9  ;;  %v1711_v13 = vld [vmem:[%s2225_s6 + $0xf4] sm:$0xf0]  ;;  %v1693_v22 = vld [vmem:[%s2225_s6 + $0x64] sm:$0xf0] }
  0x99   : > { %v1597_v14 = vld [vmem:[%s2225_s6 + $0x170] sm:$0xf]  ;;  %v1727_v15 = vld [vmem:[%s2225_s6 + $0x174] sm:$0xf0]  ;;  %v1534_v16 = vor.u32 %v1711_v13, %v1533_v11  ;;  %v1525_v23 = vld [vmem:[%s2225_s6 + $0xe0] sm:$0xf]  ;;  %v1462_v25 = vor.u32 %v1693_v22, %v1461_v20 }
  0x9a   : > { %v1598_v17 = vor.u32 %v1727_v15, %v1597_v14  ;;  %v1661_v18 = vld [vmem:[%s2225_s6 + $0x1f0] sm:$0xf]  ;;  %v1743_v19 = vld [vmem:[%s2225_s6 + $0x1f4] sm:$0xf0]  ;;  %1055 = vmatpush.bf16.msra.mxu0 %v1470_v12  ;;  %v1709_v24 = vld [vmem:[%s2225_s6 + $0xe4] sm:$0xf0] }
  0x9b   : > { %v1662_v21 = vor.u32 %v1743_v19, %v1661_v18  ;;  %1069 = vmatpush.bf16.msra.mxu1 %v1534_v16  ;;  %v1526_v26 = vor.u32 %v1709_v24, %v1525_v23  ;;  %v1589_v27 = vld [vmem:[%s2225_s6 + $0x160] sm:$0xf]  ;;  %v1725_v28 = vld [vmem:[%s2225_s6 + $0x164] sm:$0xf0]  ;;  %v1453_v32 = vld [vmem:[%s2225_s6 + $0x50] sm:$0xf] }
  0x9c   : > { %1083 = vmatpush.bf16.msra.mxu2 %v1598_v17  ;;  %v1653_v29 = vld [vmem:[%s2225_s6 + $0x1e0] sm:$0xf]  ;;  %v1590_v30 = vor.u32 %v1725_v28, %v1589_v27  ;;  %v1741_v31 = vld [vmem:[%s2225_s6 + $0x1e4] sm:$0xf0]  ;;  %v1691_v33 = vld [vmem:[%s2225_s6 + $0x54] sm:$0xf0] }
  0x9d   : > { %1097 = vmatpush.bf16.msra.mxu3 %v1662_v21  ;;  %v1654_v34 = vor.u32 %v1741_v31, %v1653_v29  ;;  %v1517_v35 = vld [vmem:[%s2225_s6 + $0xd0] sm:$0xf]  ;;  %v1707_v36 = vld [vmem:[%s2225_s6 + $0xd4] sm:$0xf0]  ;;  %v1454_v38 = vor.u32 %v1691_v33, %v1453_v32  ;;  %v1445_v44 = vld [vmem:[%s2225_s6 + $0x40] sm:$0xf] }
  0x9e   : > { %v1581_v37 = vld [vmem:[%s2225_s6 + $0x150] sm:$0xf]  ;;  %1056 = vmatpush.bf16.msra.mxu0 %v1462_v25  ;;  %v1723_v39 = vld [vmem:[%s2225_s6 + $0x154] sm:$0xf0]  ;;  %v1518_v42 = vor.u32 %v1707_v36, %v1517_v35  ;;  %v1689_v45 = vld [vmem:[%s2225_s6 + $0x44] sm:$0xf0] }
  0x9f   : > { %v1645_v40 = vld [vmem:[%s2225_s6 + $0x1d0] sm:$0xf]  ;;  %v1739_v41 = vld [vmem:[%s2225_s6 + $0x1d4] sm:$0xf0]  ;;  %1070 = vmatpush.bf16.msra.mxu1 %v1526_v26  ;;  %v1582_v43 = vor.u32 %v1723_v39, %v1581_v37  ;;  %v1509_v46 = vld [vmem:[%s2225_s6 + $0xc0] sm:$0xf]  ;;  %v1446_v53 = vor.u32 %v1689_v45, %v1445_v44 }
  0xa0   : > { %1084 = vmatpush.bf16.msra.mxu2 %v1590_v30  ;;  %v1646_v47 = vor.u32 %v1739_v41, %v1645_v40  ;;  %v1705_v48 = vld [vmem:[%s2225_s6 + $0xc4] sm:$0xf0]  ;;  %v1573_v49 = vld [vmem:[%s2225_s6 + $0x140] sm:$0xf]  ;;  %v1437_v56 = vld [vmem:[%s2225_s6 + $0x30] sm:$0xf] }
  0xa1   : > { %1098 = vmatpush.bf16.msra.mxu3 %v1654_v34  ;;  %v1721_v50 = vld [vmem:[%s2225_s6 + $0x144] sm:$0xf0]  ;;  %v1637_v51 = vld [vmem:[%s2225_s6 + $0x1c0] sm:$0xf]  ;;  %v1510_v54 = vor.u32 %v1705_v48, %v1509_v46  ;;  %v1687_v57 = vld [vmem:[%s2225_s6 + $0x34] sm:$0xf0] }
  0xa2   : > { %v1737_v52 = vld [vmem:[%s2225_s6 + $0x1c4] sm:$0xf0]  ;;  %1057 = vmatpush.bf16.msra.mxu0 %v1454_v38  ;;  %v1574_v55 = vor.u32 %v1721_v50, %v1573_v49  ;;  %v1501_v58 = vld [vmem:[%s2225_s6 + $0xb0] sm:$0xf]  ;;  %v1703_v60 = vld [vmem:[%s2225_s6 + $0xb4] sm:$0xf0]  ;;  %v1438_v1 = vor.u32 %v1687_v57, %v1437_v56 }
  0xa3   : > { %1071 = vmatpush.bf16.msra.mxu1 %v1518_v42  ;;  %v1638_v59 = vor.u32 %v1737_v52, %v1637_v51  ;;  %v1565_v61 = vld [vmem:[%s2225_s6 + $0x130] sm:$0xf]  ;;  %v1719_v62 = vld [vmem:[%s2225_s6 + $0x134] sm:$0xf0]  ;;  %v1502_v2 = vor.u32 %v1703_v60, %v1501_v58  ;;  %v1429_v4 = vld [vmem:[%s2225_s6 + $0x20] sm:$0xf] }
  0xa4   : > { %1085 = vmatpush.bf16.msra.mxu2 %v1582_v43  ;;  %v1629_v63 = vld [vmem:[%s2225_s6 + $0x1b0] sm:$0xf]  ;;  %v1735_v0 = vld [vmem:[%s2225_s6 + $0x1b4] sm:$0xf0]  ;;  %v1566_v3 = vor.u32 %v1719_v62, %v1565_v61  ;;  %v1685_v5 = vld [vmem:[%s2225_s6 + $0x24] sm:$0xf0] }
  0xa5   : > { %1099 = vmatpush.bf16.msra.mxu3 %v1646_v47  ;;  %v1493_v6 = vld [vmem:[%s2225_s6 + $0xa0] sm:$0xf]  ;;  %v1630_v7 = vor.u32 %v1735_v0, %v1629_v63  ;;  %v1701_v8 = vld [vmem:[%s2225_s6 + $0xa4] sm:$0xf0]  ;;  %v1430_v13 = vor.u32 %v1685_v5, %v1429_v4  ;;  %v1421_v16 = vld [vmem:[%s2225_s6 + $0x10] sm:$0xf] }
  0xa6   : > { %1058 = vmatpush.bf16.msra.mxu0 %v1446_v53  ;;  %v1557_v9 = vld [vmem:[%s2225_s6 + $0x120] sm:$0xf]  ;;  %v1717_v10 = vld [vmem:[%s2225_s6 + $0x124] sm:$0xf0]  ;;  %v1494_v14 = vor.u32 %v1701_v8, %v1493_v6  ;;  %v1683_v17 = vld [vmem:[%s2225_s6 + $0x14] sm:$0xf0] }
  0xa7   : > { %1072 = vmatpush.bf16.msra.mxu1 %v1510_v54  ;;  %v1621_v11 = vld [vmem:[%s2225_s6 + $0x1a0] sm:$0xf]  ;;  %v1733_v12 = vld [vmem:[%s2225_s6 + $0x1a4] sm:$0xf0]  ;;  %v1558_v15 = vor.u32 %v1717_v10, %v1557_v9  ;;  %v1485_v18 = vld [vmem:[%s2225_s6 + $0x90] sm:$0xf]  ;;  %v1422_v26 = vor.u32 %v1683_v17, %v1421_v16 }
  0xa8   : > { %1086 = vmatpush.bf16.msra.mxu2 %v1574_v55  ;;  %v1622_v19 = vor.u32 %v1733_v12, %v1621_v11  ;;  %v1699_v20 = vld [vmem:[%s2225_s6 + $0x94] sm:$0xf0]  ;;  %v1549_v21 = vld [vmem:[%s2225_s6 + $0x110] sm:$0xf]  ;;  %v1413_v25 = vld [vmem:[%s2225_s6] sm:$0xf] }
  0xa9   : > { %1100 = vmatpush.bf16.msra.mxu3 %v1638_v59  ;;  %v1715_v22 = vld [vmem:[%s2225_s6 + $0x114] sm:$0xf0]  ;;  %v1613_v23 = vld [vmem:[%s2225_s6 + $0x190] sm:$0xf]  ;;  %v1681_v27 = vld [vmem:[%s2225_s6 + $0x4] sm:$0xf0]  ;;  %v1486_v30 = vor.u32 %v1699_v20, %v1485_v18 }
  0xaa   : > { %1059 = vmatpush.bf16.msra.mxu0 %v1438_v1  ;;  %v1731_v24 = vld [vmem:[%s2225_s6 + $0x194] sm:$0xf0]  ;;  %v1477_v28 = vld [vmem:[%s2225_s6 + $0x80] sm:$0xf]  ;;  %v1697_v29 = vld [vmem:[%s2225_s6 + $0x84] sm:$0xf0]  ;;  %v1550_v31 = vor.u32 %v1715_v22, %v1549_v21  ;;  %v1414_v42 = vor.u32 %v1681_v27, %v1413_v25 }
  0xab   : > { %1073 = vmatpush.bf16.msra.mxu1 %v1502_v2  ;;  %v1541_v32 = vld [vmem:[%s2225_s6 + $0x100] sm:$0xf]  ;;  %v1713_v33 = vld [vmem:[%s2225_s6 + $0x104] sm:$0xf0]  ;;  %v1614_v35 = vor.u32 %v1731_v24, %v1613_v23  ;;  %v1694_v37 = vld [vmem:[%s2225_s6 + $0x74] sm:$0xf]  ;;  %v1478_v46 = vor.u32 %v1697_v29, %v1477_v28 }
  0xac   : > { %1087 = vmatpush.bf16.msra.mxu2 %v1566_v3  ;;  %v1605_v34 = vld [vmem:[%s2225_s6 + $0x180] sm:$0xf]  ;;  %v1729_v36 = vld [vmem:[%s2225_s6 + $0x184] sm:$0xf0]  ;;  %v1471_v38 = vld [vmem:[%s2225_s6 + $0x78] sm:$0xf0]  ;;  %v1542_v47 = vor.u32 %v1713_v33, %v1541_v32 }
  0xad   : > { %1101 = vmatpush.bf16.msra.mxu3 %v1630_v7  ;;  %v1710_v39 = vld [vmem:[%s2225_s6 + $0xf4] sm:$0xf]  ;;  %v1535_v40 = vld [vmem:[%s2225_s6 + $0xf8] sm:$0xf0]  ;;  %v1692_v48 = vld [vmem:[%s2225_s6 + $0x64] sm:$0xf]  ;;  %v1606_v52 = vor.u32 %v1729_v36, %v1605_v34  ;;  %v1474_v53 = vor.u32 %v1694_v37, %v1471_v38 }
  0xae   : > { %1060 = vmatpush.bf16.msra.mxu0 %v1430_v13  ;;  %v1726_v41 = vld [vmem:[%s2225_s6 + $0x174] sm:$0xf]  ;;  %v1599_v43 = vld [vmem:[%s2225_s6 + $0x178] sm:$0xf0]  ;;  %v1463_v49 = vld [vmem:[%s2225_s6 + $0x68] sm:$0xf0]  ;;  %v1538_v58 = vor.u32 %v1710_v39, %v1535_v40 }
  0xaf   : > { %1074 = vmatpush.bf16.msra.mxu1 %v1494_v14  ;;  %v1742_v44 = vld [vmem:[%s2225_s6 + $0x1f4] sm:$0xf]  ;;  %v1663_v45 = vld [vmem:[%s2225_s6 + $0x1f8] sm:$0xf0]  ;;  %v1405_v50 = vld [vmem:[%s2223_s9 + $0x8] sm:$0xf]  ;;  %v1602_v59 = vor.u32 %v1726_v41, %v1599_v43  ;;  %v1466_v8 = vor.u32 %v1692_v48, %v1463_v49 }
  0xb0   : > { %1088 = vmatpush.bf16.msra.mxu2 %v1558_v15  ;;  %v1679_v51 = vld [vmem:[%s2223_s9 + $0x14] sm:$0xf0]  ;;  %v1708_v54 = vld [vmem:[%s2225_s6 + $0xe4] sm:$0xf]  ;;  %v1527_v55 = vld [vmem:[%s2225_s6 + $0xe8] sm:$0xf0]  ;;  %v1666_v63 = vor.u32 %v1742_v44, %v1663_v45 }
  0xb1   : > { %1102 = vmatpush.bf16.msra.mxu3 %v1622_v19  ;;  %v1724_v56 = vld [vmem:[%s2225_s6 + $0x164] sm:$0xf]  ;;  %v1591_v57 = vld [vmem:[%s2225_s6 + $0x168] sm:$0xf0]  ;;  %v1407_v61 = vld [vmem:[%s2223_s9 + $0x18] sm:$0xf0]  ;;  %v2315_v0 = vor.u32 %v1679_v51, %v1405_v50  ;;  %v1530_v10 = vor.u32 %v1708_v54, %v1527_v55 }
  0xb2   : > { %1061 = vmatpush.bf16.msra.mxu0 %v1422_v26  ;;  %v1677_v60 = vld [vmem:[%s2223_s9 + $0xc] sm:$0xf]  ;;  %v1397_v62 = vld [vmem:[%s2223_s9] sm:$0xf]  ;;  %v1678_v1 = vld [vmem:[%s2223_s9 + $0xc] sm:$0xf0]  ;;  %v1594_v11 = vor.u32 %v1724_v56, %v1591_v57 }
  0xb3   : > { %1075 = vmatpush.bf16.msra.mxu1 %v1486_v30  ;;  %v1676_v2 = vld [vmem:[%s2223_s9 + $0x4] sm:$0xf]  ;;  %v1399_v3 = vld [vmem:[%s2223_s9 + $0x10] sm:$0xf0]  ;;  %v1655_v5 = vld [vmem:[%s2225_s6 + $0x1e8] sm:$0xf0]  ;;  %v2322_v6 = vor.u32 %v1677_v60, %v1407_v61  ;;  %v2324_v7 = vor.u32 %v1678_v1, %v1397_v62 }
  0xb4   : > { %1089 = vmatpush.bf16.msra.mxu2 %v1550_v31  ;;  %v1740_v4 = vld [vmem:[%s2225_s6 + $0x1e4] sm:$0xf]  ;;  %v2326_v9 = vor.u32 %v1676_v2, %v1399_v3  ;;  %v1690_v12 = vld [vmem:[%s2225_s6 + $0x54] sm:$0xf]  ;;  %v1455_v13 = vld [vmem:[%s2225_s6 + $0x58] sm:$0xf0] }
  0xb5   : > { %1103 = vmatpush.bf16.msra.mxu3 %v1614_v35  ;;  %v1706_v14 = vld [vmem:[%s2225_s6 + $0xd4] sm:$0xf]  ;;  %v1658_v15 = vor.u32 %v1740_v4, %v1655_v5  ;;  %v1519_v16 = vld [vmem:[%s2225_s6 + $0xd8] sm:$0xf0]  ;;  %v1458_v21 = vor.u32 %v1690_v12, %v1455_v13  ;;  %v1688_v24 = vld [vmem:[%s2225_s6 + $0x44] sm:$0xf] }
  0xb6   : > { %1062 = vmatpush.bf16.msra.mxu0 %v1414_v42  ;;  %v1722_v17 = vld [vmem:[%s2225_s6 + $0x154] sm:$0xf]  ;;  %v1583_v18 = vld [vmem:[%s2225_s6 + $0x158] sm:$0xf0]  ;;  %v1522_v22 = vor.u32 %v1706_v14, %v1519_v16  ;;  %v1447_v25 = vld [vmem:[%s2225_s6 + $0x48] sm:$0xf0] }
  0xb7   : > { %1076 = vmatpush.bf16.msra.mxu1 %v1478_v46  ;;  %v1738_v19 = vld [vmem:[%s2225_s6 + $0x1d4] sm:$0xf]  ;;  %v1647_v20 = vld [vmem:[%s2225_s6 + $0x1d8] sm:$0xf0]  ;;  %v1586_v23 = vor.u32 %v1722_v17, %v1583_v18  ;;  %v1704_v26 = vld [vmem:[%s2225_s6 + $0xc4] sm:$0xf]  ;;  %v1450_v33 = vor.u32 %v1688_v24, %v1447_v25 }
  0xb8   : > { %1090 = vmatpush.bf16.msra.mxu2 %v1542_v47  ;;  %v1650_v27 = vor.u32 %v1738_v19, %v1647_v20  ;;  %v1511_v28 = vld [vmem:[%s2225_s6 + $0xc8] sm:$0xf0]  ;;  %v1720_v29 = vld [vmem:[%s2225_s6 + $0x144] sm:$0xf]  ;;  %v1686_v36 = vld [vmem:[%s2225_s6 + $0x34] sm:$0xf] }
  0xb9   : > { %1104 = vmatpush.bf16.msra.mxu3 %v1606_v52  ;;  %1063 = vmatmul.bf16.vlgmr.msra.gmra.mxu0 %v2324_v7  ;;  %v1575_v30 = vld [vmem:[%s2225_s6 + $0x148] sm:$0xf0]  ;;  %v1736_v31 = vld [vmem:[%s2225_s6 + $0x1c4] sm:$0xf]  ;;  %v1514_v34 = vor.u32 %v1704_v26, %v1511_v28  ;;  %v1439_v37 = vld [vmem:[%s2225_s6 + $0x38] sm:$0xf0] }
  0xba   : > { %1111 = vmatpush.bf16.msrb.mxu0 %v1474_v53  ;;  %1077 = vmatmul.bf16.vlgmr.msra.gmra.mxu1 %v2326_v9  ;;  %v1639_v32 = vld [vmem:[%s2225_s6 + $0x1c8] sm:$0xf0]  ;;  %v1578_v35 = vor.u32 %v1720_v29, %v1575_v30  ;;  %v1702_v38 = vld [vmem:[%s2225_s6 + $0xb4] sm:$0xf]  ;;  %v1503_v40 = vld [vmem:[%s2225_s6 + $0xb8] sm:$0xf0]  ;;  %v1442_v45 = vor.u32 %v1686_v36, %v1439_v37 }
  0xbb   : > { %1125 = vmatpush.bf16.msrb.mxu1 %v1538_v58  ;;  %1091 = vmatmul.bf16.vlgmr.msra.gmra.mxu2 %v2315_v0  ;;  %v1642_v39 = vor.u32 %v1736_v31, %v1639_v32  ;;  %v1718_v41 = vld [vmem:[%s2225_s6 + $0x134] sm:$0xf]  ;;  %v1567_v42 = vld [vmem:[%s2225_s6 + $0x138] sm:$0xf0]  ;;  %v1506_v46 = vor.u32 %v1702_v38, %v1503_v40  ;;  %v1684_v48 = vld [vmem:[%s2225_s6 + $0x24] sm:$0xf] }
  0xbc   : > { %1139 = vmatpush.bf16.msrb.mxu2 %v1602_v59  ;;  %1105 = vmatmul.bf16.vlgmr.msra.gmra.mxu3 %v2322_v6  ;;  %v1734_v43 = vld [vmem:[%s2225_s6 + $0x1b4] sm:$0xf]  ;;  %v1631_v44 = vld [vmem:[%s2225_s6 + $0x1b8] sm:$0xf0]  ;;  %v1570_v47 = vor.u32 %v1718_v41, %v1567_v42  ;;  %v1431_v49 = vld [vmem:[%s2225_s6 + $0x28] sm:$0xf0] }
  0xbd   : > { %1153 = vmatpush.bf16.msrb.mxu3 %v1666_v63  ;;  %v1700_v50 = vld [vmem:[%s2225_s6 + $0xa4] sm:$0xf]  ;;  %v1634_v51 = vor.u32 %v1734_v43, %v1631_v44  ;;  %v1495_v52 = vld [vmem:[%s2225_s6 + $0xa8] sm:$0xf0]  ;;  %v1434_v57 = vor.u32 %v1684_v48, %v1431_v49  ;;  %v1682_v60 = vld [vmem:[%s2225_s6 + $0x14] sm:$0xf] }
  0xbe   : > { %1112 = vmatpush.bf16.msrb.mxu0 %v1466_v8  ;;  %v1716_v53 = vld [vmem:[%s2225_s6 + $0x124] sm:$0xf]  ;;  %v1559_v54 = vld [vmem:[%s2225_s6 + $0x128] sm:$0xf0]  ;;  %v1498_v58 = vor.u32 %v1700_v50, %v1495_v52  ;;  %v1423_v61 = vld [vmem:[%s2225_s6 + $0x18] sm:$0xf0] }
  0xbf   : > { %1126 = vmatpush.bf16.msrb.mxu1 %v1530_v10  ;;  %v1732_v55 = vld [vmem:[%s2225_s6 + $0x1a4] sm:$0xf]  ;;  %v1623_v56 = vld [vmem:[%s2225_s6 + $0x1a8] sm:$0xf0]  ;;  %v1562_v59 = vor.u32 %v1716_v53, %v1559_v54  ;;  %v1698_v62 = vld [vmem:[%s2225_s6 + $0x94] sm:$0xf]  ;;  %v1426_v8 = vor.u32 %v1682_v60, %v1423_v61 }
  0xc0   : > { %1140 = vmatpush.bf16.msrb.mxu2 %v1594_v11  ;;  %v1626_v63 = vor.u32 %v1732_v55, %v1623_v56  ;;  %v1487_v1 = vld [vmem:[%s2225_s6 + $0x98] sm:$0xf0]  ;;  %v1714_v2 = vld [vmem:[%s2225_s6 + $0x114] sm:$0xf]  ;;  %v1680_v12 = vld [vmem:[%s2225_s6 + $0x4] sm:$0xf] }
  0xc1   : > { %1154 = vmatpush.bf16.msrb.mxu3 %v1658_v15  ;;  %v1551_v3 = vld [vmem:[%s2225_s6 + $0x118] sm:$0xf0]  ;;  %v1730_v4 = vld [vmem:[%s2225_s6 + $0x194] sm:$0xf]  ;;  %v1490_v10 = vor.u32 %v1698_v62, %v1487_v1  ;;  %v1415_v13 = vld [vmem:[%s2225_s6 + $0x8] sm:$0xf0] }
  0xc2   : > { %1113 = vmatpush.bf16.msrb.mxu0 %v1458_v21  ;;  %v1615_v5 = vld [vmem:[%s2225_s6 + $0x198] sm:$0xf0]  ;;  %v1554_v11 = vor.u32 %v1714_v2, %v1551_v3  ;;  %v1696_v14 = vld [vmem:[%s2225_s6 + $0x84] sm:$0xf]  ;;  %v1479_v16 = vld [vmem:[%s2225_s6 + $0x88] sm:$0xf0]  ;;  %v1418_v21 = vor.u32 %v1680_v12, %v1415_v13 }
  0xc3   : > { %1127 = vmatpush.bf16.msrb.mxu1 %v1522_v22  ;;  %v1618_v15 = vor.u32 %v1730_v4, %v1615_v5  ;;  %v1712_v17 = vld [vmem:[%s2225_s6 + $0x104] sm:$0xf]  ;;  %v1543_v18 = vld [vmem:[%s2225_s6 + $0x108] sm:$0xf0]  ;;  %v1482_v22 = vor.u32 %v1696_v14, %v1479_v16  ;;  %v643_v31 = vld [vmem:[#allocation2 + $0x10] sm:$0xff]  ;;  %p1667_p6 = scmp.ne.s32.totalorder %s1904_s21, 8 }
  0xc4   : > { %1141 = vmatpush.bf16.msrb.mxu2 %v1586_v23  ;;  %v1728_v19 = vld [vmem:[%s2225_s6 + $0x184] sm:$0xf]  ;;  %v1607_v20 = vld [vmem:[%s2225_s6 + $0x188] sm:$0xf0]  ;;  %v1546_v23 = vor.u32 %v1712_v17, %v1543_v18  ;;  %v645_v38 = vld [vmem:[#allocation2 + $0x18] sm:$0xff] }
  0xc5   : > { %1155 = vmatpush.bf16.msrb.mxu3 %v1650_v27  ;;  %v1610_v24 = vor.u32 %v1728_v19, %v1607_v20  ;;  %v646_v53 = vld [vmem:[#allocation2 + $0x8] sm:$0xff] }
  0xc6   : > { %1114 = vmatpush.bf16.msrb.mxu0 %v1450_v33 }
  0xc7   : > { %1128 = vmatpush.bf16.msrb.mxu1 %v1514_v34 }
  0xc8   : > { %1142 = vmatpush.bf16.msrb.mxu2 %v1578_v35 }
  0xc9   : > { %1156 = vmatpush.bf16.msrb.mxu3 %v1642_v39 }
  0xca   : > { %1115 = vmatpush.bf16.msrb.mxu0 %v1442_v45  ;;  %v644_v45 = vld [vmem:[#allocation2] sm:$0xff] }
  0xcb   : > { %1129 = vmatpush.bf16.msrb.mxu1 %v1506_v46 }
  0xcc   : > { %1143 = vmatpush.bf16.msrb.mxu2 %v1570_v47 }
  0xcd   : > { %1157 = vmatpush.bf16.msrb.mxu3 %v1634_v51 }
  0xce   : > { %1116 = vmatpush.bf16.msrb.mxu0 %v1434_v57 }
  0xcf   : > { %1130 = vmatpush.bf16.msrb.mxu1 %v1498_v58 }
  0xd0   : > { %1144 = vmatpush.bf16.msrb.mxu2 %v1562_v59 }
  0xd1   : > { %1158 = vmatpush.bf16.msrb.mxu3 %v1626_v63 }
  0xd2   : > { %1117 = vmatpush.bf16.msrb.mxu0 %v1426_v8 }
  0xd3   : > { %1131 = vmatpush.bf16.msrb.mxu1 %v1490_v10 }
  0xd4   : > { %1145 = vmatpush.bf16.msrb.mxu2 %v1554_v11 }
  0xd5   : > { %1159 = vmatpush.bf16.msrb.mxu3 %v1618_v15 }
  0xd6   : > { %1118 = vmatpush.bf16.msrb.mxu0 %v1418_v21 }
  0xd7   : > { %1132 = vmatpush.bf16.msrb.mxu1 %v1482_v22 }
  0xd8   : > { %1146 = vmatpush.bf16.msrb.mxu2 %v1546_v23 }
  0xd9   : > { %1160 = vmatpush.bf16.msrb.mxu3 %v1610_v24  ;;  %1119 = vmatmul.bf16.vlgmr.msrb.gmra.mxu0 %v2324_v7 }
  0xda   : > { %1133 = vmatmul.bf16.vlgmr.msrb.gmra.mxu1 %v2326_v9 }
  0xdb   : > { %1147 = vmatmul.bf16.vlgmr.msrb.gmra.mxu2 %v2315_v0 }
  0xdc   : > { %1161 = vmatmul.bf16.vlgmr.msrb.gmra.mxu3 %v2322_v6 }
 0x136   : > { %v1064_v25 = vpop.f32.mrf.mxu0 }
 0x137   : > { %v1078_v26 = vpop.f32.mrf.mxu1 }
 0x138   : > { %v1079_v27 = vadd.f32 %v1078_v26, %v1064_v25 }
 0x13e   : > { %v1092_v28 = vpop.f32.mrf.mxu2  ;;  %v1066_v33 = vpop.f32.mrf.mxu0 }
 0x13f   : > { %v1093_v29 = vadd.f32 %v1092_v28, %v1079_v27  ;;  %v1106_v30 = vpop.f32.mrf.mxu3  ;;  %v1080_v34 = vpop.f32.mrf.mxu1 }
 0x140   : > { %v1081_v36 = vadd.f32 %v1080_v34, %v1066_v33 }
 0x141   : > { %v1107_v32 = vadd.f32 %v1106_v30, %v1093_v29 }
 0x143   : > { %v1167_v35 = vadd.f32 %v1107_v32, %v643_v31 }
 0x145   : > { %1171 = vst [vmem:[#allocation2 + $0x10] sm:$0xff] %v1167_v35 }
 0x146   : > { %v1094_v7 = vpop.f32.mrf.mxu2 }
 0x147   : > { %v1095_v37 = vadd.f32 %v1094_v7, %v1081_v36  ;;  %v1108_v9 = vpop.f32.mrf.mxu3 }
 0x149   : > { %v1109_v0 = vadd.f32 %v1108_v9, %v1095_v37 }
 0x14b   : > { %v1169_v39 = vadd.f32 %v1109_v0, %v645_v38 }
 0x14d   : > { %1173 = vst [vmem:[#allocation2 + $0x18] sm:$0xff] %v1169_v39 }
 0x156   : > { %v1120_v6 = vpop.f32.mrf.mxu0 }
 0x157   : > { %v1134_v40 = vpop.f32.mrf.mxu1 }
 0x158   : > { %v1135_v41 = vadd.f32 %v1134_v40, %v1120_v6 }
 0x15e   : > { %v1148_v42 = vpop.f32.mrf.mxu2  ;;  %v1122_v47 = vpop.f32.mrf.mxu0 }
 0x15f   : > { %v1149_v43 = vadd.f32 %v1148_v42, %v1135_v41  ;;  %v1162_v44 = vpop.f32.mrf.mxu3  ;;  %v1136_v48 = vpop.f32.mrf.mxu1 }
 0x160   : > { %v1137_v50 = vadd.f32 %v1136_v48, %v1122_v47 }
 0x161   : > { %v1163_v46 = vadd.f32 %v1162_v44, %v1149_v43 }
 0x163   : > { %v1168_v49 = vadd.f32 %v1163_v46, %v644_v45 }
 0x165   : > { %1172 = vst [vmem:[#allocation2] sm:$0xff] %v1168_v49 }
 0x166   : > { %v1150_v51 = vpop.f32.mrf.mxu2 }
 0x167   : > { %v1151_v52 = vadd.f32 %v1150_v51, %v1137_v50  ;;  %v1164_v54 = vpop.f32.mrf.mxu3 }
 0x169   : > { %v1165_v55 = vadd.f32 %v1164_v54, %v1151_v52  ;;  %1178 = sbr.rel (%p1667_p6) target bundleno = 380 (0x17c), region = 128 }
 0x16b   : > { %v1170_v56 = vadd.f32 %v1165_v55, %v646_v53 }
 0x16d   : > { %1174 = vst [vmem:[#allocation2 + $0x8] sm:$0xff] %v1170_v56 }
 0x16e   : > { %v1179_v57 = vld [vmem:[#allocation2 + $0x10] sm:$0xff]  ;;  %v1183_v58 = vld [vmem:[%s629_s30] sm:$0x3]  ;;  %v1194_v63 = vld [vmem:[%s2227_s1 + $0x8] sm:$0xff] }
 0x16f   : > { %v1193_v59 = vld [vmem:[%s2227_s1] sm:$0xff]  ;;  %v1185_v60 = vperm.slane %v1183_v58, 0  ;;  %v1186_v62 = vperm.slane %v1183_v58, 1  ;;  %v1181_v1 = vld [vmem:[#allocation2 + $0x18] sm:$0xff]  ;;  %v1195_v2 = vld [vmem:[%s2227_s1 + $0x10] sm:$0xff] }
 0x170   : > { %v1180_v61 = vld [vmem:[#allocation2] sm:$0xff]  ;;  %v1196_v4 = vld [vmem:[%s2227_s1 + $0x18] sm:$0xff] }
 0x171   : > { %v1189_v5 = vadd.f32 %v1185_v60, %v1179_v57  ;;  %v1190_v8 = vadd.f32 %v1186_v62, %v1180_v61  ;;  %v1191_v10 = vadd.f32 %v1185_v60, %v1181_v1 }
 0x173   : > { %v1197_v12 = vadd.f32 %v1193_v59, %v1189_v5  ;;  %v1198_v13 = vadd.f32 %v1194_v63, %v1190_v8  ;;  %v1199_v14 = vadd.f32 %v1195_v2, %v1191_v10 }
 0x174   : > { %v1182_v3 = vld [vmem:[#allocation2 + $0x8] sm:$0xff] }
 0x175   : > { %v1192_v11 = vadd.f32 %v1186_v62, %v1182_v3  ;;  %v1201_v16 = vmax.f32 %v1197_v12, 0.0  ;;  %v1202_v17 = vmax.f32 %v1198_v13, 0.0  ;;  %v1203_v18 = vmax.f32 %v1199_v14, 0.0 }
 0x177   : > { %v1200_v15 = vadd.f32 %v1196_v4, %v1192_v11  ;;  %1205 = vst [vmem:[%s2229_s17] sm:$0xff] %v1201_v16 }
 0x178   : > { %1206 = vst [vmem:[%s2229_s17 + $0x8] sm:$0xff] %v1202_v17 }
 0x179   : > { %v1204_v19 = vmax.f32 %v1200_v15, 0.0  ;;  %1207 = vst [vmem:[%s2229_s17 + $0x10] sm:$0xff] %v1203_v18 }
 0x17b   : > { %1208 = vst [vmem:[%s2229_s17 + $0x18] sm:$0xff] %v1204_v19 }
 0x17c PF: > { %1215 = sbr.rel (!%p2052_p13) target bundleno = 388 (0x184), region = 132  ;;  %s1744_s1 = sshll.u32 (%p2052_p13), %s1908_s22, 4 }
 0x17d   : > { %s1221_s11 = scalar_lea.vmem (%p2052_p13), %s2445_s4, %s1744_s1 }
 0x17e   : > { %v1234_v20 = vld [vmem:[%s2229_s17] sm:$0xff] (%p2052_p13) }
 0x17f   : > { %v1236_v21 = vld [vmem:[%s2229_s17 + $0x8] sm:$0xff] (%p2052_p13)  ;;  %1235 = vst [vmem:[%s1221_s11] sm:$0xff] (%p2052_p13), %v1234_v20 }
 0x180   : > { %v1238_v22 = vld [vmem:[%s2229_s17 + $0x10] sm:$0xff] (%p2052_p13)  ;;  %1237 = vst [vmem:[%s1221_s11 + $0x8] sm:$0xff] (%p2052_p13), %v1236_v21 }
 0x181   : > { %1239 = vst [vmem:[%s1221_s11 + $0x20] sm:$0xff] %v1238_v22 }
 0x182   : > { %v1240_v23 = vld [vmem:[%s2229_s17 + $0x18] sm:$0xff] }
 0x183   : > { %1241 = vst [vmem:[%s1221_s11 + $0x28] sm:$0xff] %v1240_v23 }
 0x184 PF: > { %s14_s25 = sadd.s32 1, %s1920_s25   ;;  %s2458_s29 = sld [smem:[#allocation7_spill]] }
 0x185   : > { %p11_p7 = scmp.ge.s32.totalorder %s14_s25, 20   ;;  %s2459_s8 = sld [smem:[#allocation8_spill]] }
 0x186   : > { %s2460_s15 = smov %s1884_s16  ;;  %s2461_s16 = smov %s2044_s13 }
 0x187   : > { %s2462_s17 = smov %s1892_s18  ;;  %s2463_s18 = smov %s2041_s12 }
 0x188   : > { %s2464_s19 = smov %s1900_s20  ;;  %s2465_s20 = smov %s2025_s7 }
 0x189   : > { %s2466_s21 = smov %s1912_s23  ;;  %s2467_s22 = smov %s1916_s24 }
 0x18a   : > { %s2468_s23 = smov %s2458_s29  ;;  %13 = sbr.rel (!%p11_p7) target bundleno = 9 (0x9), region = 205 }
 0x18b   : > { %s2469_s24 = smov %s2459_s8 }

// kernel: resnet18_forward.19
= control target key start
LH: loop header
LB: loop body
LE: loop exit
PB: predicated region body
PF: predicated region fallthrough
CT: control target
= control target key end

     0   :  { %s709_s1 = inlined_call_operand.vmem [shape: bf16[512,128], index: 1, kind: input, shape index: {}]   ;;  %s710_s0 = inlined_call_operand.vmem [shape: bf16[16,512], index: 0, kind: input, shape index: {}]   ;;  %s711_s2 = inlined_call_operand.vmem [shape: f32[1,128], index: 2, kind: input, shape index: {}]   ;;  %s712_s3 = inlined_call_operand.vmem [shape: f32[16,128], index: 3, kind: output, shape index: {}]  }
   0x1   :  { %v534_v0 = vld [vmem:[%s709_s1 + $0x38] sm:$0xff]  ;;  %v533_v4 = vld [vmem:[%s709_s1 + $0x30] sm:$0xff]  ;;  %v532_v8 = vld [vmem:[%s709_s1 + $0x28] sm:$0xff] }
   0x2   :  { %v542_v1 = vld [vmem:[%s709_s1 + $0x78] sm:$0xff]  ;;  %302 = vmatpush.bf16.msra.mxu0 %v534_v0  ;;  %v541_v5 = vld [vmem:[%s709_s1 + $0x70] sm:$0xff]  ;;  %v540_v9 = vld [vmem:[%s709_s1 + $0x68] sm:$0xff] }
   0x3   :  { %v550_v2 = vld [vmem:[%s709_s1 + $0xb8] sm:$0xff]  ;;  %316 = vmatpush.bf16.msra.mxu1 %v542_v1  ;;  %v549_v6 = vld [vmem:[%s709_s1 + $0xb0] sm:$0xff]  ;;  %v548_v10 = vld [vmem:[%s709_s1 + $0xa8] sm:$0xff] }
   0x4   :  { %v558_v3 = vld [vmem:[%s709_s1 + $0xf8] sm:$0xff]  ;;  %330 = vmatpush.bf16.msra.mxu2 %v550_v2  ;;  %v557_v7 = vld [vmem:[%s709_s1 + $0xf0] sm:$0xff]  ;;  %v556_v11 = vld [vmem:[%s709_s1 + $0xe8] sm:$0xff] }
   0x5   :  { %344 = vmatpush.bf16.msra.mxu3 %v558_v3  ;;  %v531_v12 = vld [vmem:[%s709_s1 + $0x20] sm:$0xff]  ;;  %v530_v16 = vld [vmem:[%s709_s1 + $0x18] sm:$0xff]  ;;  %v529_v20 = vld [vmem:[%s709_s1 + $0x10] sm:$0xff] }
   0x6   :  { %303 = vmatpush.bf16.msra.mxu0 %v533_v4  ;;  %v539_v13 = vld [vmem:[%s709_s1 + $0x60] sm:$0xff]  ;;  %v538_v17 = vld [vmem:[%s709_s1 + $0x58] sm:$0xff]  ;;  %v537_v21 = vld [vmem:[%s709_s1 + $0x50] sm:$0xff] }
   0x7   :  { %317 = vmatpush.bf16.msra.mxu1 %v541_v5  ;;  %v547_v14 = vld [vmem:[%s709_s1 + $0xa0] sm:$0xff]  ;;  %v546_v18 = vld [vmem:[%s709_s1 + $0x98] sm:$0xff]  ;;  %v545_v22 = vld [vmem:[%s709_s1 + $0x90] sm:$0xff] }
   0x8   :  { %331 = vmatpush.bf16.msra.mxu2 %v549_v6  ;;  %v555_v15 = vld [vmem:[%s709_s1 + $0xe0] sm:$0xff]  ;;  %v554_v19 = vld [vmem:[%s709_s1 + $0xd8] sm:$0xff]  ;;  %v553_v23 = vld [vmem:[%s709_s1 + $0xd0] sm:$0xff] }
   0x9   :  { %345 = vmatpush.bf16.msra.mxu3 %v557_v7  ;;  %v528_v24 = vld [vmem:[%s709_s1 + $0x8] sm:$0xff]  ;;  %v527_v28 = vld [vmem:[%s709_s1] sm:$0xff]  ;;  %v525_v33 = vld [vmem:[%s710_s0 + $0xc] sm:$0xf0] }
   0xa   :  { %304 = vmatpush.bf16.msra.mxu0 %v532_v8  ;;  %v536_v25 = vld [vmem:[%s709_s1 + $0x48] sm:$0xff]  ;;  %v535_v29 = vld [vmem:[%s709_s1 + $0x40] sm:$0xff]  ;;  %v383_v35 = vld [vmem:[%s710_s0 + $0x10] sm:$0xf0] }
   0xb   :  { %318 = vmatpush.bf16.msra.mxu1 %v540_v9  ;;  %v544_v26 = vld [vmem:[%s709_s1 + $0x88] sm:$0xff]  ;;  %v543_v30 = vld [vmem:[%s709_s1 + $0x80] sm:$0xff]  ;;  %v526_v37 = vld [vmem:[%s710_s0 + $0x14] sm:$0xf0] }
   0xc   :  { %332 = vmatpush.bf16.msra.mxu2 %v548_v10  ;;  %v552_v27 = vld [vmem:[%s709_s1 + $0xc8] sm:$0xff]  ;;  %v551_v31 = vld [vmem:[%s709_s1 + $0xc0] sm:$0xff]  ;;  %v391_v39 = vld [vmem:[%s710_s0 + $0x18] sm:$0xf0] }
   0xd   :  { %346 = vmatpush.bf16.msra.mxu3 %v556_v11  ;;  %v381_v32 = vld [vmem:[%s710_s0] sm:$0xf]  ;;  %v523_v34 = vld [vmem:[%s710_s0 + $0x4] sm:$0xf]  ;;  %v389_v36 = vld [vmem:[%s710_s0 + $0x8] sm:$0xf] }
   0xe   :  { %305 = vmatpush.bf16.msra.mxu0 %v531_v12  ;;  %v524_v38 = vld [vmem:[%s710_s0 + $0xc] sm:$0xf]  ;;  %v382_v40 = vor.u32 %v525_v33, %v381_v32  ;;  %v386_v41 = vor.u32 %v523_v34, %v383_v35  ;;  %v390_v42 = vor.u32 %v526_v37, %v389_v36  ;;  %v559_v50 = vld [vmem:[%s711_s2] ss:$0 sm:$0xff] }
   0xf   :  { %319 = vmatpush.bf16.msra.mxu1 %v539_v13  ;;  %v394_v43 = vor.u32 %v524_v38, %v391_v39 }
  0x10   :  { %333 = vmatpush.bf16.msra.mxu2 %v547_v14 }
  0x11   :  { %347 = vmatpush.bf16.msra.mxu3 %v555_v15 }
  0x12   :  { %306 = vmatpush.bf16.msra.mxu0 %v530_v16 }
  0x13   :  { %320 = vmatpush.bf16.msra.mxu1 %v538_v17 }
  0x14   :  { %334 = vmatpush.bf16.msra.mxu2 %v546_v18 }
  0x15   :  { %348 = vmatpush.bf16.msra.mxu3 %v554_v19 }
  0x16   :  { %307 = vmatpush.bf16.msra.mxu0 %v529_v20 }
  0x17   :  { %321 = vmatpush.bf16.msra.mxu1 %v537_v21 }
  0x18   :  { %335 = vmatpush.bf16.msra.mxu2 %v545_v22 }
  0x19   :  { %349 = vmatpush.bf16.msra.mxu3 %v553_v23 }
  0x1a   :  { %308 = vmatpush.bf16.msra.mxu0 %v528_v24 }
  0x1b   :  { %322 = vmatpush.bf16.msra.mxu1 %v536_v25 }
  0x1c   :  { %336 = vmatpush.bf16.msra.mxu2 %v544_v26 }
  0x1d   :  { %350 = vmatpush.bf16.msra.mxu3 %v552_v27 }
  0x1e   :  { %309 = vmatpush.bf16.msra.mxu0 %v527_v28 }
  0x1f   :  { %323 = vmatpush.bf16.msra.mxu1 %v535_v29 }
  0x20   :  { %337 = vmatpush.bf16.msra.mxu2 %v543_v30 }
  0x21   :  { %351 = vmatpush.bf16.msra.mxu3 %v551_v31  ;;  %310 = vmatmul.bf16.vlgmr.msra.gmra.mxu0 %v382_v40 }
  0x22   :  { %324 = vmatmul.bf16.vlgmr.msra.gmra.mxu1 %v386_v41 }
  0x23   :  { %338 = vmatmul.bf16.vlgmr.msra.gmra.mxu2 %v390_v42 }
  0x24   :  { %352 = vmatmul.bf16.vlgmr.msra.gmra.mxu3 %v394_v43 }
  0x9e   :  { %v311_v44 = vpop.f32.mrf.mxu0 }
  0x9f   :  { %v325_v45 = vpop.f32.mrf.mxu1 }
  0xa0   :  { %v326_v46 = vadd.f32 %v325_v45, %v311_v44 }
  0xa6   :  { %v339_v47 = vpop.f32.mrf.mxu2  ;;  %v313_v52 = vpop.f32.mrf.mxu0 }
  0xa7   :  { %v353_v48 = vpop.f32.mrf.mxu3  ;;  %v340_v49 = vadd.f32 %v339_v47, %v326_v46  ;;  %v327_v53 = vpop.f32.mrf.mxu1 }
  0xa8   :  { %v328_v55 = vadd.f32 %v327_v53, %v313_v52 }
  0xa9   :  { %v354_v51 = vadd.f32 %v353_v48, %v340_v49 }
  0xab   :  { %v371_v54 = vadd.f32 %v559_v50, %v354_v51 }
  0xad   :  { %373 = vst [vmem:[%s712_s3] sm:$0xff] %v371_v54 }
  0xae   :  { %v341_v56 = vpop.f32.mrf.mxu2 }
  0xaf   :  { %v342_v57 = vadd.f32 %v341_v56, %v328_v55  ;;  %v355_v58 = vpop.f32.mrf.mxu3 }
  0xb1   :  { %v356_v59 = vadd.f32 %v355_v58, %v342_v57 }
  0xb3   :  { %v372_v60 = vadd.f32 %v559_v50, %v356_v59 }
  0xb5   :  { %374 = vst [vmem:[%s712_s3 + $0x8] sm:$0xff] %v372_v60 }

</bundles_post_ra>
